<compile_context>
chip_gen: v5e
topology: v5e:2x2
jax: 0.10.0
libtpu: 0.0.40
codegen_flags: <defaults>
</compile_context>

<pallas_src>
import numpy as np
import jax
import jax.numpy as jnp
from jax.experimental import pallas as pl
from jax.experimental.pallas import tpu as pltpu


# --------------------------------------------------------------------------
# Kernels
# --------------------------------------------------------------------------
def _double_conv_kernel(xp_ref, w1_ref, b1_ref, w2_ref, b2_ref, y_ref, h1p_ref):
    # xp_ref : [1, H+2, W+2, Cin]   zero-padded input (NHWC, channels on lanes)
    # w*_ref : [9, Cin|Cout, Cout]  conv taps (index kh*3+kw), BN scale folded in
    # b*_ref : [1, Cout]            folded BN shift
    # y_ref  : [1, H, W, Cout]      module output `y`
    # h1p_ref: [H+2, W+16, Cout]    VMEM scratch: zero-padded ReLU(BN(conv1a)),
    #                               interior stored at column offset 8 (sublane aligned)
    _, H, W, Cout = y_ref.shape

    # ---- conv1a (3x3, s=1, p=1) + BN + ReLU : 9 accumulated MXU matmuls ----
    acc = jnp.zeros((H * W, Cout), jnp.float32)
    for kh in range(3):
        for kw in range(3):
            a = xp_ref[0, kh:kh + H, kw:kw + W, :]                  # [H, W, Cin]
            acc = acc + jnp.dot(a.reshape(H * W, a.shape[-1]),
                                w1_ref[kh * 3 + kw],
                                preferred_element_type=jnp.float32)
    h1 = jnp.maximum(acc + b1_ref[...], 0.0)                        # [H*W, Cout]

    # ---- re-pad h1 in VMEM (no HBM round trip for the intermediate) --------
    h1p_ref[...] = jnp.zeros_like(h1p_ref)
    h1p_ref[1:H + 1, 8:8 + W, :] = h1.reshape(H, W, Cout)           # aligned store

    # ---- conv1b (3x3, s=1, p=1) + BN + ReLU --------------------------------
    acc2 = jnp.zeros((H * W, Cout), jnp.float32)
    for kh in range(3):
        for kw in range(3):
            a = h1p_ref[kh:kh + H, 7 + kw:7 + kw + W, :]            # [H, W, Cout]
            acc2 = acc2 + jnp.dot(a.reshape(H * W, Cout),
                                  w2_ref[kh * 3 + kw],
                                  preferred_element_type=jnp.float32)
    y_ref[0] = jnp.maximum(acc2 + b2_ref[...], 0.0).reshape(H, W, Cout)


def _downsample_conv_kernel(yp_ref, w3_ref, b3_ref, o_ref):
    # yp_ref: [1, 4, Ho+1, Wo+1, Cout]  space-to-depth of zero-padded y:
    #         yp[p, i, j] = y_pad[2i+ph, 2j+pw],  p = 2*ph + pw
    # o_ref : [1, Ho, Wo, Cout]
    _, Ho, Wo, Cout = o_ref.shape
    acc = jnp.zeros((Ho * Wo, Cout), jnp.float32)
    for kh in range(3):
        for kw in range(3):
            p = (kh % 2) * 2 + (kw % 2)
            a = yp_ref[0, p, kh // 2:kh // 2 + Ho, kw // 2:kw // 2 + Wo, :]
            acc = acc + jnp.dot(a.reshape(Ho * Wo, Cout),
                                w3_ref[kh * 3 + kw],
                                preferred_element_type=jnp.float32)
    o_ref[0] = jnp.maximum(acc + b3_ref[...], 0.0).reshape(Ho, Wo, Cout)


# --------------------------------------------------------------------------
# Wrapper
# --------------------------------------------------------------------------
def _fold_conv_bn(p, eps):
    """Fold eval-mode BN into the conv weight/bias.  Returns ([9,Cin,Cout], [1,Cout])."""
    w = p["w"].astype(jnp.float32)                     # [Cout, Cin, 3, 3]
    s = p["gamma"].astype(jnp.float32) / jnp.sqrt(p["var"].astype(jnp.float32) + eps)
    cout, cin = w.shape[0], w.shape[1]
    w9 = jnp.transpose(w, (2, 3, 1, 0)).reshape(9, cin, cout) * s[None, None, :]
    bias = (p["b"].astype(jnp.float32) - p["mean"].astype(jnp.float32)) * s \
        + p["beta"].astype(jnp.float32)
    return w9, bias.reshape(1, cout)


def encoder_forward(x, params, eps=1e-5):
    """x: [N, in_ch, H, W] (NCHW).  Returns (y, out) in NCHW, like Encoder.forward."""
    N, Cin, H, W = x.shape
    Cout = params["conv1a"]["w"].shape[0]
    assert H % 2 == 0 and W % 16 == 0, "test harness assumes even H and W % 16 == 0"
    Ho, Wo = H // 2, W // 2

    w1, b1 = _fold_conv_bn(params["conv1a"], eps)
    w2, b2 = _fold_conv_bn(params["conv1b"], eps)
    w3, b3 = _fold_conv_bn(params["down"], eps)

    # ---- layout plumbing (glue): NCHW -> padded NHWC -----------------------
    x_nhwc = jnp.transpose(x, (0, 2, 3, 1)).astype(jnp.float32)
    xp = jnp.pad(x_nhwc, ((0, 0), (1, 1), (1, 1), (0, 0)))          # [N,H+2,W+2,Cin]

    y_nhwc = pl.pallas_call(
        _double_conv_kernel,
        out_shape=jax.ShapeDtypeStruct((N, H, W, Cout), jnp.float32),
        grid_spec=pltpu.PrefetchScalarGridSpec(
            num_scalar_prefetch=0,
            grid=(N,),
            in_specs=[
                pl.BlockSpec((1, H + 2, W + 2, Cin), lambda n: (n, 0, 0, 0)),
                pl.BlockSpec((9, Cin, Cout), lambda n: (0, 0, 0)),
                pl.BlockSpec((1, Cout), lambda n: (0, 0)),
                pl.BlockSpec((9, Cout, Cout), lambda n: (0, 0, 0)),
                pl.BlockSpec((1, Cout), lambda n: (0, 0)),
            ],
            out_specs=pl.BlockSpec((1, H, W, Cout), lambda n: (n, 0, 0, 0)),
            scratch_shapes=[pltpu.VMEM((H + 2, W + 16, Cout), jnp.float32)],
        ),
        compiler_params=pltpu.CompilerParams(dimension_semantics=("parallel",)),
    )(xp, w1, b1, w2, b2)

    # ---- space-to-depth of zero-padded y (pure permutation, no replication) ----
    y_pad = jnp.pad(y_nhwc, ((0, 0), (1, 1), (1, 1), (0, 0)))       # [N,H+2,W+2,Cout]
    y_s2d = (y_pad.reshape(N, Ho + 1, 2, Wo + 1, 2, Cout)
                  .transpose(0, 2, 4, 1, 3, 5)
                  .reshape(N, 4, Ho + 1, Wo + 1, Cout))

    out_nhwc = pl.pallas_call(
        _downsample_conv_kernel,
        out_shape=jax.ShapeDtypeStruct((N, Ho, Wo, Cout), jnp.float32),
        grid_spec=pltpu.PrefetchScalarGridSpec(
            num_scalar_prefetch=0,
            grid=(N,),
            in_specs=[
                pl.BlockSpec((1, 4, Ho + 1, Wo + 1, Cout), lambda n: (n, 0, 0, 0, 0)),
                pl.BlockSpec((9, Cout, Cout), lambda n: (0, 0, 0)),
                pl.BlockSpec((1, Cout), lambda n: (0, 0)),
            ],
            out_specs=pl.BlockSpec((1, Ho, Wo, Cout), lambda n: (n, 0, 0, 0)),
        ),
        compiler_params=pltpu.CompilerParams(dimension_semantics=("parallel",)),
    )(y_s2d, w3, b3)

    y_out = jnp.transpose(y_nhwc, (0, 3, 1, 2))                     # NCHW
    out = jnp.transpose(out_nhwc, (0, 3, 1, 2))                     # NCHW
    return y_out, out


# --------------------------------------------------------------------------
# Pure numpy reference (eval-mode BN)
# --------------------------------------------------------------------------
def _ref_encoder(x, params, eps=1e-5):
    def conv_bn_relu(v, p, stride):
        w = np.asarray(p["w"], np.float32)
        b = np.asarray(p["b"], np.float32)
        n, cin, h, wd = v.shape
        cout = w.shape[0]
        ho = (h + 2 - 3) // stride + 1
        wo = (wd + 2 - 3) // stride + 1
        vp = np.pad(v, ((0, 0), (0, 0), (1, 1), (1, 1)))
        z = np.zeros((n, cout, ho, wo), np.float32)
        for kh in range(3):
            for kw in range(3):
                patch = vp[:, :, kh:kh + stride * (ho - 1) + 1:stride,
                              kw:kw + stride * (wo - 1) + 1:stride]
                z += np.einsum("nchw,oc->nohw", patch, w[:, :, kh, kw])
        z += b[None, :, None, None]
        g, be, m, va = (np.asarray(p[k], np.float32)[None, :, None, None]
                        for k in ("gamma", "beta", "mean", "var"))
        z = (z - m) / np.sqrt(va + eps) * g + be
        return np.maximum(z, 0.0)

    h = conv_bn_relu(np.asarray(x, np.float32), params["conv1a"], 1)
    y = conv_bn_relu(h, params["conv1b"], 1)
    out = conv_bn_relu(y, params["down"], 2)
    return y, out


# --------------------------------------------------------------------------
if __name__ == "__main__":
    N, Cin, Cout, H, W = 2, 4, 32, 16, 16
    key = jax.random.PRNGKey(0)
    ks = jax.random.split(key, 20)

    def conv_params(i, cin, cout):
        return {
            "w":     0.2 * jax.random.normal(ks[i], (cout, cin, 3, 3), jnp.float32),
            "b":     0.1 * jax.random.normal(ks[i + 1], (cout,), jnp.float32),
            "gamma": 1.0 + 0.1 * jax.random.normal(ks[i + 2], (cout,), jnp.float32),
            "beta":  0.1 * jax.random.normal(ks[i + 3], (cout,), jnp.float32),
            "mean":  0.1 * jax.random.normal(ks[i + 4], (cout,), jnp.float32),
            "var":   0.5 + jax.random.uniform(ks[i + 5], (cout,), jnp.float32),
        }

    params = {
        "conv1a": conv_params(0, Cin, Cout),
        "conv1b": conv_params(6, Cout, Cout),
        "down":   conv_params(12, Cout, Cout),
    }
    x = jax.random.normal(ks[18], (N, Cin, H, W), jnp.float32)

    y, out = encoder_forward(x, params)
    y, out = jax.block_until_ready((y, out))

    y_ref, out_ref = _ref_encoder(x, params)
    np.testing.assert_allclose(np.asarray(y), y_ref, rtol=2e-3, atol=2e-3)
    np.testing.assert_allclose(np.asarray(out), out_ref, rtol=2e-3, atol=2e-3)
    print("KERNEL_OK")
</pallas_src>

<mosaic_0001>
module attributes {stable_mosaic.version = 11 : i64} {
  func.func @_double_conv_kernel(%arg0: i32, %arg1: memref<1x18x18x4xf32, #tpu.memory_space<vmem>>, %arg2: memref<9x4x32xf32, #tpu.memory_space<vmem>>, %arg3: memref<1x32xf32, #tpu.memory_space<vmem>>, %arg4: memref<9x32x32xf32, #tpu.memory_space<vmem>>, %arg5: memref<1x32xf32, #tpu.memory_space<vmem>>, %arg6: memref<1x16x16x32xf32, #tpu.memory_space<vmem>>, %arg7: memref<18x32x32xf32, #tpu.memory_space<vmem>>) attributes {dimension_semantics = [#tpu.dimension_semantics<parallel>], iteration_bounds = array<i64: 2>, scalar_prefetch = 0 : i64, scratch_operands = 1 : i64, tpu.core_type = #tpu.core_type<tc>, window_params = [{transform_indices = @transform_0, window_bounds = array<i64: 1, 18, 18, 4>}, {pipeline_mode = #tpu.pipeline_mode<synchronous>, transform_indices = @transform_1, window_bounds = array<i64: 9, 4, 32>}, {pipeline_mode = #tpu.pipeline_mode<synchronous>, transform_indices = @transform_2, window_bounds = array<i64: 1, 32>}, {pipeline_mode = #tpu.pipeline_mode<synchronous>, transform_indices = @transform_3, window_bounds = array<i64: 9, 32, 32>}, {pipeline_mode = #tpu.pipeline_mode<synchronous>, transform_indices = @transform_4, window_bounds = array<i64: 1, 32>}, {transform_indices = @transform_5, window_bounds = array<i64: 1, 16, 16, 32>}]} {
    %cst = arith.constant 0.000000e+00 : f32
    %0 = vector.broadcast %cst : f32 to vector<256x32xf32>
    %c0 = arith.constant 0 : index
    %c0_0 = arith.constant 0 : index
    %c0_1 = arith.constant 0 : index
    %c0_2 = arith.constant 0 : index
    %1 = vector.load %arg1[%c0, %c0_0, %c0_1, %c0_2] : memref<1x18x18x4xf32, #tpu.memory_space<vmem>>, vector<1x16x16x4xf32>
    %2 = vector.shape_cast %1 : vector<1x16x16x4xf32> to vector<16x16x4xf32>
    %3 = vector.shape_cast %2 : vector<16x16x4xf32> to vector<256x4xf32>
    %c0_3 = arith.constant 0 : index
    %c0_4 = arith.constant 0 : index
    %c0_5 = arith.constant 0 : index
    %4 = vector.load %arg2[%c0_3, %c0_4, %c0_5] : memref<9x4x32xf32, #tpu.memory_space<vmem>>, vector<1x4x32xf32>
    %5 = vector.shape_cast %4 : vector<1x4x32xf32> to vector<4x32xf32>
    %cst_6 = arith.constant dense<0.000000e+00> : vector<256x32xf32>
    %6 = tpu.matmul %3, %5, %cst_6 {dimension_numbers = #tpu.dot_dimension_numbers<[1], [0], [0], [1], [0, 0, 1, 1], [], []>} : vector<256x4xf32>, vector<4x32xf32>, vector<256x32xf32> -> vector<256x32xf32>
    %7 = arith.addf %0, %6 : vector<256x32xf32>
    %c0_7 = arith.constant 0 : index
    %c0_8 = arith.constant 0 : index
    %c1 = arith.constant 1 : index
    %c0_9 = arith.constant 0 : index
    %8 = vector.load %arg1[%c0_7, %c0_8, %c1, %c0_9] : memref<1x18x18x4xf32, #tpu.memory_space<vmem>>, vector<1x16x16x4xf32>
    %9 = vector.shape_cast %8 : vector<1x16x16x4xf32> to vector<16x16x4xf32>
    %10 = vector.shape_cast %9 : vector<16x16x4xf32> to vector<256x4xf32>
    %c1_10 = arith.constant 1 : index
    %c0_11 = arith.constant 0 : index
    %c0_12 = arith.constant 0 : index
    %11 = vector.load %arg2[%c1_10, %c0_11, %c0_12] : memref<9x4x32xf32, #tpu.memory_space<vmem>>, vector<1x4x32xf32>
    %12 = vector.shape_cast %11 : vector<1x4x32xf32> to vector<4x32xf32>
    %cst_13 = arith.constant dense<0.000000e+00> : vector<256x32xf32>
    %13 = tpu.matmul %10, %12, %cst_13 {dimension_numbers = #tpu.dot_dimension_numbers<[1], [0], [0], [1], [0, 0, 1, 1], [], []>} : vector<256x4xf32>, vector<4x32xf32>, vector<256x32xf32> -> vector<256x32xf32>
    %14 = arith.addf %7, %13 : vector<256x32xf32>
    %c0_14 = arith.constant 0 : index
    %c0_15 = arith.constant 0 : index
    %c2 = arith.constant 2 : index
    %c0_16 = arith.constant 0 : index
    %15 = vector.load %arg1[%c0_14, %c0_15, %c2, %c0_16] : memref<1x18x18x4xf32, #tpu.memory_space<vmem>>, vector<1x16x16x4xf32>
    %16 = vector.shape_cast %15 : vector<1x16x16x4xf32> to vector<16x16x4xf32>
    %17 = vector.shape_cast %16 : vector<16x16x4xf32> to vector<256x4xf32>
    %c2_17 = arith.constant 2 : index
    %c0_18 = arith.constant 0 : index
    %c0_19 = arith.constant 0 : index
    %18 = vector.load %arg2[%c2_17, %c0_18, %c0_19] : memref<9x4x32xf32, #tpu.memory_space<vmem>>, vector<1x4x32xf32>
    %19 = vector.shape_cast %18 : vector<1x4x32xf32> to vector<4x32xf32>
    %cst_20 = arith.constant dense<0.000000e+00> : vector<256x32xf32>
    %20 = tpu.matmul %17, %19, %cst_20 {dimension_numbers = #tpu.dot_dimension_numbers<[1], [0], [0], [1], [0, 0, 1, 1], [], []>} : vector<256x4xf32>, vector<4x32xf32>, vector<256x32xf32> -> vector<256x32xf32>
    %21 = arith.addf %14, %20 : vector<256x32xf32>
    %c0_21 = arith.constant 0 : index
    %c1_22 = arith.constant 1 : index
    %c0_23 = arith.constant 0 : index
    %c0_24 = arith.constant 0 : index
    %22 = vector.load %arg1[%c0_21, %c1_22, %c0_23, %c0_24] : memref<1x18x18x4xf32, #tpu.memory_space<vmem>>, vector<1x16x16x4xf32>
    %23 = vector.shape_cast %22 : vector<1x16x16x4xf32> to vector<16x16x4xf32>
    %24 = vector.shape_cast %23 : vector<16x16x4xf32> to vector<256x4xf32>
    %c3 = arith.constant 3 : index
    %c0_25 = arith.constant 0 : index
    %c0_26 = arith.constant 0 : index
    %25 = vector.load %arg2[%c3, %c0_25, %c0_26] : memref<9x4x32xf32, #tpu.memory_space<vmem>>, vector<1x4x32xf32>
    %26 = vector.shape_cast %25 : vector<1x4x32xf32> to vector<4x32xf32>
    %cst_27 = arith.constant dense<0.000000e+00> : vector<256x32xf32>
    %27 = tpu.matmul %24, %26, %cst_27 {dimension_numbers = #tpu.dot_dimension_numbers<[1], [0], [0], [1], [0, 0, 1, 1], [], []>} : vector<256x4xf32>, vector<4x32xf32>, vector<256x32xf32> -> vector<256x32xf32>
    %28 = arith.addf %21, %27 : vector<256x32xf32>
    %c0_28 = arith.constant 0 : index
    %c1_29 = arith.constant 1 : index
    %c1_30 = arith.constant 1 : index
    %c0_31 = arith.constant 0 : index
    %29 = vector.load %arg1[%c0_28, %c1_29, %c1_30, %c0_31] : memref<1x18x18x4xf32, #tpu.memory_space<vmem>>, vector<1x16x16x4xf32>
    %30 = vector.shape_cast %29 : vector<1x16x16x4xf32> to vector<16x16x4xf32>
    %31 = vector.shape_cast %30 : vector<16x16x4xf32> to vector<256x4xf32>
    %c4 = arith.constant 4 : index
    %c0_32 = arith.constant 0 : index
    %c0_33 = arith.constant 0 : index
    %32 = vector.load %arg2[%c4, %c0_32, %c0_33] : memref<9x4x32xf32, #tpu.memory_space<vmem>>, vector<1x4x32xf32>
    %33 = vector.shape_cast %32 : vector<1x4x32xf32> to vector<4x32xf32>
    %cst_34 = arith.constant dense<0.000000e+00> : vector<256x32xf32>
    %34 = tpu.matmul %31, %33, %cst_34 {dimension_numbers = #tpu.dot_dimension_numbers<[1], [0], [0], [1], [0, 0, 1, 1], [], []>} : vector<256x4xf32>, vector<4x32xf32>, vector<256x32xf32> -> vector<256x32xf32>
    %35 = arith.addf %28, %34 : vector<256x32xf32>
    %c0_35 = arith.constant 0 : index
    %c1_36 = arith.constant 1 : index
    %c2_37 = arith.constant 2 : index
    %c0_38 = arith.constant 0 : index
    %36 = vector.load %arg1[%c0_35, %c1_36, %c2_37, %c0_38] : memref<1x18x18x4xf32, #tpu.memory_space<vmem>>, vector<1x16x16x4xf32>
    %37 = vector.shape_cast %36 : vector<1x16x16x4xf32> to vector<16x16x4xf32>
    %38 = vector.shape_cast %37 : vector<16x16x4xf32> to vector<256x4xf32>
    %c5 = arith.constant 5 : index
    %c0_39 = arith.constant 0 : index
    %c0_40 = arith.constant 0 : index
    %39 = vector.load %arg2[%c5, %c0_39, %c0_40] : memref<9x4x32xf32, #tpu.memory_space<vmem>>, vector<1x4x32xf32>
    %40 = vector.shape_cast %39 : vector<1x4x32xf32> to vector<4x32xf32>
    %cst_41 = arith.constant dense<0.000000e+00> : vector<256x32xf32>
    %41 = tpu.matmul %38, %40, %cst_41 {dimension_numbers = #tpu.dot_dimension_numbers<[1], [0], [0], [1], [0, 0, 1, 1], [], []>} : vector<256x4xf32>, vector<4x32xf32>, vector<256x32xf32> -> vector<256x32xf32>
    %42 = arith.addf %35, %41 : vector<256x32xf32>
    %c0_42 = arith.constant 0 : index
    %c2_43 = arith.constant 2 : index
    %c0_44 = arith.constant 0 : index
    %c0_45 = arith.constant 0 : index
    %43 = vector.load %arg1[%c0_42, %c2_43, %c0_44, %c0_45] : memref<1x18x18x4xf32, #tpu.memory_space<vmem>>, vector<1x16x16x4xf32>
    %44 = vector.shape_cast %43 : vector<1x16x16x4xf32> to vector<16x16x4xf32>
    %45 = vector.shape_cast %44 : vector<16x16x4xf32> to vector<256x4xf32>
    %c6 = arith.constant 6 : index
    %c0_46 = arith.constant 0 : index
    %c0_47 = arith.constant 0 : index
    %46 = vector.load %arg2[%c6, %c0_46, %c0_47] : memref<9x4x32xf32, #tpu.memory_space<vmem>>, vector<1x4x32xf32>
    %47 = vector.shape_cast %46 : vector<1x4x32xf32> to vector<4x32xf32>
    %cst_48 = arith.constant dense<0.000000e+00> : vector<256x32xf32>
    %48 = tpu.matmul %45, %47, %cst_48 {dimension_numbers = #tpu.dot_dimension_numbers<[1], [0], [0], [1], [0, 0, 1, 1], [], []>} : vector<256x4xf32>, vector<4x32xf32>, vector<256x32xf32> -> vector<256x32xf32>
    %49 = arith.addf %42, %48 : vector<256x32xf32>
    %c0_49 = arith.constant 0 : index
    %c2_50 = arith.constant 2 : index
    %c1_51 = arith.constant 1 : index
    %c0_52 = arith.constant 0 : index
    %50 = vector.load %arg1[%c0_49, %c2_50, %c1_51, %c0_52] : memref<1x18x18x4xf32, #tpu.memory_space<vmem>>, vector<1x16x16x4xf32>
    %51 = vector.shape_cast %50 : vector<1x16x16x4xf32> to vector<16x16x4xf32>
    %52 = vector.shape_cast %51 : vector<16x16x4xf32> to vector<256x4xf32>
    %c7 = arith.constant 7 : index
    %c0_53 = arith.constant 0 : index
    %c0_54 = arith.constant 0 : index
    %53 = vector.load %arg2[%c7, %c0_53, %c0_54] : memref<9x4x32xf32, #tpu.memory_space<vmem>>, vector<1x4x32xf32>
    %54 = vector.shape_cast %53 : vector<1x4x32xf32> to vector<4x32xf32>
    %cst_55 = arith.constant dense<0.000000e+00> : vector<256x32xf32>
    %55 = tpu.matmul %52, %54, %cst_55 {dimension_numbers = #tpu.dot_dimension_numbers<[1], [0], [0], [1], [0, 0, 1, 1], [], []>} : vector<256x4xf32>, vector<4x32xf32>, vector<256x32xf32> -> vector<256x32xf32>
    %56 = arith.addf %49, %55 : vector<256x32xf32>
    %c0_56 = arith.constant 0 : index
    %c2_57 = arith.constant 2 : index
    %c2_58 = arith.constant 2 : index
    %c0_59 = arith.constant 0 : index
    %57 = vector.load %arg1[%c0_56, %c2_57, %c2_58, %c0_59] : memref<1x18x18x4xf32, #tpu.memory_space<vmem>>, vector<1x16x16x4xf32>
    %58 = vector.shape_cast %57 : vector<1x16x16x4xf32> to vector<16x16x4xf32>
    %59 = vector.shape_cast %58 : vector<16x16x4xf32> to vector<256x4xf32>
    %c8 = arith.constant 8 : index
    %c0_60 = arith.constant 0 : index
    %c0_61 = arith.constant 0 : index
    %60 = vector.load %arg2[%c8, %c0_60, %c0_61] : memref<9x4x32xf32, #tpu.memory_space<vmem>>, vector<1x4x32xf32>
    %61 = vector.shape_cast %60 : vector<1x4x32xf32> to vector<4x32xf32>
    %cst_62 = arith.constant dense<0.000000e+00> : vector<256x32xf32>
    %62 = tpu.matmul %59, %61, %cst_62 {dimension_numbers = #tpu.dot_dimension_numbers<[1], [0], [0], [1], [0, 0, 1, 1], [], []>} : vector<256x4xf32>, vector<4x32xf32>, vector<256x32xf32> -> vector<256x32xf32>
    %63 = arith.addf %56, %62 : vector<256x32xf32>
    %c0_63 = arith.constant 0 : index
    %c0_64 = arith.constant 0 : index
    %64 = vector.load %arg3[%c0_63, %c0_64] : memref<1x32xf32, #tpu.memory_space<vmem>>, vector<1x32xf32>
    %65 = vector.broadcast %64 : vector<1x32xf32> to vector<256x32xf32>
    %66 = arith.addf %63, %65 : vector<256x32xf32>
    %cst_65 = arith.constant 0.000000e+00 : f32
    %67 = vector.broadcast %cst_65 : f32 to vector<256x32xf32>
    %68 = arith.maximumf %66, %67 : vector<256x32xf32>
    %cst_66 = arith.constant 0.000000e+00 : f32
    %69 = vector.broadcast %cst_66 : f32 to vector<18x32x32xf32>
    %c0_67 = arith.constant 0 : index
    %c0_68 = arith.constant 0 : index
    %c0_69 = arith.constant 0 : index
    %70 = vector.load %arg7[%c0_67, %c0_68, %c0_69] : memref<18x32x32xf32, #tpu.memory_space<vmem>>, vector<18x32x32xf32>
    tpu.vector_store %arg7[%c0_67, %c0_68, %c0_69], %69 {strides = array<i32>} : memref<18x32x32xf32, #tpu.memory_space<vmem>>, vector<18x32x32xf32>,
    %71 = vector.shape_cast %68 : vector<256x32xf32> to vector<16x16x32xf32>
    %c1_70 = arith.constant 1 : index
    %c8_71 = arith.constant 8 : index
    %c0_72 = arith.constant 0 : index
    %72 = vector.load %arg7[%c1_70, %c8_71, %c0_72] : memref<18x32x32xf32, #tpu.memory_space<vmem>>, vector<16x16x32xf32>
    tpu.vector_store %arg7[%c1_70, %c8_71, %c0_72], %71 {strides = array<i32>} : memref<18x32x32xf32, #tpu.memory_space<vmem>>, vector<16x16x32xf32>,
    %cst_73 = arith.constant 0.000000e+00 : f32
    %73 = vector.broadcast %cst_73 : f32 to vector<256x32xf32>
    %c0_74 = arith.constant 0 : index
    %c7_75 = arith.constant 7 : index
    %c0_76 = arith.constant 0 : index
    %74 = vector.load %arg7[%c0_74, %c7_75, %c0_76] : memref<18x32x32xf32, #tpu.memory_space<vmem>>, vector<16x16x32xf32>
    %75 = vector.shape_cast %74 : vector<16x16x32xf32> to vector<256x32xf32>
    %c0_77 = arith.constant 0 : index
    %c0_78 = arith.constant 0 : index
    %c0_79 = arith.constant 0 : index
    %76 = vector.load %arg4[%c0_77, %c0_78, %c0_79] : memref<9x32x32xf32, #tpu.memory_space<vmem>>, vector<1x32x32xf32>
    %77 = vector.shape_cast %76 : vector<1x32x32xf32> to vector<32x32xf32>
    %cst_80 = arith.constant dense<0.000000e+00> : vector<256x32xf32>
    %78 = tpu.matmul %75, %77, %cst_80 {dimension_numbers = #tpu.dot_dimension_numbers<[1], [0], [0], [1], [0, 0, 1, 1], [], []>} : vector<256x32xf32>, vector<32x32xf32>, vector<256x32xf32> -> vector<256x32xf32>
    %79 = arith.addf %73, %78 : vector<256x32xf32>
    %c0_81 = arith.constant 0 : index
    %c8_82 = arith.constant 8 : index
    %c0_83 = arith.constant 0 : index
    %80 = vector.load %arg7[%c0_81, %c8_82, %c0_83] : memref<18x32x32xf32, #tpu.memory_space<vmem>>, vector<16x16x32xf32>
    %81 = vector.shape_cast %80 : vector<16x16x32xf32> to vector<256x32xf32>
    %c1_84 = arith.constant 1 : index
    %c0_85 = arith.constant 0 : index
    %c0_86 = arith.constant 0 : index
    %82 = vector.load %arg4[%c1_84, %c0_85, %c0_86] : memref<9x32x32xf32, #tpu.memory_space<vmem>>, vector<1x32x32xf32>
    %83 = vector.shape_cast %82 : vector<1x32x32xf32> to vector<32x32xf32>
    %cst_87 = arith.constant dense<0.000000e+00> : vector<256x32xf32>
    %84 = tpu.matmul %81, %83, %cst_87 {dimension_numbers = #tpu.dot_dimension_numbers<[1], [0], [0], [1], [0, 0, 1, 1], [], []>} : vector<256x32xf32>, vector<32x32xf32>, vector<256x32xf32> -> vector<256x32xf32>
    %85 = arith.addf %79, %84 : vector<256x32xf32>
    %c0_88 = arith.constant 0 : index
    %c9 = arith.constant 9 : index
    %c0_89 = arith.constant 0 : index
    %86 = vector.load %arg7[%c0_88, %c9, %c0_89] : memref<18x32x32xf32, #tpu.memory_space<vmem>>, vector<16x16x32xf32>
    %87 = vector.shape_cast %86 : vector<16x16x32xf32> to vector<256x32xf32>
    %c2_90 = arith.constant 2 : index
    %c0_91 = arith.constant 0 : index
    %c0_92 = arith.constant 0 : index
    %88 = vector.load %arg4[%c2_90, %c0_91, %c0_92] : memref<9x32x32xf32, #tpu.memory_space<vmem>>, vector<1x32x32xf32>
    %89 = vector.shape_cast %88 : vector<1x32x32xf32> to vector<32x32xf32>
    %cst_93 = arith.constant dense<0.000000e+00> : vector<256x32xf32>
    %90 = tpu.matmul %87, %89, %cst_93 {dimension_numbers = #tpu.dot_dimension_numbers<[1], [0], [0], [1], [0, 0, 1, 1], [], []>} : vector<256x32xf32>, vector<32x32xf32>, vector<256x32xf32> -> vector<256x32xf32>
    %91 = arith.addf %85, %90 : vector<256x32xf32>
    %c1_94 = arith.constant 1 : index
    %c7_95 = arith.constant 7 : index
    %c0_96 = arith.constant 0 : index
    %92 = vector.load %arg7[%c1_94, %c7_95, %c0_96] : memref<18x32x32xf32, #tpu.memory_space<vmem>>, vector<16x16x32xf32>
    %93 = vector.shape_cast %92 : vector<16x16x32xf32> to vector<256x32xf32>
    %c3_97 = arith.constant 3 : index
    %c0_98 = arith.constant 0 : index
    %c0_99 = arith.constant 0 : index
    %94 = vector.load %arg4[%c3_97, %c0_98, %c0_99] : memref<9x32x32xf32, #tpu.memory_space<vmem>>, vector<1x32x32xf32>
    %95 = vector.shape_cast %94 : vector<1x32x32xf32> to vector<32x32xf32>
    %cst_100 = arith.constant dense<0.000000e+00> : vector<256x32xf32>
    %96 = tpu.matmul %93, %95, %cst_100 {dimension_numbers = #tpu.dot_dimension_numbers<[1], [0], [0], [1], [0, 0, 1, 1], [], []>} : vector<256x32xf32>, vector<32x32xf32>, vector<256x32xf32> -> vector<256x32xf32>
    %97 = arith.addf %91, %96 : vector<256x32xf32>
    %c1_101 = arith.constant 1 : index
    %c8_102 = arith.constant 8 : index
    %c0_103 = arith.constant 0 : index
    %98 = vector.load %arg7[%c1_101, %c8_102, %c0_103] : memref<18x32x32xf32, #tpu.memory_space<vmem>>, vector<16x16x32xf32>
    %99 = vector.shape_cast %98 : vector<16x16x32xf32> to vector<256x32xf32>
    %c4_104 = arith.constant 4 : index
    %c0_105 = arith.constant 0 : index
    %c0_106 = arith.constant 0 : index
    %100 = vector.load %arg4[%c4_104, %c0_105, %c0_106] : memref<9x32x32xf32, #tpu.memory_space<vmem>>, vector<1x32x32xf32>
    %101 = vector.shape_cast %100 : vector<1x32x32xf32> to vector<32x32xf32>
    %cst_107 = arith.constant dense<0.000000e+00> : vector<256x32xf32>
    %102 = tpu.matmul %99, %101, %cst_107 {dimension_numbers = #tpu.dot_dimension_numbers<[1], [0], [0], [1], [0, 0, 1, 1], [], []>} : vector<256x32xf32>, vector<32x32xf32>, vector<256x32xf32> -> vector<256x32xf32>
    %103 = arith.addf %97, %102 : vector<256x32xf32>
    %c1_108 = arith.constant 1 : index
    %c9_109 = arith.constant 9 : index
    %c0_110 = arith.constant 0 : index
    %104 = vector.load %arg7[%c1_108, %c9_109, %c0_110] : memref<18x32x32xf32, #tpu.memory_space<vmem>>, vector<16x16x32xf32>
    %105 = vector.shape_cast %104 : vector<16x16x32xf32> to vector<256x32xf32>
    %c5_111 = arith.constant 5 : index
    %c0_112 = arith.constant 0 : index
    %c0_113 = arith.constant 0 : index
    %106 = vector.load %arg4[%c5_111, %c0_112, %c0_113] : memref<9x32x32xf32, #tpu.memory_space<vmem>>, vector<1x32x32xf32>
    %107 = vector.shape_cast %106 : vector<1x32x32xf32> to vector<32x32xf32>
    %cst_114 = arith.constant dense<0.000000e+00> : vector<256x32xf32>
    %108 = tpu.matmul %105, %107, %cst_114 {dimension_numbers = #tpu.dot_dimension_numbers<[1], [0], [0], [1], [0, 0, 1, 1], [], []>} : vector<256x32xf32>, vector<32x32xf32>, vector<256x32xf32> -> vector<256x32xf32>
    %109 = arith.addf %103, %108 : vector<256x32xf32>
    %c2_115 = arith.constant 2 : index
    %c7_116 = arith.constant 7 : index
    %c0_117 = arith.constant 0 : index
    %110 = vector.load %arg7[%c2_115, %c7_116, %c0_117] : memref<18x32x32xf32, #tpu.memory_space<vmem>>, vector<16x16x32xf32>
    %111 = vector.shape_cast %110 : vector<16x16x32xf32> to vector<256x32xf32>
    %c6_118 = arith.constant 6 : index
    %c0_119 = arith.constant 0 : index
    %c0_120 = arith.constant 0 : index
    %112 = vector.load %arg4[%c6_118, %c0_119, %c0_120] : memref<9x32x32xf32, #tpu.memory_space<vmem>>, vector<1x32x32xf32>
    %113 = vector.shape_cast %112 : vector<1x32x32xf32> to vector<32x32xf32>
    %cst_121 = arith.constant dense<0.000000e+00> : vector<256x32xf32>
    %114 = tpu.matmul %111, %113, %cst_121 {dimension_numbers = #tpu.dot_dimension_numbers<[1], [0], [0], [1], [0, 0, 1, 1], [], []>} : vector<256x32xf32>, vector<32x32xf32>, vector<256x32xf32> -> vector<256x32xf32>
    %115 = arith.addf %109, %114 : vector<256x32xf32>
    %c2_122 = arith.constant 2 : index
    %c8_123 = arith.constant 8 : index
    %c0_124 = arith.constant 0 : index
    %116 = vector.load %arg7[%c2_122, %c8_123, %c0_124] : memref<18x32x32xf32, #tpu.memory_space<vmem>>, vector<16x16x32xf32>
    %117 = vector.shape_cast %116 : vector<16x16x32xf32> to vector<256x32xf32>
    %c7_125 = arith.constant 7 : index
    %c0_126 = arith.constant 0 : index
    %c0_127 = arith.constant 0 : index
    %118 = vector.load %arg4[%c7_125, %c0_126, %c0_127] : memref<9x32x32xf32, #tpu.memory_space<vmem>>, vector<1x32x32xf32>
    %119 = vector.shape_cast %118 : vector<1x32x32xf32> to vector<32x32xf32>
    %cst_128 = arith.constant dense<0.000000e+00> : vector<256x32xf32>
    %120 = tpu.matmul %117, %119, %cst_128 {dimension_numbers = #tpu.dot_dimension_numbers<[1], [0], [0], [1], [0, 0, 1, 1], [], []>} : vector<256x32xf32>, vector<32x32xf32>, vector<256x32xf32> -> vector<256x32xf32>
    %121 = arith.addf %115, %120 : vector<256x32xf32>
    %c2_129 = arith.constant 2 : index
    %c9_130 = arith.constant 9 : index
    %c0_131 = arith.constant 0 : index
    %122 = vector.load %arg7[%c2_129, %c9_130, %c0_131] : memref<18x32x32xf32, #tpu.memory_space<vmem>>, vector<16x16x32xf32>
    %123 = vector.shape_cast %122 : vector<16x16x32xf32> to vector<256x32xf32>
    %c8_132 = arith.constant 8 : index
    %c0_133 = arith.constant 0 : index
    %c0_134 = arith.constant 0 : index
    %124 = vector.load %arg4[%c8_132, %c0_133, %c0_134] : memref<9x32x32xf32, #tpu.memory_space<vmem>>, vector<1x32x32xf32>
    %125 = vector.shape_cast %124 : vector<1x32x32xf32> to vector<32x32xf32>
    %cst_135 = arith.constant dense<0.000000e+00> : vector<256x32xf32>
    %126 = tpu.matmul %123, %125, %cst_135 {dimension_numbers = #tpu.dot_dimension_numbers<[1], [0], [0], [1], [0, 0, 1, 1], [], []>} : vector<256x32xf32>, vector<32x32xf32>, vector<256x32xf32> -> vector<256x32xf32>
    %127 = arith.addf %121, %126 : vector<256x32xf32>
    %c0_136 = arith.constant 0 : index
    %c0_137 = arith.constant 0 : index
    %128 = vector.load %arg5[%c0_136, %c0_137] : memref<1x32xf32, #tpu.memory_space<vmem>>, vector<1x32xf32>
    %129 = vector.broadcast %128 : vector<1x32xf32> to vector<256x32xf32>
    %130 = arith.addf %127, %129 : vector<256x32xf32>
    %cst_138 = arith.constant 0.000000e+00 : f32
    %131 = vector.broadcast %cst_138 : f32 to vector<256x32xf32>
    %132 = arith.maximumf %130, %131 : vector<256x32xf32>
    %133 = vector.shape_cast %132 : vector<256x32xf32> to vector<16x16x32xf32>
    %c0_139 = arith.constant 0 : index
    %c0_140 = arith.constant 0 : index
    %c0_141 = arith.constant 0 : index
    %c0_142 = arith.constant 0 : index
    %134 = vector.load %arg6[%c0_139, %c0_140, %c0_141, %c0_142] : memref<1x16x16x32xf32, #tpu.memory_space<vmem>>, vector<1x16x16x32xf32>
    %135 = vector.shape_cast %134 : vector<1x16x16x32xf32> to vector<16x16x32xf32>
    %136 = vector.shape_cast %133 : vector<16x16x32xf32> to vector<1x16x16x32xf32>
    tpu.vector_store %arg6[%c0_139, %c0_140, %c0_141, %c0_142], %136 {strides = array<i32>} : memref<1x16x16x32xf32, #tpu.memory_space<vmem>>, vector<1x16x16x32xf32>,
    return
  }
  func.func @transform_0(%arg0: i32) -> (i32, i32, i32, i32) {
    %c0_i32 = arith.constant 0 : i32
    %c0_i32_0 = arith.constant 0 : i32
    %c0_i32_1 = arith.constant 0 : i32
    %c0_i32_2 = arith.constant 0 : i32
    return %arg0, %c0_i32, %c0_i32_0, %c0_i32_1 : i32, i32, i32, i32
  }
  func.func @transform_1(%arg0: i32) -> (i32, i32, i32) {
    %c0_i32 = arith.constant 0 : i32
    %c0_i32_0 = arith.constant 0 : i32
    %c0_i32_1 = arith.constant 0 : i32
    %c0_i32_2 = arith.constant 0 : i32
    return %c0_i32, %c0_i32_0, %c0_i32_1 : i32, i32, i32
  }
  func.func @transform_2(%arg0: i32) -> (i32, i32) {
    %c0_i32 = arith.constant 0 : i32
    %c0_i32_0 = arith.constant 0 : i32
    %c0_i32_1 = arith.constant 0 : i32
    return %c0_i32, %c0_i32_0 : i32, i32
  }
  func.func @transform_3(%arg0: i32) -> (i32, i32, i32) {
    %c0_i32 = arith.constant 0 : i32
    %c0_i32_0 = arith.constant 0 : i32
    %c0_i32_1 = arith.constant 0 : i32
    %c0_i32_2 = arith.constant 0 : i32
    return %c0_i32, %c0_i32_0, %c0_i32_1 : i32, i32, i32
  }
  func.func @transform_4(%arg0: i32) -> (i32, i32) {
    %c0_i32 = arith.constant 0 : i32
    %c0_i32_0 = arith.constant 0 : i32
    %c0_i32_1 = arith.constant 0 : i32
    return %c0_i32, %c0_i32_0 : i32, i32
  }
  func.func @transform_5(%arg0: i32) -> (i32, i32, i32, i32) {
    %c0_i32 = arith.constant 0 : i32
    %c0_i32_0 = arith.constant 0 : i32
    %c0_i32_1 = arith.constant 0 : i32
    %c0_i32_2 = arith.constant 0 : i32
    return %arg0, %c0_i32, %c0_i32_0, %c0_i32_1 : i32, i32, i32, i32
  }
}

</mosaic_0001>

<bundles_post_ra>
// kernel: tpu_custom_call.1
= control target key start
LH: loop header
LB: loop body
LE: loop exit
PB: predicated region body
PF: predicated region fallthrough
CT: control target
= control target key end

     0   :  { %10 = vsyncpa [#allocation4], 0  ;;  %s9119_s0 = inlined_call_operand.vmem [shape: f32[2,18,18,4], index: 0, kind: input, shape index: {}]   ;;  %s9120_s1 = inlined_call_operand.vmem [shape: f32[9,4,32], index: 1, kind: input, shape index: {}]   ;;  %s9121_s2 = inlined_call_operand.vmem [shape: f32[1,32], index: 2, kind: input, shape index: {}]   ;;  %s9122_s3 = inlined_call_operand.vmem [shape: f32[9,32,32], index: 3, kind: input, shape index: {}]   ;;  %s9123_s4 = inlined_call_operand.vmem [shape: f32[1,32], index: 4, kind: input, shape index: {}]   ;;  %s9124_s5 = inlined_call_operand.hbm [shape: f32[2,16,16,32], index: 5, kind: output, shape index: {}]  }
   0x1   :  { %12 = vsyncpa [#allocation4 + $0x1], 0  ;;  %s6429_s18 = smov 0   ;;  %s6431_s19 = smov 0  }
   0x2   :  { %s6433_s20 = smov 0   ;;  %s6435_s21 = smov 0  }
   0x3 LB: > { %s6450_s22 = sadd.s32 4294967295, %s6394_s21   ;;  %s5454_s23 = sadd.s32 4294967294, %s6394_s21   ;;  %s6394_s21 = sphi %s6435_s21, %s9419_s21   ;;  %s6390_s20 = sphi %s6433_s20, %s9418_s20   ;;  %s6386_s19 = sphi %s6431_s19, %s9417_s19   ;;  %s6382_s18 = sphi %s6429_s18, %s9416_s18  }
   0x4   : > { %s6454_s24 = sadd.s32 1, %s6394_s21   ;;  %s135_s25 = sadd.s32 1, %s6390_s20 }
   0x5   : > { %s132_s26 = ssub.s32 %s6394_s21, %s6454_s24  ;;  %p145_p0 = scmp.ne.s32.totalorder %s6390_s20, %s6386_s19 }
   0x6   : > { %p133_p1 = scmp.eq.s32.totalorder %s132_s26, 0  ;;  %p146_p2 = scmp.eq.s32.totalorder %s6450_s22, 1 }
   0x7   : > { %p151_p3 = scmp.ne.s32.totalorder %s6386_s19, %s6382_s18  ;;  %p152_p4 = scmp.eq.s32.totalorder %s5454_s23, 1 }
   0x8   : > { %s6465_s27 = scalar_select %p133_p1, %s6390_s20, %s135_s25  }
   0x9   : > { %p6467_p5 = por %p146_p2, %p145_p0  ;;  %p6471_p6 = por %p152_p4, %p151_p3 }
   0xa   : > { %p5457_p7 = scmp.ge.s32.totalorder %s6394_s21, 1  ;;  %p190_p8 = scmp.lt.s32.totalorder %s6394_s21, 3 }
   0xc   : > { %p191_p9 = pnand %p5457_p7, %p190_p8 }
   0xe   : > { %194 = sbr.rel (%p191_p9) target bundleno = 1455 (0x5af), region = 40 }
  0x13   : > { %v5460_v0 = vld [vmem:[%s9120_s1 + $0x4] sm:$0xf]  ;;  %vm387_vm0 = vcmask 1043456   ;;  %v255_v1 = vld [vmem:[%s9120_s1] sm:$0xf]  ;;  %p218_p10 = scmp.lt.s32.totalorder %s6450_s22, 1 }
  0x14   : > { %5461 = vmatpush.msk.msra.mxu0 %vm387_vm0, %v5460_v0  ;;  %6283 = vmatpush.msk.msra.mxu2 %vm387_vm0, %v5460_v0  ;;  %v5527_v2 = vld [vmem:[%s9120_s1 + $0x8] sm:$0xf]  ;;  %v5593_v3 = vld [vmem:[%s9120_s1 + $0xc] sm:$0xf]  ;;  %v5659_v4 = vld [vmem:[%s9120_s1 + $0x10] sm:$0xf] }
  0x15   : > { %6284 = vmatpush.msk.msra.mxu3 %vm387_vm0, %v255_v1  ;;  %s219_s13 = scalar_select %p218_p10, %s6450_s22, 1  ;;  %5494 = vmatpush.msk.msra.mxu1 %vm387_vm0, %v255_v1  ;;  %vm290_vm1 = vcmask 31744   ;;  %v5791_v57 = vld [vmem:[%s9120_s1 + $0x18] sm:$0xf]  ;;  %v5857_v58 = vld [vmem:[%s9120_s1 + $0x1c] sm:$0xf] }
  0x16   : > { %5528 = vmatpush.msk.msrb.mxu2 %vm387_vm0, %v5527_v2  ;;  %5660 = vmatpush.msk.msrb.mxu0 %vm387_vm0, %v5659_v4  ;;  %v5725_v61 = vld [vmem:[%s9120_s1 + $0x14] sm:$0xf]  ;;  %v5923_v0 = vld [vmem:[%s9120_s1 + $0x20] sm:$0xf]  ;;  %vm2732_vm2 = vcmask 261120   ;;  %s215_s10 = sand.u32 1, %s6386_s19  }
  0x17   : > { %5594 = vmatpush.msk.msrb.mxu3 %vm387_vm0, %v5593_v3  ;;  %s6285_s16 = smul.u32 432, %s219_s13  ;;  %5726 = vmatpush.msk.msrb.mxu1 %vm387_vm0, %v5725_v61  ;;  %s5458_s13 = sshll.u32 %s215_s10, 8 }
  0x18   : > { %s8886_s14 = scalar_lea.vmem [#allocation3], %s5458_s13  ;;  %s6282_s15 = sshll.u32 %s6450_s22, 8 }
  0x19   : > { %s6504_s25 = scalar_lea.vmem %s9119_s0, %s6285_s16  ;;  %s5388_s23 = scalar_lea.hbm %s9124_s5, %s6282_s15 }
  0x1a   : > { %v256_v5 = vld [vmem:[%s6504_s25 + $0x1] sm:$0xff]  ;;  %v257_v9 = vld [vmem:[%s6504_s25 + $0x9] sm:$0xff]  ;;  %v6535_v13 = vld [vmem:[%s6504_s25 + $0x19] sm:$0xff]  ;;  %s5389_s26 = sshll.u32 %s8886_s14, 4  ;;  %s5391_s30 = sshll.u32 %s5388_s23, 4  ;;  %s5390_s26 = int_to_ptr.vmem [resolvable:$true] %s5389_s26  ;;  %s5392_s30 = int_to_ptr.hbm [resolvable:$true] %s5391_s30 }
  0x1b   : > { %v6508_v6 = vld [vmem:[%s6504_s25 + $0xc1] sm:$0xff]  ;;  %5462 = vmatmul.msk.f32.vlgmr.msra.gmra.mxu0 %vm290_vm1, %v256_v5  ;;  %v6522_v10 = vld [vmem:[%s6504_s25 + $0xc9] sm:$0xff]  ;;  %v6538_v14 = vld [vmem:[%s6504_s25 + $0xd9] sm:$0xff]  ;;  %s5377_s22 = scalar_lea.sflag [#allocation4], %s215_s10  ;;  %s6346_s6 = sshra.s32 %s5392_s30, 4  ;;  %s6347_s6 = int_to_ptr.hbm [resolvable:$true] %s6346_s6 }
  0x1c   : > { %v6511_v7 = vld [vmem:[%s6504_s25 + $0xc0] sm:$0xff]  ;;  %5478 = vmatmul.msk.f32.vlgmr.msra.gmra.mxu2 %vm290_vm1, %v6508_v6  ;;  %v6525_v11 = vld [vmem:[%s6504_s25 + $0xc8] sm:$0xff]  ;;  %v6541_v15 = vld [vmem:[%s6504_s25 + $0xd8] sm:$0xff]  ;;  %5924 = vmatpush.msk.msra.mxu0 %vm387_vm0, %v5923_v0  ;;  %s6352_s9 = scalar_lea.hbm %s9124_s5, 512  ;;  %p6353_p0 = scmp.lt.s32.totalorder %s6347_s6, %s9124_s5 }
  0x1d   : > { %5511 = vmatmul.msk.f32.vlgmr.msra.gmra.mxu3 %vm290_vm1, %v6511_v7  ;;  %v223_v8 = vld [vmem:[%s6504_s25] sm:$0xff]  ;;  %v224_v12 = vld [vmem:[%s6504_s25 + $0x8] sm:$0xff]  ;;  %v6544_v16 = vld [vmem:[%s6504_s25 + $0x18] sm:$0xff]  ;;  %5792 = vmatpush.msk.msra.mxu2 %vm387_vm0, %v5791_v57 }
  0x1e   : > { %5495 = vmatmul.msk.f32.vlgmr.msra.gmra.mxu1 %vm290_vm1, %v223_v8  ;;  %v6555_v17 = vld [vmem:[%s6504_s25 + $0x21] sm:$0xff]  ;;  %v6575_v21 = vld [vmem:[%s6504_s25 + $0x31] sm:$0xff]  ;;  %v6595_v25 = vld [vmem:[%s6504_s25 + $0x39] sm:$0xff]  ;;  %5858 = vmatpush.msk.msra.mxu3 %vm387_vm0, %v5857_v58 }
  0x1f   : > { %v6558_v18 = vld [vmem:[%s6504_s25 + $0xe1] sm:$0xff]  ;;  %v6578_v22 = vld [vmem:[%s6504_s25 + $0xf1] sm:$0xff]  ;;  %v6598_v26 = vld [vmem:[%s6504_s25 + $0xf9] sm:$0xff] }
  0x20   : > { %v6561_v19 = vld [vmem:[%s6504_s25 + $0xe0] sm:$0xff]  ;;  %v6581_v23 = vld [vmem:[%s6504_s25 + $0xf0] sm:$0xff]  ;;  %v6601_v27 = vld [vmem:[%s6504_s25 + $0xf8] sm:$0xff] }
  0x21   : > { %v6564_v20 = vld [vmem:[%s6504_s25 + $0x20] sm:$0xff]  ;;  %v6584_v24 = vld [vmem:[%s6504_s25 + $0x30] sm:$0xff]  ;;  %v6604_v28 = vld [vmem:[%s6504_s25 + $0x38] sm:$0xff] }
  0x22   : > { %v6615_v29 = vld [vmem:[%s6504_s25 + $0x49] sm:$0xff]  ;;  %v6635_v33 = vld [vmem:[%s6504_s25 + $0x51] sm:$0xff]  ;;  %v6655_v37 = vld [vmem:[%s6504_s25 + $0x61] sm:$0xff] }
  0x23   : > { %5463 = vmatmul.msk.f32.gmra.mxu0 %vm290_vm1, %v257_v9  ;;  %v6618_v30 = vld [vmem:[%s6504_s25 + $0x109] sm:$0xff]  ;;  %v6638_v34 = vld [vmem:[%s6504_s25 + $0x111] sm:$0xff]  ;;  %v6658_v38 = vld [vmem:[%s6504_s25 + $0x121] sm:$0xff] }
  0x24   : > { %5479 = vmatmul.msk.f32.gmra.mxu2 %vm290_vm1, %v6522_v10  ;;  %v6621_v31 = vld [vmem:[%s6504_s25 + $0x108] sm:$0xff]  ;;  %v6641_v35 = vld [vmem:[%s6504_s25 + $0x110] sm:$0xff]  ;;  %v6661_v39 = vld [vmem:[%s6504_s25 + $0x120] sm:$0xff] }
  0x25   : > { %5512 = vmatmul.msk.f32.gmra.mxu3 %vm290_vm1, %v6525_v11  ;;  %v6624_v32 = vld [vmem:[%s6504_s25 + $0x48] sm:$0xff]  ;;  %v6644_v36 = vld [vmem:[%s6504_s25 + $0x50] sm:$0xff]  ;;  %v6664_v40 = vld [vmem:[%s6504_s25 + $0x60] sm:$0xff] }
  0x26   : > { %5496 = vmatmul.msk.f32.gmra.mxu1 %vm290_vm1, %v224_v12  ;;  %v6675_v41 = vld [vmem:[%s6504_s25 + $0x69] sm:$0xff]  ;;  %v6695_v45 = vld [vmem:[%s6504_s25 + $0x79] sm:$0xff]  ;;  %v6715_v49 = vld [vmem:[%s6504_s25 + $0x81] sm:$0xff] }
  0x27   : > { %v6678_v42 = vld [vmem:[%s6504_s25 + $0x129] sm:$0xff]  ;;  %v6698_v46 = vld [vmem:[%s6504_s25 + $0x139] sm:$0xff]  ;;  %v6718_v50 = vld [vmem:[%s6504_s25 + $0x141] sm:$0xff] }
  0x28   : > { %v6681_v43 = vld [vmem:[%s6504_s25 + $0x128] sm:$0xff]  ;;  %v6701_v47 = vld [vmem:[%s6504_s25 + $0x138] sm:$0xff]  ;;  %v6721_v51 = vld [vmem:[%s6504_s25 + $0x140] sm:$0xff] }
  0x29   : > { %v6684_v44 = vld [vmem:[%s6504_s25 + $0x68] sm:$0xff]  ;;  %v6704_v48 = vld [vmem:[%s6504_s25 + $0x78] sm:$0xff]  ;;  %v6724_v52 = vld [vmem:[%s6504_s25 + $0x80] sm:$0xff] }
  0x2a   : > { %v6735_v53 = vld [vmem:[%s6504_s25 + $0x91] sm:$0xff]  ;;  %v6763_v59 = vld [vmem:[%s6504_s25 + $0x99] sm:$0xff]  ;;  %v6791_v1 = vld [vmem:[%s6504_s25 + $0xa9] sm:$0xff] }
  0x2b   : > { %5464 = vmatmul.msk.f32.gmra.mxu0 %vm290_vm1, %v6535_v13  ;;  %v6738_v54 = vld [vmem:[%s6504_s25 + $0x151] sm:$0xff]  ;;  %v6766_v60 = vld [vmem:[%s6504_s25 + $0x159] sm:$0xff]  ;;  %v6794_v2 = vld [vmem:[%s6504_s25 + $0x169] sm:$0xff] }
  0x2c   : > { %5480 = vmatmul.msk.f32.gmra.mxu2 %vm290_vm1, %v6538_v14  ;;  %v6741_v55 = vld [vmem:[%s6504_s25 + $0x150] sm:$0xff]  ;;  %9195 = vst [vmem:[#allocation7_spill] sm:$0xff] %v6766_v60  ;;  %v6772_v62 = vld [vmem:[%s6504_s25 + $0x158] sm:$0xff]  ;;  %v6797_v3 = vld [vmem:[%s6504_s25 + $0x168] sm:$0xff] }
  0x2d   : > { %5513 = vmatmul.msk.f32.gmra.mxu3 %vm290_vm1, %v6541_v15  ;;  %9194 = vst [vmem:[#allocation6_spill] sm:$0xff] %v6741_v55  ;;  %v6744_v56 = vld [vmem:[%s6504_s25 + $0x90] sm:$0xff]  ;;  %v6776_v63 = vld [vmem:[%s6504_s25 + $0x98] sm:$0xff]  ;;  %v6800_v4 = vld [vmem:[%s6504_s25 + $0xa8] sm:$0xff] }
  0x2e   : > { %5497 = vmatmul.msk.f32.gmra.mxu1 %vm290_vm1, %v6544_v16  ;;  %9196 = vst [vmem:[#allocation8_spill] sm:$0xff] %v6772_v62  ;;  %v6811_v5 = vld [vmem:[%s6504_s25 + $0xb1] sm:$0xff]  ;;  %v716_v58 = vld [vmem:[%s6504_s25 + $0x2] sm:$0xff]  ;;  %v5693_v0 = vld [vmem:[%s6504_s25 + $0x1a] sm:$0xff] }
  0x2f   : > { %9197 = vst [vmem:[#allocation9_spill] sm:$0xff] %v6794_v2  ;;  %v6814_v8 = vld [vmem:[%s6504_s25 + $0x171] sm:$0xff] }
  0x30   : > { %9198 = vst [vmem:[#allocation10_spill] sm:$0xff] %v6797_v3  ;;  %v6817_v9 = vld [vmem:[%s6504_s25 + $0x170] sm:$0xff] }
  0x31   : > { %9199 = vst [vmem:[#allocation11_spill] sm:$0xff] %v6814_v8  ;;  %v6820_v12 = vld [vmem:[%s6504_s25 + $0xb0] sm:$0xff] }
  0x32   : > { %9200 = vst [vmem:[#allocation12_spill] sm:$0xff] %v6817_v9 }
  0x33   : > { %5465 = vmatmul.msk.f32.gmra.mxu0 %vm290_vm1, %v6555_v17 }
  0x34   : > { %5481 = vmatmul.msk.f32.gmra.mxu2 %vm290_vm1, %v6558_v18 }
  0x35   : > { %5514 = vmatmul.msk.f32.gmra.mxu3 %vm290_vm1, %v6561_v19 }
  0x36   : > { %5498 = vmatmul.msk.f32.gmra.mxu1 %vm290_vm1, %v6564_v20 }
  0x3b   : > { %5466 = vmatmul.msk.f32.gmra.mxu0 %vm290_vm1, %v6575_v21 }
  0x3c   : > { %5482 = vmatmul.msk.f32.gmra.mxu2 %vm290_vm1, %v6578_v22 }
  0x3d   : > { %5515 = vmatmul.msk.f32.gmra.mxu3 %vm290_vm1, %v6581_v23 }
  0x3e   : > { %5499 = vmatmul.msk.f32.gmra.mxu1 %vm290_vm1, %v6584_v24 }
  0x43   : > { %5467 = vmatmul.msk.f32.gmra.mxu0 %vm290_vm1, %v6595_v25 }
  0x44   : > { %5483 = vmatmul.msk.f32.gmra.mxu2 %vm290_vm1, %v6598_v26 }
  0x45   : > { %5516 = vmatmul.msk.f32.gmra.mxu3 %vm290_vm1, %v6601_v27 }
  0x46   : > { %5500 = vmatmul.msk.f32.gmra.mxu1 %vm290_vm1, %v6604_v28 }
  0x4b   : > { %5468 = vmatmul.msk.f32.gmra.mxu0 %vm290_vm1, %v6615_v29 }
  0x4c   : > { %5484 = vmatmul.msk.f32.gmra.mxu2 %vm290_vm1, %v6618_v30 }
  0x4d   : > { %5517 = vmatmul.msk.f32.gmra.mxu3 %vm290_vm1, %v6621_v31 }
  0x4e   : > { %5501 = vmatmul.msk.f32.gmra.mxu1 %vm290_vm1, %v6624_v32 }
  0x53   : > { %5469 = vmatmul.msk.f32.gmra.mxu0 %vm290_vm1, %v6635_v33 }
  0x54   : > { %5485 = vmatmul.msk.f32.gmra.mxu2 %vm290_vm1, %v6638_v34 }
  0x55   : > { %5518 = vmatmul.msk.f32.gmra.mxu3 %vm290_vm1, %v6641_v35 }
  0x56   : > { %5502 = vmatmul.msk.f32.gmra.mxu1 %vm290_vm1, %v6644_v36 }
  0x5b   : > { %5470 = vmatmul.msk.f32.gmra.mxu0 %vm290_vm1, %v6655_v37 }
  0x5c   : > { %5486 = vmatmul.msk.f32.gmra.mxu2 %vm290_vm1, %v6658_v38 }
  0x5d   : > { %5519 = vmatmul.msk.f32.gmra.mxu3 %vm290_vm1, %v6661_v39 }
  0x5e   : > { %5503 = vmatmul.msk.f32.gmra.mxu1 %vm290_vm1, %v6664_v40 }
  0x63   : > { %5471 = vmatmul.msk.f32.gmra.mxu0 %vm290_vm1, %v6675_v41 }
  0x64   : > { %5487 = vmatmul.msk.f32.gmra.mxu2 %vm290_vm1, %v6678_v42 }
  0x65   : > { %5520 = vmatmul.msk.f32.gmra.mxu3 %vm290_vm1, %v6681_v43 }
  0x66   : > { %5504 = vmatmul.msk.f32.gmra.mxu1 %vm290_vm1, %v6684_v44 }
  0x6b   : > { %5472 = vmatmul.msk.f32.gmra.mxu0 %vm290_vm1, %v6695_v45 }
  0x6c   : > { %5488 = vmatmul.msk.f32.gmra.mxu2 %vm290_vm1, %v6698_v46 }
  0x6d   : > { %5521 = vmatmul.msk.f32.gmra.mxu3 %vm290_vm1, %v6701_v47 }
  0x6e   : > { %5505 = vmatmul.msk.f32.gmra.mxu1 %vm290_vm1, %v6704_v48 }
  0x73   : > { %5473 = vmatmul.msk.f32.gmra.mxu0 %vm290_vm1, %v6715_v49 }
  0x74   : > { %5489 = vmatmul.msk.f32.gmra.mxu2 %vm290_vm1, %v6718_v50 }
  0x75   : > { %5522 = vmatmul.msk.f32.gmra.mxu3 %vm290_vm1, %v6721_v51 }
  0x76   : > { %5506 = vmatmul.msk.f32.gmra.mxu1 %vm290_vm1, %v6724_v52 }
  0x7b   : > { %5474 = vmatmul.msk.f32.gmra.mxu0 %vm290_vm1, %v6735_v53 }
  0x7c   : > { %5490 = vmatmul.msk.f32.gmra.mxu2 %vm290_vm1, %v6738_v54 }
  0x7d   : > { %5523 = vmatmul.msk.f32.gmra.mxu3 %vm290_vm1, %v6741_v55  ;;  %v5694_v55 = vld [vmem:[%s6504_s25 + $0x22] sm:$0xff] }
  0x7e   : > { %5507 = vmatmul.msk.f32.gmra.mxu1 %vm290_vm1, %v6744_v56 }
  0x83   : > { %5475 = vmatmul.msk.f32.gmra.mxu0 %vm290_vm1, %v6763_v59 }
  0x84   : > { %5491 = vmatmul.msk.f32.gmra.mxu2 %vm290_vm1, %v6766_v60 }
  0x85   : > { %5524 = vmatmul.msk.f32.gmra.mxu3 %vm290_vm1, %v6772_v62  ;;  %v717_v62 = vld [vmem:[%s6504_s25 + $0xa] sm:$0xff] }
  0x86   : > { %5508 = vmatmul.msk.f32.gmra.mxu1 %vm290_vm1, %v6776_v63 }
  0x8b   : > { %5476 = vmatmul.msk.f32.gmra.mxu0 %vm290_vm1, %v6791_v1 }
  0x8c   : > { %5492 = vmatmul.msk.f32.gmra.mxu2 %vm290_vm1, %v6794_v2 }
  0x8d   : > { %5525 = vmatmul.msk.f32.gmra.mxu3 %vm290_vm1, %v6797_v3 }
  0x8e   : > { %5509 = vmatmul.msk.f32.gmra.mxu1 %vm290_vm1, %v6800_v4 }
  0x93   : > { %5477 = vmatmul.msk.f32.gmra.mxu0 %vm290_vm1, %v6811_v5 }
  0x94   : > { %5493 = vmatmul.msk.f32.gmra.mxu2 %vm290_vm1, %v6814_v8 }
  0x95   : > { %5526 = vmatmul.msk.f32.gmra.mxu3 %vm290_vm1, %v6817_v9 }
  0x96   : > { %5510 = vmatmul.msk.f32.gmra.mxu1 %vm290_vm1, %v6820_v12 }
  0x98   : > { %v6830_v57 = vpop.f32.mrf.mxu0 }
  0x9b   : > { %v6833_v61 = vpop.f32.mrf.mxu1  ;;  %5661 = vmatmul.msk.f32.vlgmr.msrb.gmra.mxu0 %vm290_vm1, %v6535_v13 }
  0x9c   : > { %5529 = vmatmul.msk.f32.vlgmr.msrb.gmra.mxu2 %vm290_vm1, %v716_v58 }
  0x9d   : > { %5595 = vmatmul.msk.f32.vlgmr.msrb.gmra.mxu3 %vm290_vm1, %v6544_v16 }
  0x9e   : > { %5727 = vmatmul.msk.f32.vlgmr.msrb.gmra.mxu1 %vm290_vm1, %v5693_v0 }
  0x9f   : > { %v456_v9 = vpop.f32.mrf.mxu2 }
  0xa0   : > { %v668_v8 = vpop.f32.mrf.mxu3  ;;  %v6844_v2 = vpop.f32.mrf.mxu0 }
  0xa1   : > { %v6842_v3 = vadd.f32 %v668_v8, %v456_v9 }
  0xa3   : > { %9201 = vst [vmem:[#allocation13_spill] sm:$0xff] %v6842_v3  ;;  %v6847_v60 = vpop.f32.mrf.mxu1  ;;  %5662 = vmatmul.msk.f32.gmra.mxu0 %vm290_vm1, %v6555_v17  ;;  %v6863_v3 = vld [vmem:[%s6504_s25 + $0x32] sm:$0xff] }
  0xa4   : > { %5530 = vmatmul.msk.f32.gmra.mxu2 %vm290_vm1, %v717_v62  ;;  %9203 = vst [vmem:[#allocation15_spill] sm:$0xff] %v6863_v3 }
  0xa5   : > { %5596 = vmatmul.msk.f32.gmra.mxu3 %vm290_vm1, %v6564_v20 }
  0xa6   : > { %5728 = vmatmul.msk.f32.gmra.mxu1 %vm290_vm1, %v5694_v55 }
  0xa7   : > { %v459_v13 = vpop.f32.mrf.mxu2 }
  0xa8   : > { %v671_v16 = vpop.f32.mrf.mxu3  ;;  %v6858_v9 = vpop.f32.mrf.mxu0 }
  0xa9   : > { %v6856_v8 = vadd.f32 %v671_v16, %v459_v13 }
  0xab   : > { %9202 = vst [vmem:[#allocation14_spill] sm:$0xff] %v6856_v8  ;;  %v6860_v58 = vpop.f32.mrf.mxu1  ;;  %5663 = vmatmul.msk.f32.gmra.mxu0 %vm290_vm1, %v6575_v21  ;;  %v6879_v8 = vld [vmem:[%s6504_s25 + $0x3a] sm:$0xff] }
  0xac   : > { %5531 = vmatmul.msk.f32.gmra.mxu2 %vm290_vm1, %v5693_v0  ;;  %9205 = vst [vmem:[#allocation17_spill] sm:$0xff] %v6879_v8 }
  0xad   : > { %5597 = vmatmul.msk.f32.gmra.mxu3 %vm290_vm1, %v6584_v24 }
  0xae   : > { %5729 = vmatmul.msk.f32.gmra.mxu1 %vm290_vm1, %v6863_v3 }
  0xaf   : > { %v462_v17 = vpop.f32.mrf.mxu2 }
  0xb0   : > { %v674_v20 = vpop.f32.mrf.mxu3  ;;  %v6874_v13 = vpop.f32.mrf.mxu0 }
  0xb1   : > { %v6872_v62 = vadd.f32 %v674_v20, %v462_v17 }
  0xb3   : > { %9204 = vst [vmem:[#allocation16_spill] sm:$0xff] %v6872_v62  ;;  %v6876_v16 = vpop.f32.mrf.mxu1  ;;  %5664 = vmatmul.msk.f32.gmra.mxu0 %vm290_vm1, %v6595_v25  ;;  %v6895_v62 = vld [vmem:[%s6504_s25 + $0x4a] sm:$0xff] }
  0xb4   : > { %5532 = vmatmul.msk.f32.gmra.mxu2 %vm290_vm1, %v5694_v55  ;;  %9207 = vst [vmem:[#allocation19_spill] sm:$0xff] %v6895_v62 }
  0xb5   : > { %5598 = vmatmul.msk.f32.gmra.mxu3 %vm290_vm1, %v6604_v28 }
  0xb6   : > { %5730 = vmatmul.msk.f32.gmra.mxu1 %vm290_vm1, %v6879_v8 }
  0xb7   : > { %v465_v21 = vpop.f32.mrf.mxu2 }
  0xb8   : > { %v677_v24 = vpop.f32.mrf.mxu3  ;;  %v6890_v17 = vpop.f32.mrf.mxu0 }
  0xb9   : > { %v6888_v0 = vadd.f32 %v677_v24, %v465_v21 }
  0xbb   : > { %9206 = vst [vmem:[#allocation18_spill] sm:$0xff] %v6888_v0  ;;  %v6892_v20 = vpop.f32.mrf.mxu1  ;;  %5665 = vmatmul.msk.f32.gmra.mxu0 %vm290_vm1, %v6615_v29  ;;  %v6912_v0 = vld [vmem:[%s6504_s25 + $0x52] sm:$0xff] }
  0xbc   : > { %5533 = vmatmul.msk.f32.gmra.mxu2 %vm290_vm1, %v6863_v3  ;;  %9209 = vst [vmem:[#allocation21_spill] sm:$0xff] %v6912_v0  ;;  %v6929_v3 = vld [vmem:[%s6504_s25 + $0x62] sm:$0xff] }
  0xbd   : > { %5599 = vmatmul.msk.f32.gmra.mxu3 %vm290_vm1, %v6624_v32  ;;  %9211 = vst [vmem:[#allocation23_spill] sm:$0xff] %v6929_v3 }
  0xbe   : > { %5731 = vmatmul.msk.f32.gmra.mxu1 %vm290_vm1, %v6895_v62 }
  0xbf   : > { %v468_v25 = vpop.f32.mrf.mxu2 }
  0xc0   : > { %v680_v28 = vpop.f32.mrf.mxu3  ;;  %v6907_v21 = vpop.f32.mrf.mxu0 }
  0xc1   : > { %v6905_v55 = vadd.f32 %v680_v28, %v468_v25 }
  0xc3   : > { %9208 = vst [vmem:[#allocation20_spill] sm:$0xff] %v6905_v55  ;;  %v6909_v24 = vpop.f32.mrf.mxu1  ;;  %5666 = vmatmul.msk.f32.gmra.mxu0 %vm290_vm1, %v6635_v33 }
  0xc4   : > { %5534 = vmatmul.msk.f32.gmra.mxu2 %vm290_vm1, %v6879_v8  ;;  %v6946_v8 = vld [vmem:[%s6504_s25 + $0x6a] sm:$0xff] }
  0xc5   : > { %5600 = vmatmul.msk.f32.gmra.mxu3 %vm290_vm1, %v6644_v36  ;;  %9213 = vst [vmem:[#allocation25_spill] sm:$0xff] %v6946_v8 }
  0xc6   : > { %5732 = vmatmul.msk.f32.gmra.mxu1 %vm290_vm1, %v6912_v0 }
  0xc7   : > { %v471_v29 = vpop.f32.mrf.mxu2 }
  0xc8   : > { %v683_v32 = vpop.f32.mrf.mxu3  ;;  %v6924_v28 = vpop.f32.mrf.mxu0 }
  0xc9   : > { %v6922_v25 = vadd.f32 %v683_v32, %v471_v29 }
  0xcb   : > { %9210 = vst [vmem:[#allocation22_spill] sm:$0xff] %v6922_v25  ;;  %v6926_v55 = vpop.f32.mrf.mxu1  ;;  %5667 = vmatmul.msk.f32.gmra.mxu0 %vm290_vm1, %v6655_v37 }
  0xcc   : > { %5535 = vmatmul.msk.f32.gmra.mxu2 %vm290_vm1, %v6895_v62  ;;  %v6963_v62 = vld [vmem:[%s6504_s25 + $0x7a] sm:$0xff] }
  0xcd   : > { %5601 = vmatmul.msk.f32.gmra.mxu3 %vm290_vm1, %v6664_v40  ;;  %9215 = vst [vmem:[#allocation27_spill] sm:$0xff] %v6963_v62 }
  0xce   : > { %5733 = vmatmul.msk.f32.gmra.mxu1 %vm290_vm1, %v6929_v3 }
  0xcf   : > { %v474_v33 = vpop.f32.mrf.mxu2 }
  0xd0   : > { %v686_v36 = vpop.f32.mrf.mxu3  ;;  %v6941_v32 = vpop.f32.mrf.mxu0 }
  0xd1   : > { %v6939_v29 = vadd.f32 %v686_v36, %v474_v33 }
  0xd3   : > { %9212 = vst [vmem:[#allocation24_spill] sm:$0xff] %v6939_v29  ;;  %v6943_v25 = vpop.f32.mrf.mxu1  ;;  %5668 = vmatmul.msk.f32.gmra.mxu0 %vm290_vm1, %v6675_v41 }
  0xd4   : > { %5536 = vmatmul.msk.f32.gmra.mxu2 %vm290_vm1, %v6912_v0  ;;  %v6980_v0 = vld [vmem:[%s6504_s25 + $0x82] sm:$0xff] }
  0xd5   : > { %5602 = vmatmul.msk.f32.gmra.mxu3 %vm290_vm1, %v6684_v44  ;;  %9217 = vst [vmem:[#allocation29_spill] sm:$0xff] %v6980_v0 }
  0xd6   : > { %5734 = vmatmul.msk.f32.gmra.mxu1 %vm290_vm1, %v6946_v8 }
  0xd7   : > { %v477_v37 = vpop.f32.mrf.mxu2 }
  0xd8   : > { %v689_v40 = vpop.f32.mrf.mxu3  ;;  %v6958_v36 = vpop.f32.mrf.mxu0 }
  0xd9   : > { %v6956_v33 = vadd.f32 %v689_v40, %v477_v37 }
  0xdb   : > { %9214 = vst [vmem:[#allocation26_spill] sm:$0xff] %v6956_v33  ;;  %v6960_v29 = vpop.f32.mrf.mxu1  ;;  %5669 = vmatmul.msk.f32.gmra.mxu0 %vm290_vm1, %v6695_v45 }
  0xdc   : > { %5537 = vmatmul.msk.f32.gmra.mxu2 %vm290_vm1, %v6929_v3  ;;  %v6997_v3 = vld [vmem:[%s6504_s25 + $0x92] sm:$0xff] }
  0xdd   : > { %5603 = vmatmul.msk.f32.gmra.mxu3 %vm290_vm1, %v6704_v48  ;;  %9219 = vst [vmem:[#allocation31_spill] sm:$0xff] %v6997_v3 }
  0xde   : > { %5735 = vmatmul.msk.f32.gmra.mxu1 %vm290_vm1, %v6963_v62 }
  0xdf   : > { %v480_v41 = vpop.f32.mrf.mxu2 }
  0xe0   : > { %v692_v44 = vpop.f32.mrf.mxu3  ;;  %v6975_v40 = vpop.f32.mrf.mxu0 }
  0xe1   : > { %v6973_v37 = vadd.f32 %v692_v44, %v480_v41 }
  0xe3   : > { %9216 = vst [vmem:[#allocation28_spill] sm:$0xff] %v6973_v37  ;;  %v6977_v33 = vpop.f32.mrf.mxu1  ;;  %5670 = vmatmul.msk.f32.gmra.mxu0 %vm290_vm1, %v6715_v49 }
  0xe4   : > { %5538 = vmatmul.msk.f32.gmra.mxu2 %vm290_vm1, %v6946_v8  ;;  %v7014_v8 = vld [vmem:[%s6504_s25 + $0x9a] sm:$0xff] }
  0xe5   : > { %5604 = vmatmul.msk.f32.gmra.mxu3 %vm290_vm1, %v6724_v52  ;;  %9221 = vst [vmem:[#allocation33_spill] sm:$0xff] %v7014_v8 }
  0xe6   : > { %5736 = vmatmul.msk.f32.gmra.mxu1 %vm290_vm1, %v6980_v0 }
  0xe7   : > { %v483_v45 = vpop.f32.mrf.mxu2 }
  0xe8   : > { %v695_v48 = vpop.f32.mrf.mxu3  ;;  %v6992_v44 = vpop.f32.mrf.mxu0 }
  0xe9   : > { %v6990_v41 = vadd.f32 %v695_v48, %v483_v45 }
  0xeb   : > { %9218 = vst [vmem:[#allocation30_spill] sm:$0xff] %v6990_v41  ;;  %v6994_v37 = vpop.f32.mrf.mxu1  ;;  %5671 = vmatmul.msk.f32.gmra.mxu0 %vm290_vm1, %v6735_v53 }
  0xec   : > { %5539 = vmatmul.msk.f32.gmra.mxu2 %vm290_vm1, %v6963_v62  ;;  %v7031_v62 = vld [vmem:[%s6504_s25 + $0xaa] sm:$0xff] }
  0xed   : > { %5605 = vmatmul.msk.f32.gmra.mxu3 %vm290_vm1, %v6744_v56  ;;  %9223 = vst [vmem:[#allocation35_spill] sm:$0xff] %v7031_v62 }
  0xee   : > { %5737 = vmatmul.msk.f32.gmra.mxu1 %vm290_vm1, %v6997_v3 }
  0xef   : > { %v486_v49 = vpop.f32.mrf.mxu2 }
  0xf0   : > { %v698_v52 = vpop.f32.mrf.mxu3  ;;  %v7009_v48 = vpop.f32.mrf.mxu0 }
  0xf1   : > { %v7007_v45 = vadd.f32 %v698_v52, %v486_v49 }
  0xf3   : > { %9220 = vst [vmem:[#allocation32_spill] sm:$0xff] %v7007_v45  ;;  %v7011_v41 = vpop.f32.mrf.mxu1  ;;  %5672 = vmatmul.msk.f32.gmra.mxu0 %vm290_vm1, %v6763_v59 }
  0xf4   : > { %5540 = vmatmul.msk.f32.gmra.mxu2 %vm290_vm1, %v6980_v0  ;;  %v7068_v0 = vld [vmem:[%s6504_s25 + $0xc2] sm:$0xff] }
  0xf5   : > { %5606 = vmatmul.msk.f32.gmra.mxu3 %vm290_vm1, %v6776_v63  ;;  %9227 = vst [vmem:[#allocation39_spill] sm:$0xff] %v7068_v0 }
  0xf6   : > { %5738 = vmatmul.msk.f32.gmra.mxu1 %vm290_vm1, %v7014_v8 }
  0xf7   : > { %v489_v53 = vpop.f32.mrf.mxu2 }
  0xf8   : > { %v701_v56 = vpop.f32.mrf.mxu3  ;;  %v7026_v52 = vpop.f32.mrf.mxu0 }
  0xf9   : > { %v7024_v49 = vadd.f32 %v701_v56, %v489_v53 }
  0xfb   : > { %9222 = vst [vmem:[#allocation34_spill] sm:$0xff] %v7024_v49  ;;  %v7028_v45 = vpop.f32.mrf.mxu1  ;;  %5673 = vmatmul.msk.f32.gmra.mxu0 %vm290_vm1, %v6791_v1  ;;  %v5960_v49 = vld [vmem:[%s9122_s3 + $0x38] sm:$0xff] }
  0xfc   : > { %5541 = vmatmul.msk.f32.gmra.mxu2 %vm290_vm1, %v6997_v3  ;;  %v7051_v1 = vld [vmem:[%s6504_s25 + $0xb2] sm:$0xff]  ;;  %3019 = vmatpush.msra.mxu1 %v5960_v49 }
  0xfd   : > { %5607 = vmatmul.msk.f32.gmra.mxu3 %vm290_vm1, %v6800_v4  ;;  %9225 = vst [vmem:[#allocation37_spill] sm:$0xff] %v7051_v1 }
  0xfe   : > { %5739 = vmatmul.msk.f32.gmra.mxu1 %vm290_vm1, %v7031_v62 }
  0xff   : > { %v492_v59 = vpop.f32.mrf.mxu2 }
 0x100   : > { %v704_v63 = vpop.f32.mrf.mxu3  ;;  %v7043_v56 = vpop.f32.mrf.mxu0 }
 0x101   : > { %v7041_v53 = vadd.f32 %v704_v63, %v492_v59 }
 0x103   : > { %9224 = vst [vmem:[#allocation36_spill] sm:$0xff] %v7041_v53  ;;  %v7048_v3 = vpop.f32.mrf.mxu1  ;;  %5674 = vmatmul.msk.f32.gmra.mxu0 %vm290_vm1, %v6811_v5 }
 0x104   : > { %5542 = vmatmul.msk.f32.gmra.mxu2 %vm290_vm1, %v7014_v8  ;;  %v7085_v8 = vld [vmem:[%s6504_s25 + $0xca] sm:$0xff] }
 0x105   : > { %5608 = vmatmul.msk.f32.gmra.mxu3 %vm290_vm1, %v6820_v12  ;;  %9230 = vst [vmem:[#allocation42_spill] sm:$0xff] %v7085_v8 }
 0x106   : > { %5740 = vmatmul.msk.f32.gmra.mxu1 %vm290_vm1, %v7051_v1 }
 0x107   : > { %v495_v4 = vpop.f32.mrf.mxu2 }
 0x108   : > { %v707_v59 = vpop.f32.mrf.mxu3  ;;  %v7063_v53 = vpop.f32.mrf.mxu0 }
 0x109   : > { %v7061_v63 = vadd.f32 %v707_v59, %v495_v4 }
 0x10b   : > { %9226 = vst [vmem:[#allocation38_spill] sm:$0xff] %v7061_v63  ;;  %v7065_v49 = vpop.f32.mrf.mxu1  ;;  %5675 = vmatmul.msk.f32.gmra.mxu0 %vm290_vm1, %v6508_v6 }
 0x10c   : > { %5543 = vmatmul.msk.f32.gmra.mxu2 %vm290_vm1, %v7031_v62  ;;  %v7098_v62 = vld [vmem:[%s6504_s25 + $0xda] sm:$0xff] }
 0x10d   : > { %5609 = vmatmul.msk.f32.gmra.mxu3 %vm290_vm1, %v6511_v7 }
 0x10e   : > { %5741 = vmatmul.msk.f32.gmra.mxu1 %vm290_vm1, %v7068_v0 }
 0x10f   : > { %v498_v5 = vpop.f32.mrf.mxu2 }
 0x110   : > { %v710_v12 = vpop.f32.mrf.mxu3  ;;  %v7080_v59 = vpop.f32.mrf.mxu0 }
 0x111   : > { %v7078_v4 = vadd.f32 %v710_v12, %v498_v5 }
 0x113   : > { %9228 = vst [vmem:[#allocation40_spill] sm:$0xff] %v7078_v4  ;;  %v7082_v63 = vpop.f32.mrf.mxu1  ;;  %5676 = vmatmul.msk.f32.gmra.mxu0 %vm290_vm1, %v6522_v10  ;;  %v621_v10 = vadd.f32 %v6833_v61, %v6830_v57 }
 0x114   : > { %9229 = vst [vmem:[#allocation41_spill] sm:$0xff] %v7082_v63  ;;  %5544 = vmatmul.msk.f32.gmra.mxu2 %vm290_vm1, %v7051_v1 }
 0x115   : > { %5610 = vmatmul.msk.f32.gmra.mxu3 %vm290_vm1, %v6525_v11 }
 0x116   : > { %5742 = vmatmul.msk.f32.gmra.mxu1 %vm290_vm1, %v7085_v8 }
 0x117   : > { %v501_v6 = vpop.f32.mrf.mxu2 }
 0x118   : > { %v713_v7 = vpop.f32.mrf.mxu3  ;;  %v1423_v12 = vpop.f32.mrf.mxu0 }
 0x119   : > { %v7095_v5 = vadd.f32 %v713_v7, %v501_v6 }
 0x11b   : > { %9231 = vst [vmem:[#allocation43_spill] sm:$0xff] %v7095_v5  ;;  %v1701_v4 = vpop.f32.mrf.mxu1  ;;  %5677 = vmatmul.msk.f32.gmra.mxu0 %vm290_vm1, %v6538_v14 }
 0x11c   : > { %5545 = vmatmul.msk.f32.gmra.mxu2 %vm290_vm1, %v7068_v0  ;;  %v7111_v0 = vld [vmem:[%s6504_s25 + $0xe2] sm:$0xff] }
 0x11d   : > { %5611 = vmatmul.msk.f32.gmra.mxu3 %vm290_vm1, %v6541_v15  ;;  %v624_v15 = vadd.f32 %v6847_v60, %v6844_v2  ;;  %v627_v60 = vadd.f32 %v6860_v58, %v6858_v9  ;;  %v630_v9 = vadd.f32 %v6876_v16, %v6874_v13 }
 0x11e   : > { %5743 = vmatmul.msk.f32.gmra.mxu1 %vm290_vm1, %v7098_v62 }
 0x11f   : > { %v866_v11 = vpop.f32.mrf.mxu2 }
 0x120   : > { %v962_v6 = vadd.f32 %v866_v11, %v621_v10  ;;  %v1145_v7 = vpop.f32.mrf.mxu3  ;;  %v1426_v5 = vpop.f32.mrf.mxu0 }
 0x122   : > { %v1241_v1 = vadd.f32 %v1145_v7, %v962_v6 }
 0x123   : > { %v1704_v63 = vpop.f32.mrf.mxu1  ;;  %5678 = vmatmul.msk.f32.gmra.mxu0 %vm290_vm1, %v6558_v18  ;;  %v7126_v18 = vld [vmem:[%s6504_s25 + $0xf2] sm:$0xff] }
 0x124   : > { %5546 = vmatmul.msk.f32.gmra.mxu2 %vm290_vm1, %v7085_v8  ;;  %v1519_v14 = vadd.f32 %v1423_v12, %v1241_v1 }
 0x125   : > { %5612 = vmatmul.msk.f32.gmra.mxu3 %vm290_vm1, %v6561_v19 }
 0x126   : > { %v7121_v57 = vadd.f32 %v1701_v4, %v1519_v14  ;;  %5744 = vmatmul.msk.f32.gmra.mxu1 %vm290_vm1, %v7111_v0 }
 0x127   : > { %v869_v61 = vpop.f32.mrf.mxu2 }
 0x128   : > { %v963_v10 = vadd.f32 %v869_v61, %v624_v15  ;;  %v1148_v11 = vpop.f32.mrf.mxu3  ;;  %v1429_v6 = vpop.f32.mrf.mxu0 }
 0x12a   : > { %v1242_v7 = vadd.f32 %v1148_v11, %v963_v10 }
 0x12b   : > { %v1707_v8 = vpop.f32.mrf.mxu1  ;;  %5679 = vmatmul.msk.f32.gmra.mxu0 %vm290_vm1, %v6578_v22  ;;  %v5712_v22 = vld [vmem:[%s6504_s25 + $0xfa] sm:$0xff] }
 0x12c   : > { %5547 = vmatmul.msk.f32.gmra.mxu2 %vm290_vm1, %v7098_v62  ;;  %v1520_v19 = vadd.f32 %v1426_v5, %v1242_v7 }
 0x12d   : > { %5613 = vmatmul.msk.f32.gmra.mxu3 %vm290_vm1, %v6581_v23 }
 0x12e   : > { %v7136_v2 = vadd.f32 %v1704_v63, %v1520_v19  ;;  %5745 = vmatmul.msk.f32.gmra.mxu1 %vm290_vm1, %v7126_v18  ;;  %v5713_v19 = vld [vmem:[%s6504_s25 + $0x10a] sm:$0xff] }
 0x12f   : > { %v872_v1 = vpop.f32.mrf.mxu2 }
 0x130   : > { %v964_v4 = vadd.f32 %v872_v1, %v627_v60  ;;  %v1151_v12 = vpop.f32.mrf.mxu3  ;;  %v1432_v14 = vpop.f32.mrf.mxu0 }
 0x132   : > { %v1243_v15 = vadd.f32 %v1151_v12, %v964_v4  ;;  %v5714_v12 = vld [vmem:[%s6504_s25 + $0x112] sm:$0xff] }
 0x133   : > { %v1710_v61 = vpop.f32.mrf.mxu1  ;;  %5680 = vmatmul.msk.f32.gmra.mxu0 %vm290_vm1, %v6598_v26 }
 0x134   : > { %5548 = vmatmul.msk.f32.gmra.mxu2 %vm290_vm1, %v7111_v0  ;;  %v1521_v23 = vadd.f32 %v1429_v6, %v1243_v15 }
 0x135   : > { %5614 = vmatmul.msk.f32.gmra.mxu3 %vm290_vm1, %v6601_v27 }
 0x136   : > { %v7149_v58 = vadd.f32 %v1707_v8, %v1521_v23  ;;  %5746 = vmatmul.msk.f32.gmra.mxu1 %vm290_vm1, %v5712_v22  ;;  %v633_v8 = vadd.f32 %v6892_v20, %v6890_v17  ;;  %v636_v17 = vadd.f32 %v6909_v24, %v6907_v21 }
 0x137   : > { %v875_v63 = vpop.f32.mrf.mxu2 }
 0x138   : > { %v965_v5 = vadd.f32 %v875_v63, %v630_v9  ;;  %v1154_v10 = vpop.f32.mrf.mxu3  ;;  %v1435_v11 = vpop.f32.mrf.mxu0  ;;  %v5715_v63 = vld [vmem:[%s6504_s25 + $0x122] sm:$0xff] }
 0x13a   : > { %v1244_v7 = vadd.f32 %v1154_v10, %v965_v5 }
 0x13b   : > { %5681 = vmatmul.msk.f32.gmra.mxu0 %vm290_vm1, %v6618_v30  ;;  %v1713_v27 = vpop.f32.mrf.mxu1  ;;  %v5959_v30 = vld [vmem:[%s9122_s3 + $0x30] sm:$0xff] }
 0x13c   : > { %5549 = vmatmul.msk.f32.gmra.mxu2 %vm290_vm1, %v7126_v18  ;;  %v1522_v26 = vadd.f32 %v1432_v14, %v1244_v7  ;;  %3020 = vmatpush.msra.mxu1 %v5959_v30 }
 0x13d   : > { %5615 = vmatmul.msk.f32.gmra.mxu3 %vm290_vm1, %v6621_v31 }
 0x13e   : > { %v7161_v13 = vadd.f32 %v1710_v61, %v1522_v26  ;;  %5747 = vmatmul.msk.f32.gmra.mxu1 %vm290_vm1, %v5713_v19  ;;  %v5716_v26 = vld [vmem:[%s6504_s25 + $0x12a] sm:$0xff] }
 0x13f   : > { %v878_v16 = vpop.f32.mrf.mxu2 }
 0x140   : > { %v966_v6 = vadd.f32 %v878_v16, %v633_v8  ;;  %v1157_v60 = vpop.f32.mrf.mxu3  ;;  %v1438_v1 = vpop.f32.mrf.mxu0 }
 0x142   : > { %v1245_v4 = vadd.f32 %v1157_v60, %v966_v6 }
 0x143   : > { %5682 = vmatmul.msk.f32.gmra.mxu0 %vm290_vm1, %v6638_v34  ;;  %v1716_v15 = vpop.f32.mrf.mxu1 }
 0x144   : > { %5550 = vmatmul.msk.f32.gmra.mxu2 %vm290_vm1, %v5712_v22  ;;  %v1523_v31 = vadd.f32 %v1435_v11, %v1245_v4 }
 0x145   : > { %5616 = vmatmul.msk.f32.gmra.mxu3 %vm290_vm1, %v6641_v35  ;;  %v639_v35 = vadd.f32 %v6926_v55, %v6924_v28 }
 0x146   : > { %v7175_v20 = vadd.f32 %v1713_v27, %v1523_v31  ;;  %5748 = vmatmul.msk.f32.gmra.mxu1 %vm290_vm1, %v5714_v12 }
 0x147   : > { %v881_v14 = vpop.f32.mrf.mxu2 }
 0x148   : > { %v967_v61 = vadd.f32 %v881_v14, %v636_v17  ;;  %v1160_v23 = vpop.f32.mrf.mxu3  ;;  %v1441_v9 = vpop.f32.mrf.mxu0  ;;  %v5718_v17 = vld [vmem:[%s6504_s25 + $0x142] sm:$0xff] }
 0x14a   : > { %v1246_v22 = vadd.f32 %v1160_v23, %v967_v61  ;;  %v5719_v23 = vld [vmem:[%s6504_s25 + $0x152] sm:$0xff] }
 0x14b   : > { %5683 = vmatmul.msk.f32.gmra.mxu0 %vm290_vm1, %v6658_v38  ;;  %v1719_v7 = vpop.f32.mrf.mxu1 }
 0x14c   : > { %5551 = vmatmul.msk.f32.gmra.mxu2 %vm290_vm1, %v5713_v19  ;;  %v1524_v34 = vadd.f32 %v1438_v1, %v1246_v22  ;;  %v5717_v1 = vld [vmem:[%s6504_s25 + $0x13a] sm:$0xff] }
 0x14d   : > { %5617 = vmatmul.msk.f32.gmra.mxu3 %vm290_vm1, %v6661_v39  ;;  %v642_v39 = vadd.f32 %v6943_v25, %v6941_v32 }
 0x14e   : > { %v7186_v21 = vadd.f32 %v1716_v15, %v1524_v34  ;;  %5749 = vmatmul.msk.f32.gmra.mxu1 %vm290_vm1, %v5715_v63 }
 0x14f   : > { %v884_v24 = vpop.f32.mrf.mxu2 }
 0x150   : > { %v968_v5 = vadd.f32 %v884_v24, %v639_v35  ;;  %v1163_v10 = vpop.f32.mrf.mxu3  ;;  %v1444_v11 = vpop.f32.mrf.mxu0  ;;  %v5720_v35 = vld [vmem:[%s6504_s25 + $0x15a] sm:$0xff] }
 0x152   : > { %v1247_v19 = vadd.f32 %v1163_v10, %v968_v5  ;;  %v9234_v5 = vld [vmem:[#allocation8_spill] sm:$0xff] }
 0x153   : > { %5684 = vmatmul.msk.f32.gmra.mxu0 %vm290_vm1, %v6678_v42  ;;  %v1722_v60 = vpop.f32.mrf.mxu1 }
 0x154   : > { %5552 = vmatmul.msk.f32.gmra.mxu2 %vm290_vm1, %v5714_v12  ;;  %v1525_v38 = vadd.f32 %v1441_v9, %v1247_v19 }
 0x155   : > { %5618 = vmatmul.msk.f32.gmra.mxu3 %vm290_vm1, %v6681_v43  ;;  %v645_v43 = vadd.f32 %v6960_v29, %v6958_v36 }
 0x156   : > { %v7197_v55 = vadd.f32 %v1719_v7, %v1525_v38  ;;  %5750 = vmatmul.msk.f32.gmra.mxu1 %vm290_vm1, %v5716_v26  ;;  %v9235_v38 = vld [vmem:[#allocation9_spill] sm:$0xff] }
 0x157   : > { %v887_v28 = vpop.f32.mrf.mxu2 }
 0x158   : > { %v969_v27 = vadd.f32 %v887_v28, %v642_v39  ;;  %v1166_v8 = vpop.f32.mrf.mxu3  ;;  %v1447_v16 = vpop.f32.mrf.mxu0  ;;  %v9236_v28 = vld [vmem:[#allocation10_spill] sm:$0xff] }
 0x15a   : > { %v1248_v6 = vadd.f32 %v1166_v8, %v969_v27 }
 0x15b   : > { %5685 = vmatmul.msk.f32.gmra.mxu0 %vm290_vm1, %v6698_v46 }
 0x15c   : > { %5553 = vmatmul.msk.f32.gmra.mxu2 %vm290_vm1, %v5715_v63  ;;  %v1526_v42 = vadd.f32 %v1444_v11, %v1248_v6 }
 0x15d   : > { %5619 = vmatmul.msk.f32.gmra.mxu3 %vm290_vm1, %v6701_v47  ;;  %v648_v47 = vadd.f32 %v6977_v33, %v6975_v40  ;;  %v651_v33 = vadd.f32 %v6994_v37, %v6992_v44  ;;  %v654_v37 = vadd.f32 %v7011_v41, %v7009_v48  ;;  %v657_v41 = vadd.f32 %v7028_v45, %v7026_v52  ;;  %v9238_v52 = vld [vmem:[#allocation12_spill] sm:$0xff] }
 0x15e   : > { %v7208_v25 = vadd.f32 %v1722_v60, %v1526_v42  ;;  %5751 = vmatmul.msk.f32.gmra.mxu1 %vm290_vm1, %v5717_v1  ;;  %v5958_v60 = vld [vmem:[%s9122_s3 + $0x28] sm:$0xff] }
 0x15f   : > { %v890_v32 = vpop.f32.mrf.mxu2  ;;  %3021 = vmatpush.msra.mxu1 %v5958_v60  ;;  %v9237_v42 = vld [vmem:[#allocation11_spill] sm:$0xff] }
 0x160   : > { %v970_v4 = vadd.f32 %v890_v32, %v645_v43  ;;  %v1169_v30 = vpop.f32.mrf.mxu3  ;;  %v1450_v12 = vpop.f32.mrf.mxu0  ;;  %v660_v43 = vadd.f32 %v7048_v3, %v7043_v56  ;;  %v663_v3 = vadd.f32 %v7065_v49, %v7063_v53  ;;  %v9239_v53 = vld [vmem:[#allocation41_spill] sm:$0xff] }
 0x161   : > { %v666_v49 = vadd.f32 %v9239_v53, %v7080_v59  ;;  %v5763_v53 = vld [vmem:[%s6504_s25 + $0x60] sm:$0xff] }
 0x162   : > { %v1249_v31 = vadd.f32 %v1169_v30, %v970_v4 }
 0x163   : > { %5686 = vmatmul.msk.f32.gmra.mxu0 %vm290_vm1, %v6718_v50 }
 0x164   : > { %5554 = vmatmul.msk.f32.gmra.mxu2 %vm290_vm1, %v5716_v26  ;;  %v7215_v46 = vadd.f32 %v1447_v16, %v1249_v31  ;;  %v5721_v26 = vld [vmem:[%s6504_s25 + $0x16a] sm:$0xff]  ;;  %v5657_v31 = vld [vmem:[%s6504_s25 + $0x181] sm:$0xff] }
 0x165   : > { %5620 = vmatmul.msk.f32.gmra.mxu3 %vm290_vm1, %v6721_v51  ;;  %v9232_v51 = vld [vmem:[#allocation6_spill] sm:$0xff] }
 0x166   : > { %5752 = vmatmul.msk.f32.gmra.mxu1 %vm290_vm1, %v5718_v17 }
 0x167   : > { %v893_v29 = vpop.f32.mrf.mxu2 }
 0x168   : > { %v971_v36 = vadd.f32 %v893_v29, %v648_v47  ;;  %v1172_v14 = vpop.f32.mrf.mxu3  ;;  %v1453_v15 = vpop.f32.mrf.mxu0  ;;  %v5591_v47 = vld [vmem:[%s6504_s25 + $0x180] sm:$0xff] }
 0x169   : > { %v5723_v29 = vld [vmem:[%s6504_s25 + $0x182] sm:$0xff] }
 0x16a   : > { %v1250_v61 = vadd.f32 %v1172_v14, %v971_v36 }
 0x16b   : > { %5687 = vmatmul.msk.f32.gmra.mxu0 %vm290_vm1, %v6738_v54  ;;  %v9233_v54 = vld [vmem:[#allocation7_spill] sm:$0xff] }
 0x16c   : > { %5555 = vmatmul.msk.f32.gmra.mxu2 %vm290_vm1, %v5717_v1  ;;  %v7226_v50 = vadd.f32 %v1450_v12, %v1250_v61  ;;  %v5722_v1 = vld [vmem:[%s6504_s25 + $0x172] sm:$0xff] }
 0x16d   : > { %5621 = vmatmul.msk.f32.gmra.mxu3 %vm290_vm1, %v9232_v51 }
 0x16e   : > { %5753 = vmatmul.msk.f32.gmra.mxu1 %vm290_vm1, %v5719_v23 }
 0x16f   : > { %v896_v40 = vpop.f32.mrf.mxu2 }
 0x170   : > { %v972_v9 = vadd.f32 %v896_v40, %v651_v33  ;;  %v1175_v22 = vpop.f32.mrf.mxu3  ;;  %v1456_v63 = vpop.f32.mrf.mxu0  ;;  %v5592_v33 = vld [vmem:[%s6504_s25 + $0x188] sm:$0xff] }
 0x171   : > { %v5724_v40 = vld [vmem:[%s6504_s25 + $0x18a] sm:$0xff] }
 0x172   : > { %v1251_v34 = vadd.f32 %v1175_v22, %v972_v9 }
 0x173   : > { %5688 = vmatmul.msk.f32.gmra.mxu0 %vm290_vm1, %v9233_v54  ;;  %v5759_v54 = vld [vmem:[%s6504_s25 + $0x30] sm:$0xff] }
 0x174   : > { %5556 = vmatmul.msk.f32.gmra.mxu2 %vm290_vm1, %v5718_v17  ;;  %v7237_v24 = vadd.f32 %v1453_v15, %v1251_v34 }
 0x175   : > { %5622 = vmatmul.msk.f32.gmra.mxu3 %vm290_vm1, %v9234_v5 }
 0x176   : > { %5754 = vmatmul.msk.f32.gmra.mxu1 %vm290_vm1, %v5720_v35 }
 0x177   : > { %v899_v44 = vpop.f32.mrf.mxu2 }
 0x178   : > { %v973_v10 = vadd.f32 %v899_v44, %v654_v37  ;;  %v1178_v11 = vpop.f32.mrf.mxu3  ;;  %v1459_v7 = vpop.f32.mrf.mxu0  ;;  %v5825_v37 = vld [vmem:[%s6504_s25 + $0x31] sm:$0xff]  ;;  %v9240_v44 = vld [vmem:[#allocation15_spill] sm:$0xff] }
 0x17a   : > { %v1252_v19 = vadd.f32 %v1178_v11, %v973_v10  ;;  %v9241_v11 = vld [vmem:[#allocation13_spill] sm:$0xff] }
 0x17b   : > { %5689 = vmatmul.msk.f32.gmra.mxu0 %vm290_vm1, %v9235_v38  ;;  %v5760_v38 = vld [vmem:[%s6504_s25 + $0x38] sm:$0xff] }
 0x17c   : > { %5557 = vmatmul.msk.f32.gmra.mxu2 %vm290_vm1, %v5719_v23  ;;  %v7248_v39 = vadd.f32 %v1456_v63, %v1252_v19  ;;  %v5658_v23 = vld [vmem:[%s6504_s25 + $0x189] sm:$0xff] }
 0x17d   : > { %5623 = vmatmul.msk.f32.gmra.mxu3 %vm290_vm1, %v9236_v28 }
 0x17e   : > { %5755 = vmatmul.msk.f32.gmra.mxu1 %vm290_vm1, %v5721_v26 }
 0x17f   : > { %v902_v48 = vpop.f32.mrf.mxu2 }
 0x180   : > { %v974_v27 = vadd.f32 %v902_v48, %v657_v41  ;;  %v1181_v8 = vpop.f32.mrf.mxu3  ;;  %v1462_v16 = vpop.f32.mrf.mxu0  ;;  %v5826_v41 = vld [vmem:[%s6504_s25 + $0x39] sm:$0xff] }
 0x181   : > { %v9242_v48 = vld [vmem:[#allocation17_spill] sm:$0xff] }
 0x182   : > { %v1253_v6 = vadd.f32 %v1181_v8, %v974_v27 }
 0x183   : > { %5690 = vmatmul.msk.f32.gmra.mxu0 %vm290_vm1, %v9237_v42  ;;  %v5761_v42 = vld [vmem:[%s6504_s25 + $0x48] sm:$0xff] }
 0x184   : > { %5558 = vmatmul.msk.f32.gmra.mxu2 %vm290_vm1, %v5720_v35  ;;  %v7262_v45 = vadd.f32 %v1459_v7, %v1253_v6 }
 0x185   : > { %5624 = vmatmul.msk.f32.gmra.mxu3 %vm290_vm1, %v9238_v52 }
 0x186   : > { %5756 = vmatmul.msk.f32.gmra.mxu1 %vm290_vm1, %v5722_v1 }
 0x187   : > { %v905_v32 = vpop.f32.mrf.mxu2 }
 0x188   : > { %v975_v4 = vadd.f32 %v905_v32, %v660_v43  ;;  %v1184_v30 = vpop.f32.mrf.mxu3  ;;  %v1465_v12 = vpop.f32.mrf.mxu0  ;;  %v5827_v43 = vld [vmem:[%s6504_s25 + $0x49] sm:$0xff] }
 0x189   : > { %v9244_v32 = vld [vmem:[#allocation19_spill] sm:$0xff] }
 0x18a   : > { %v1254_v17 = vadd.f32 %v1184_v30, %v975_v4 }
 0x18b   : > { %5691 = vmatmul.msk.f32.gmra.mxu0 %vm290_vm1, %v5657_v31 }
 0x18c   : > { %5559 = vmatmul.msk.f32.gmra.mxu2 %vm290_vm1, %v5721_v26  ;;  %v7274_v36 = vadd.f32 %v1462_v16, %v1254_v17  ;;  %v9243_v16 = vld [vmem:[#allocation14_spill] sm:$0xff] }
 0x18d   : > { %5625 = vmatmul.msk.f32.gmra.mxu3 %vm290_vm1, %v5591_v47 }
 0x18e   : > { %5757 = vmatmul.msk.f32.gmra.mxu1 %vm290_vm1, %v5723_v29  ;;  %v5762_v29 = vld [vmem:[%s6504_s25 + $0x50] sm:$0xff] }
 0x18f   : > { %v908_v56 = vpop.f32.mrf.mxu2 }
 0x190   : > { %v976_v14 = vadd.f32 %v908_v56, %v663_v3  ;;  %v1187_v15 = vpop.f32.mrf.mxu3  ;;  %v1468_v61 = vpop.f32.mrf.mxu0  ;;  %v5828_v56 = vld [vmem:[%s6504_s25 + $0x51] sm:$0xff] }
 0x192   : > { %v1255_v51 = vadd.f32 %v1187_v15, %v976_v14  ;;  %v9246_v14 = vld [vmem:[#allocation21_spill] sm:$0xff] }
 0x193   : > { %5692 = vmatmul.msk.f32.gmra.mxu0 %vm290_vm1, %v5658_v23  ;;  %v9247_v23 = vld [vmem:[#allocation18_spill] sm:$0xff] }
 0x194   : > { %5560 = vmatmul.msk.f32.gmra.mxu2 %vm290_vm1, %v5722_v1  ;;  %v7285_v9 = vadd.f32 %v1465_v12, %v1255_v51  ;;  %v9245_v12 = vld [vmem:[#allocation16_spill] sm:$0xff] }
 0x195   : > { %5626 = vmatmul.msk.f32.gmra.mxu3 %vm290_vm1, %v5592_v33 }
 0x196   : > { %5758 = vmatmul.msk.f32.gmra.mxu1 %vm290_vm1, %v5724_v40 }
 0x197   : > { %v911_v22 = vpop.f32.mrf.mxu2 }
 0x198   : > { %v977_v63 = vadd.f32 %v911_v22, %v666_v49  ;;  %v1190_v34 = vpop.f32.mrf.mxu3  ;;  %v1471_v35 = vpop.f32.mrf.mxu0  ;;  %v5829_v22 = vld [vmem:[%s6504_s25 + $0x61] sm:$0xff] }
 0x19a   : > { %v1256_v5 = vadd.f32 %v1190_v34, %v977_v63  ;;  %v9248_v63 = vld [vmem:[#allocation23_spill] sm:$0xff] }
 0x19b   : > { %5925 = vmatmul.msk.f32.vlgmr.msra.gmra.mxu0 %vm290_vm1, %v9240_v44 }
 0x19c   : > { %5793 = vmatmul.msk.f32.vlgmr.msra.gmra.mxu2 %vm290_vm1, %v5759_v54  ;;  %v7296_v10 = vadd.f32 %v1468_v61, %v1256_v5  ;;  %v9249_v5 = vld [vmem:[#allocation20_spill] sm:$0xff] }
 0x19d   : > { %5859 = vmatmul.msk.f32.vlgmr.msra.gmra.mxu3 %vm290_vm1, %v5825_v37 }
 0x19f   : > { %v914_v59 = vpop.f32.mrf.mxu2 }
 0x1a0   : > { %v978_v7 = vadd.f32 %v914_v59, %v9241_v11  ;;  %v1193_v19 = vpop.f32.mrf.mxu3  ;;  %v1474_v26 = vpop.f32.mrf.mxu0  ;;  %v5764_v11 = vld [vmem:[%s6504_s25 + $0x68] sm:$0xff] }
 0x1a2   : > { %v1257_v28 = vadd.f32 %v1193_v19, %v978_v7  ;;  %v5830_v19 = vld [vmem:[%s6504_s25 + $0x69] sm:$0xff] }
 0x1a3   : > { %5926 = vmatmul.msk.f32.gmra.mxu0 %vm290_vm1, %v9242_v48 }
 0x1a4   : > { %5794 = vmatmul.msk.f32.gmra.mxu2 %vm290_vm1, %v5760_v38  ;;  %v7305_v27 = vadd.f32 %v1471_v35, %v1257_v28  ;;  %v7334_v35 = vpop.f32.mrf.mxu1  ;;  %v9250_v38 = vld [vmem:[#allocation25_spill] sm:$0xff] }
 0x1a5   : > { %5860 = vmatmul.msk.f32.gmra.mxu3 %vm290_vm1, %v5826_v41 }
 0x1a7   : > { %v917_v8 = vpop.f32.mrf.mxu2 }
 0x1a8   : > { %v979_v6 = vadd.f32 %v917_v8, %v9243_v16  ;;  %v1196_v60 = vpop.f32.mrf.mxu3  ;;  %v1477_v1 = vpop.f32.mrf.mxu0  ;;  %v9251_v8 = vld [vmem:[#allocation22_spill] sm:$0xff] }
 0x1aa   : > { %v1258_v52 = vadd.f32 %v1196_v60, %v979_v6 }
 0x1ab   : > { %5927 = vmatmul.msk.f32.gmra.mxu0 %vm290_vm1, %v9244_v32 }
 0x1ac   : > { %5795 = vmatmul.msk.f32.gmra.mxu2 %vm290_vm1, %v5761_v42  ;;  %v7314_v4 = vadd.f32 %v1474_v26, %v1258_v52  ;;  %v5957_v26 = vld [vmem:[%s9122_s3 + $0x20] sm:$0xff]  ;;  %v7349_v41 = vpop.f32.mrf.mxu1 }
 0x1ad   : > { %5861 = vmatmul.msk.f32.gmra.mxu3 %vm290_vm1, %v5827_v43  ;;  %3022 = vmatpush.msra.mxu1 %v5957_v26  ;;  %v5831_v52 = vld [vmem:[%s6504_s25 + $0x79] sm:$0xff]  ;;  %v9252_v43 = vld [vmem:[#allocation27_spill] sm:$0xff] }
 0x1af   : > { %v920_v30 = vpop.f32.mrf.mxu2 }
 0x1b0   : > { %v980_v31 = vadd.f32 %v920_v30, %v9245_v12  ;;  %v1199_v17 = vpop.f32.mrf.mxu3  ;;  %v1480_v47 = vpop.f32.mrf.mxu0  ;;  %v9253_v12 = vld [vmem:[#allocation24_spill] sm:$0xff] }
 0x1b2   : > { %v1259_v3 = vadd.f32 %v1199_v17, %v980_v31 }
 0x1b3   : > { %5928 = vmatmul.msk.f32.gmra.mxu0 %vm290_vm1, %v9246_v14  ;;  %v5832_v14 = vld [vmem:[%s6504_s25 + $0x81] sm:$0xff] }
 0x1b4   : > { %5796 = vmatmul.msk.f32.gmra.mxu2 %vm290_vm1, %v5762_v29  ;;  %v7323_v15 = vadd.f32 %v1477_v1, %v1259_v3  ;;  %v5765_v1 = vld [vmem:[%s6504_s25 + $0x78] sm:$0xff]  ;;  %v5766_v3 = vld [vmem:[%s6504_s25 + $0x80] sm:$0xff] }
 0x1b5   : > { %5862 = vmatmul.msk.f32.gmra.mxu3 %vm290_vm1, %v5828_v56 }
 0x1b7   : > { %v923_v61 = vpop.f32.mrf.mxu2 }
 0x1b8   : > { %v981_v51 = vadd.f32 %v923_v61, %v9247_v23  ;;  %v1202_v33 = vpop.f32.mrf.mxu3  ;;  %v1483_v40 = vpop.f32.mrf.mxu0  ;;  %v9254_v61 = vld [vmem:[#allocation29_spill] sm:$0xff] }
 0x1ba   : > { %v1260_v49 = vadd.f32 %v1202_v33, %v981_v51  ;;  %v9255_v33 = vld [vmem:[#allocation26_spill] sm:$0xff] }
 0x1bb   : > { %5929 = vmatmul.msk.f32.gmra.mxu0 %vm290_vm1, %v9248_v63 }
 0x1bc   : > { %5797 = vmatmul.msk.f32.gmra.mxu2 %vm290_vm1, %v5763_v53  ;;  %v7332_v34 = vadd.f32 %v1480_v47, %v1260_v49  ;;  %v7361_v47 = vpop.f32.mrf.mxu1 }
 0x1bd   : > { %5863 = vmatmul.msk.f32.gmra.mxu3 %vm290_vm1, %v5829_v22  ;;  %v5767_v22 = vld [vmem:[%s6504_s25 + $0x90] sm:$0xff] }
 0x1bf   : > { %v926_v54 = vpop.f32.mrf.mxu2 }
 0x1c0   : > { %v982_v37 = vadd.f32 %v926_v54, %v9249_v5  ;;  %v1205_v44 = vpop.f32.mrf.mxu3  ;;  %v1486_v59 = vpop.f32.mrf.mxu0  ;;  %v5833_v54 = vld [vmem:[%s6504_s25 + $0x91] sm:$0xff] }
 0x1c2   : > { %v1261_v7 = vadd.f32 %v1205_v44, %v982_v37  ;;  %v9256_v37 = vld [vmem:[#allocation31_spill] sm:$0xff] }
 0x1c3   : > { %5930 = vmatmul.msk.f32.gmra.mxu0 %vm290_vm1, %v9250_v38  ;;  %v5768_v38 = vld [vmem:[%s6504_s25 + $0x98] sm:$0xff] }
 0x1c4   : > { %5798 = vmatmul.msk.f32.gmra.mxu2 %vm290_vm1, %v5764_v11  ;;  %v7346_v28 = vadd.f32 %v1483_v40, %v1261_v7  ;;  %v7374_v5 = vpop.f32.mrf.mxu1  ;;  %v9257_v11 = vld [vmem:[#allocation28_spill] sm:$0xff] }
 0x1c5   : > { %5864 = vmatmul.msk.f32.gmra.mxu3 %vm290_vm1, %v5830_v19 }
 0x1c7   : > { %v929_v48 = vpop.f32.mrf.mxu2 }
 0x1c8   : > { %v983_v16 = vadd.f32 %v929_v48, %v9251_v8  ;;  %v1208_v6 = vpop.f32.mrf.mxu3  ;;  %v1489_v60 = vpop.f32.mrf.mxu0  ;;  %v5834_v8 = vld [vmem:[%s6504_s25 + $0x99] sm:$0xff] }
 0x1ca   : > { %v1262_v42 = vadd.f32 %v1208_v6, %v983_v16  ;;  %v9258_v16 = vld [vmem:[#allocation33_spill] sm:$0xff] }
 0x1cb   : > { %5931 = vmatmul.msk.f32.gmra.mxu0 %vm290_vm1, %v9252_v43 }
 0x1cc   : > { %5799 = vmatmul.msk.f32.gmra.mxu2 %vm290_vm1, %v5765_v1  ;;  %v7357_v32 = vadd.f32 %v1486_v59, %v1262_v42  ;;  %v9259_v42 = vld [vmem:[#allocation30_spill] sm:$0xff] }
 0x1cd   : > { %5865 = vmatmul.msk.f32.gmra.mxu3 %vm290_vm1, %v5831_v52 }
 0x1cf   : > { %v932_v30 = vpop.f32.mrf.mxu2 }
 0x1d0   : > { %v984_v31 = vadd.f32 %v932_v30, %v9253_v12  ;;  %v1211_v17 = vpop.f32.mrf.mxu3  ;;  %v1492_v29 = vpop.f32.mrf.mxu0  ;;  %v5769_v12 = vld [vmem:[%s6504_s25 + $0xa8] sm:$0xff] }
 0x1d2   : > { %v1263_v56 = vadd.f32 %v1211_v17, %v984_v31  ;;  %v5835_v17 = vld [vmem:[%s6504_s25 + $0xa9] sm:$0xff] }
 0x1d3   : > { %5932 = vmatmul.msk.f32.gmra.mxu0 %vm290_vm1, %v9254_v61  ;;  %v9261_v61 = vld [vmem:[#allocation32_spill] sm:$0xff] }
 0x1d4   : > { %5800 = vmatmul.msk.f32.gmra.mxu2 %vm290_vm1, %v5766_v3  ;;  %v7368_v23 = vadd.f32 %v1489_v60, %v1263_v56  ;;  %v7390_v60 = vpop.f32.mrf.mxu1 }
 0x1d5   : > { %5866 = vmatmul.msk.f32.gmra.mxu3 %vm290_vm1, %v5832_v14 }
 0x1d7   : > { %v935_v51 = vpop.f32.mrf.mxu2 }
 0x1d8   : > { %v985_v40 = vadd.f32 %v935_v51, %v9255_v33  ;;  %v1214_v53 = vpop.f32.mrf.mxu3  ;;  %v1495_v49 = vpop.f32.mrf.mxu0 }
 0x1da   : > { %v1264_v63 = vadd.f32 %v1214_v53, %v985_v40  ;;  %v5770_v53 = vld [vmem:[%s6504_s25 + $0xb0] sm:$0xff] }
 0x1db   : > { %5933 = vmatmul.msk.f32.gmra.mxu0 %vm290_vm1, %v9256_v37  ;;  %v2873_v37 = vld [vmem:[%s9122_s3 + $0x18] sm:$0xff] }
 0x1dc   : > { %5801 = vmatmul.msk.f32.gmra.mxu2 %vm290_vm1, %v5767_v22  ;;  %v7379_v44 = vadd.f32 %v1492_v29, %v1264_v63  ;;  %v9260_v29 = vld [vmem:[#allocation35_spill] sm:$0xff]  ;;  %v7402_v56 = vpop.f32.mrf.mxu1  ;;  %v5836_v22 = vld [vmem:[%s6504_s25 + $0xb1] sm:$0xff] }
 0x1dd   : > { %5867 = vmatmul.msk.f32.gmra.mxu3 %vm290_vm1, %v5833_v54  ;;  %v9262_v63 = vld [vmem:[#allocation37_spill] sm:$0xff]  ;;  %3228 = vmatpush.msrb.mxu2 %v2873_v37 }
 0x1df   : > { %v938_v59 = vpop.f32.mrf.mxu2 }
 0x1e0   : > { %v986_v7 = vadd.f32 %v938_v59, %v9257_v11  ;;  %v1217_v19 = vpop.f32.mrf.mxu3  ;;  %v1498_v26 = vpop.f32.mrf.mxu0  ;;  %v9263_v11 = vld [vmem:[#allocation34_spill] sm:$0xff] }
 0x1e2   : > { %v1265_v48 = vadd.f32 %v1217_v19, %v986_v7 }
 0x1e3   : > { %5934 = vmatmul.msk.f32.gmra.mxu0 %vm290_vm1, %v9258_v16  ;;  %v5837_v16 = vld [vmem:[%s6504_s25 + $0xc1] sm:$0xff] }
 0x1e4   : > { %5802 = vmatmul.msk.f32.gmra.mxu2 %vm290_vm1, %v5768_v38  ;;  %v7388_v6 = vadd.f32 %v1495_v49, %v1265_v48  ;;  %v5771_v48 = vld [vmem:[%s6504_s25 + $0xc0] sm:$0xff] }
 0x1e5   : > { %5868 = vmatmul.msk.f32.gmra.mxu3 %vm290_vm1, %v5834_v8 }
 0x1e7   : > { %v941_v1 = vpop.f32.mrf.mxu2 }
 0x1e8   : > { %v987_v52 = vadd.f32 %v941_v1, %v9259_v42  ;;  %v1220_v43 = vpop.f32.mrf.mxu3  ;;  %v1501_v30 = vpop.f32.mrf.mxu0  ;;  %v6028_v1 = vld [vmem:[%s9122_s3 + $0x58] sm:$0xff]  ;;  %v6396_v42 = vmov 0.0  }
 0x1e9   : > { %3474 = vmatpush.msrb.mxu3 %v6028_v1  ;;  %2738 = vst.msk [vmem:[#allocation2 + $0x28] sm:$0xff] %vm2732_vm2, %v6396_v42 }
 0x1ea   : > { %v1266_v31 = vadd.f32 %v1220_v43, %v987_v52  ;;  %v9264_v52 = vld [vmem:[#allocation39_spill] sm:$0xff]  ;;  %2733 = vst.msk [vmem:[#allocation2] sm:$0xff] %vm2732_vm2, %v6396_v42 }
 0x1eb   : > { %5935 = vmatmul.msk.f32.gmra.mxu0 %vm290_vm1, %v9260_v29  ;;  %2734 = vst.msk [vmem:[#allocation2 + $0x8] sm:$0xff] %vm2732_vm2, %v6396_v42 }
 0x1ec   : > { %5803 = vmatmul.msk.f32.gmra.mxu2 %vm290_vm1, %v5769_v12  ;;  %v7399_v3 = vadd.f32 %v1498_v26, %v1266_v31  ;;  %v7417_v26 = vpop.f32.mrf.mxu1  ;;  %2735 = vst.msk [vmem:[#allocation2 + $0x10] sm:$0xff] %vm2732_vm2, %v6396_v42  ;;  %v9265_v12 = vld [vmem:[#allocation36_spill] sm:$0xff] }
 0x1ed   : > { %5869 = vmatmul.msk.f32.gmra.mxu3 %vm290_vm1, %v5835_v17  ;;  %2736 = vst.msk [vmem:[#allocation2 + $0x18] sm:$0xff] %vm2732_vm2, %v6396_v42 }
 0x1ee   : > { %2737 = vst.msk [vmem:[#allocation2 + $0x20] sm:$0xff] %vm2732_vm2, %v6396_v42 }
 0x1ef   : > { %v944_v14 = vpop.f32.mrf.mxu2  ;;  %2739 = vst.msk [vmem:[#allocation2 + $0x30] sm:$0xff] %vm2732_vm2, %v6396_v42 }
 0x1f0   : > { %v988_v51 = vadd.f32 %v944_v14, %v9261_v61  ;;  %v1223_v33 = vpop.f32.mrf.mxu3  ;;  %v1504_v40 = vpop.f32.mrf.mxu0  ;;  %v5772_v14 = vld [vmem:[%s6504_s25 + $0xc8] sm:$0xff]  ;;  %2740 = vst.msk [vmem:[#allocation2 + $0x38] sm:$0xff] %vm2732_vm2, %v6396_v42 }
 0x1f1   : > { %2741 = vst.msk [vmem:[#allocation2 + $0x40] sm:$0xff] %vm2732_vm2, %v6396_v42 }
 0x1f2   : > { %v1267_v49 = vadd.f32 %v1223_v33, %v988_v51  ;;  %v5838_v51 = vld [vmem:[%s6504_s25 + $0xc9] sm:$0xff]  ;;  %2742 = vst.msk [vmem:[#allocation2 + $0x48] sm:$0xff] %vm2732_vm2, %v6396_v42 }
 0x1f3   : > { %5936 = vmatmul.msk.f32.gmra.mxu0 %vm290_vm1, %v9262_v63  ;;  %2743 = vst.msk [vmem:[#allocation2 + $0x50] sm:$0xff] %vm2732_vm2, %v6396_v42  ;;  %v9267_v63 = vld [vmem:[#allocation38_spill] sm:$0xff] }
 0x1f4   : > { %5804 = vmatmul.msk.f32.gmra.mxu2 %vm290_vm1, %v5770_v53  ;;  %v7410_v54 = vadd.f32 %v1501_v30, %v1267_v49  ;;  %v7449_v33 = vpop.f32.mrf.mxu1  ;;  %v2874_v49 = vld [vmem:[#allocation2 + $0x8] sm:$0xff]  ;;  %2744 = vst.msk [vmem:[#allocation2 + $0x58] sm:$0xff] %vm2732_vm2, %v6396_v42 }
 0x1f5   : > { %5870 = vmatmul.msk.f32.gmra.mxu3 %vm290_vm1, %v5836_v22  ;;  %5961 = vmatmul.msk.f32.vlgmr.msra.gmra.mxu1 %vm2732_vm2, %v2874_v49  ;;  %2745 = vst.msk [vmem:[#allocation2 + $0x60] sm:$0xff] %vm2732_vm2, %v6396_v42 }
 0x1f6   : > { %2746 = vst.msk [vmem:[#allocation2 + $0x68] sm:$0xff] %vm2732_vm2, %v6396_v42 }
 0x1f7   : > { %v947_v59 = vpop.f32.mrf.mxu2  ;;  %2747 = vst.msk [vmem:[#allocation2 + $0x70] sm:$0xff] %vm2732_vm2, %v6396_v42 }
 0x1f8   : > { %v989_v7 = vadd.f32 %v947_v59, %v9263_v11  ;;  %v1226_v19 = vpop.f32.mrf.mxu3  ;;  %v1507_v38 = vpop.f32.mrf.mxu0  ;;  %2748 = vst.msk [vmem:[#allocation2 + $0x78] sm:$0xff] %vm2732_vm2, %v6396_v42 }
 0x1f9   : > { %2749 = vst.msk [vmem:[#allocation2 + $0x80] sm:$0xff] %vm2732_vm2, %v6396_v42 }
 0x1fa   : > { %v1268_v8 = vadd.f32 %v1226_v19, %v989_v7  ;;  %v5773_v7 = vld [vmem:[%s6504_s25 + $0xd8] sm:$0xff]  ;;  %2750 = vst.msk [vmem:[#allocation2 + $0x88] sm:$0xff] %vm2732_vm2, %v6396_v42 }
 0x1fb   : > { %5937 = vmatmul.msk.f32.gmra.mxu0 %vm290_vm1, %v9264_v52  ;;  %2751 = vst.msk [vmem:[#allocation2 + $0x90] sm:$0xff] %vm2732_vm2, %v6396_v42 }
 0x1fc   : > { %5805 = vmatmul.msk.f32.gmra.mxu2 %vm290_vm1, %v5771_v48  ;;  %v7429_v43 = vadd.f32 %v1504_v40, %v1268_v8  ;;  %v9266_v40 = vld [vmem:[#allocation42_spill] sm:$0xff]  ;;  %v7486_v8 = vpop.f32.mrf.mxu1  ;;  %2752 = vst.msk [vmem:[#allocation2 + $0x98] sm:$0xff] %vm2732_vm2, %v6396_v42 }
 0x1fd   : > { %5871 = vmatmul.msk.f32.gmra.mxu3 %vm290_vm1, %v5837_v16  ;;  %2753 = vst.msk [vmem:[#allocation2 + $0xa0] sm:$0xff] %vm2732_vm2, %v6396_v42 }
 0x1fe   : > { %2754 = vst.msk [vmem:[#allocation2 + $0xa8] sm:$0xff] %vm2732_vm2, %v6396_v42 }
 0x1ff   : > { %v950_v30 = vpop.f32.mrf.mxu2  ;;  %2755 = vst.msk [vmem:[#allocation2 + $0xb0] sm:$0xff] %vm2732_vm2, %v6396_v42 }
 0x200   : > { %v990_v31 = vadd.f32 %v950_v30, %v9265_v12  ;;  %v1229_v17 = vpop.f32.mrf.mxu3  ;;  %v1510_v29 = vpop.f32.mrf.mxu0  ;;  %v5774_v12 = vld [vmem:[%s6504_s25 + $0xe0] sm:$0xff]  ;;  %2756 = vst.msk [vmem:[#allocation2 + $0xb8] sm:$0xff] %vm2732_vm2, %v6396_v42 }
 0x201   : > { %2757 = vst.msk [vmem:[#allocation2 + $0xc0] sm:$0xff] %vm2732_vm2, %v6396_v42 }
 0x202   : > { %v1269_v61 = vadd.f32 %v1229_v17, %v990_v31  ;;  %v5840_v17 = vld [vmem:[%s6504_s25 + $0xe1] sm:$0xff]  ;;  %2758 = vst.msk [vmem:[#allocation2 + $0xc8] sm:$0xff] %vm2732_vm2, %v6396_v42 }
 0x203   : > { %5938 = vmatmul.msk.f32.gmra.mxu0 %vm290_vm1, %v9266_v40  ;;  %2759 = vst.msk [vmem:[#allocation2 + $0xd0] sm:$0xff] %vm2732_vm2, %v6396_v42 }
 0x204   : > { %5806 = vmatmul.msk.f32.gmra.mxu2 %vm290_vm1, %v5772_v14  ;;  %v7456_v53 = vadd.f32 %v1507_v38, %v1269_v61  ;;  %v5839_v38 = vld [vmem:[%s6504_s25 + $0xd9] sm:$0xff]  ;;  %2760 = vst.msk [vmem:[#allocation2 + $0xd8] sm:$0xff] %vm2732_vm2, %v6396_v42  ;;  %v7518_v14 = vpop.f32.mrf.mxu1 }
 0x205   : > { %5872 = vmatmul.msk.f32.gmra.mxu3 %vm290_vm1, %v5838_v51  ;;  %2761 = vst.msk [vmem:[#allocation2 + $0xe0] sm:$0xff] %vm2732_vm2, %v6396_v42 }
 0x206   : > { %2762 = vst.msk [vmem:[#allocation2 + $0xe8] sm:$0xff] %vm2732_vm2, %v6396_v42 }
 0x207   : > { %v953_v22 = vpop.f32.mrf.mxu2  ;;  %2763 = vst.msk [vmem:[#allocation2 + $0xf0] sm:$0xff] %vm2732_vm2, %v6396_v42 }
 0x208   : > { %v991_v37 = vadd.f32 %v953_v22, %v9267_v63  ;;  %v1232_v59 = vpop.f32.mrf.mxu3  ;;  %v1513_v11 = vpop.f32.mrf.mxu0  ;;  %v5775_v22 = vld [vmem:[%s6504_s25 + $0xf0] sm:$0xff]  ;;  %2764 = vst.msk [vmem:[#allocation2 + $0xf8] sm:$0xff] %vm2732_vm2, %v6396_v42 }
 0x209   : > { %2765 = vst.msk [vmem:[#allocation2 + $0x100] sm:$0xff] %vm2732_vm2, %v6396_v42 }
 0x20a   : > { %v1270_v19 = vadd.f32 %v1232_v59, %v991_v37  ;;  %v5841_v37 = vld [vmem:[%s6504_s25 + $0xf1] sm:$0xff]  ;;  %2766 = vst.msk [vmem:[#allocation2 + $0x108] sm:$0xff] %vm2732_vm2, %v6396_v42 }
 0x20b   : > { %5939 = vmatmul.msk.f32.gmra.mxu0 %vm290_vm1, %v7098_v62  ;;  %v9268_v62 = vld [vmem:[#allocation40_spill] sm:$0xff]  ;;  %2767 = vst.msk [vmem:[#allocation2 + $0x110] sm:$0xff] %vm2732_vm2, %v6396_v42 }
 0x20c   : > { %5807 = vmatmul.msk.f32.gmra.mxu2 %vm290_vm1, %v5773_v7  ;;  %v7482_v48 = vadd.f32 %v1510_v29, %v1270_v19  ;;  %v2875_v59 = vld [vmem:[#allocation2 + $0x10] sm:$0xff]  ;;  %2768 = vst.msk [vmem:[#allocation2 + $0x118] sm:$0xff] %vm2732_vm2, %v6396_v42 }
 0x20d   : > { %5873 = vmatmul.msk.f32.gmra.mxu3 %vm290_vm1, %v5839_v38  ;;  %5962 = vmatmul.msk.f32.gmra.mxu1 %vm2732_vm2, %v2875_v59  ;;  %2769 = vst.msk [vmem:[#allocation2 + $0x120] sm:$0xff] %vm2732_vm2, %v6396_v42  ;;  %v7551_v38 = vpop.f32.mrf.mxu1  ;;  %v5909_v59 = vld [vmem:[%s6504_s25 + $0x10a] sm:$0xff] }
 0x20e   : > { %2770 = vst.msk [vmem:[#allocation2 + $0x128] sm:$0xff] %vm2732_vm2, %v6396_v42 }
 0x20f   : > { %v956_v16 = vpop.f32.mrf.mxu2  ;;  %2771 = vst.msk [vmem:[#allocation2 + $0x130] sm:$0xff] %vm2732_vm2, %v6396_v42 }
 0x210   : > { %v992_v1 = vadd.f32 %v956_v16, %v9268_v62  ;;  %v1235_v52 = vpop.f32.mrf.mxu3  ;;  %v1516_v30 = vpop.f32.mrf.mxu0  ;;  %2772 = vst.msk [vmem:[#allocation2 + $0x138] sm:$0xff] %vm2732_vm2, %v6396_v42 }
 0x211   : > { %2773 = vst.msk [vmem:[#allocation2 + $0x140] sm:$0xff] %vm2732_vm2, %v6396_v42 }
 0x212   : > { %v1271_v31 = vadd.f32 %v1235_v52, %v992_v1  ;;  %v7560_v1 = vld [vmem:[%s9121_s2] ss:$0 sm:$0xff]  ;;  %2774 = vst.msk [vmem:[#allocation2 + $0x148] sm:$0xff] %vm2732_vm2, %v6396_v42 }
 0x213   : > { %5940 = vmatmul.msk.f32.gmra.mxu0 %vm290_vm1, %v7111_v0  ;;  %v9269_v0 = vld [vmem:[#allocation43_spill] sm:$0xff]  ;;  %v5842_v52 = vld [vmem:[%s6504_s25 + $0xf9] sm:$0xff]  ;;  %2775 = vst.msk [vmem:[#allocation2 + $0x150] sm:$0xff] %vm2732_vm2, %v6396_v42 }
 0x214   : > { %5808 = vmatmul.msk.f32.gmra.mxu2 %vm290_vm1, %v5774_v12  ;;  %v7509_v29 = vadd.f32 %v1513_v11, %v1271_v31  ;;  %v6100_v12 = vld [vmem:[%s9122_s3 + $0x98] sm:$0xff]  ;;  %2776 = vst.msk [vmem:[#allocation2 + $0x158] sm:$0xff] %vm2732_vm2, %v6396_v42 }
 0x215   : > { %5874 = vmatmul.msk.f32.gmra.mxu3 %vm290_vm1, %v5840_v17  ;;  %v5908_v31 = vld [vmem:[%s6504_s25 + $0xfa] sm:$0xff]  ;;  %4030 = vmatpush.msrb.mxu1 %v6100_v12  ;;  %2777 = vst.msk [vmem:[#allocation2 + $0x160] sm:$0xff] %vm2732_vm2, %v6396_v42  ;;  %v5844_v12 = vld [vmem:[%s6504_s25 + $0x111] sm:$0xff] }
 0x216   : > { %2778 = vst.msk [vmem:[#allocation2 + $0x168] sm:$0xff] %vm2732_vm2, %v6396_v42 }
 0x217   : > { %v959_v61 = vpop.f32.mrf.mxu2  ;;  %2779 = vst.msk [vmem:[#allocation2 + $0x170] sm:$0xff] %vm2732_vm2, %v6396_v42 }
 0x218   : > { %v993_v51 = vadd.f32 %v959_v61, %v9269_v0  ;;  %v1238_v40 = vpop.f32.mrf.mxu3  ;;  %v2536_v49 = vpop.f32.mrf.mxu0  ;;  %2780 = vst.msk [vmem:[#allocation2 + $0x178] sm:$0xff] %vm2732_vm2, %v6396_v42 }
 0x219   : > { %2781 = vst.msk [vmem:[#allocation2 + $0x180] sm:$0xff] %vm2732_vm2, %v6396_v42 }
 0x21a   : > { %v1272_v63 = vadd.f32 %v1238_v40, %v993_v51  ;;  %2782 = vst.msk [vmem:[#allocation2 + $0x188] sm:$0xff] %vm2732_vm2, %v6396_v42 }
 0x21b   : > { %5941 = vmatmul.msk.f32.gmra.mxu0 %vm290_vm1, %v7126_v18  ;;  %2783 = vst.msk [vmem:[#allocation2 + $0x190] sm:$0xff] %vm2732_vm2, %v6396_v42 }
 0x21c   : > { %5809 = vmatmul.msk.f32.gmra.mxu2 %vm290_vm1, %v5775_v22  ;;  %v7536_v11 = vadd.f32 %v1516_v30, %v1272_v63  ;;  %v6064_v30 = vld [vmem:[%s9122_s3 + $0x78] sm:$0xff]  ;;  %v5777_v22 = vld [vmem:[%s6504_s25 + $0x108] sm:$0xff]  ;;  %2784 = vst.msk [vmem:[#allocation2 + $0x198] sm:$0xff] %vm2732_vm2, %v6396_v42 }
 0x21d   : > { %5875 = vmatmul.msk.f32.gmra.mxu3 %vm290_vm1, %v5841_v37  ;;  %3752 = vmatpush.msrb.mxu0 %v6064_v30  ;;  %v5843_v63 = vld [vmem:[%s6504_s25 + $0x109] sm:$0xff]  ;;  %v7594_v37 = vpop.f32.mrf.mxu1  ;;  %2785 = vst.msk [vmem:[#allocation2 + $0x1a0] sm:$0xff] %vm2732_vm2, %v6396_v42 }
 0x21e   : > { %2786 = vst.msk [vmem:[#allocation2 + $0x1a8] sm:$0xff] %vm2732_vm2, %v6396_v42  ;;  %v5778_v30 = vld [vmem:[%s6504_s25 + $0x110] sm:$0xff] }
 0x21f   : > { %v1980_v7 = vpop.f32.mrf.mxu2  ;;  %2787 = vst.msk [vmem:[#allocation2 + $0x1b0] sm:$0xff] %vm2732_vm2, %v6396_v42 }
 0x220   : > { %v2076_v18 = vadd.f32 %v1980_v7, %v7121_v57  ;;  %v2258_v19 = vpop.f32.mrf.mxu3  ;;  %v7555_v16 = vpop.f32.mrf.mxu0  ;;  %v5776_v57 = vld [vmem:[%s6504_s25 + $0xf8] sm:$0xff]  ;;  %2788 = vst.msk [vmem:[#allocation2 + $0x1b8] sm:$0xff] %vm2732_vm2, %v6396_v42 }
 0x221   : > { %2789 = vst.msk [vmem:[#allocation2 + $0x1c0] sm:$0xff] %vm2732_vm2, %v6396_v42 }
 0x222   : > { %v2354_v62 = vadd.f32 %v2258_v19, %v2076_v18  ;;  %2790 = vst.msk [vmem:[#allocation2 + $0x1c8] sm:$0xff] %vm2732_vm2, %v6396_v42 }
 0x223   : > { %5942 = vmatmul.msk.f32.gmra.mxu0 %vm290_vm1, %v5908_v31  ;;  %v5910_v31 = vld [vmem:[%s6504_s25 + $0x112] sm:$0xff]  ;;  %2791 = vst.msk [vmem:[#allocation2 + $0x1d0] sm:$0xff] %vm2732_vm2, %v6396_v42 }
 0x224   : > { %v2632_v17 = vadd.f32 %v2536_v49, %v2354_v62  ;;  %5810 = vmatmul.msk.f32.gmra.mxu2 %vm290_vm1, %v5776_v57  ;;  %2792 = vst.msk [vmem:[#allocation2 + $0x1d8] sm:$0xff] %vm2732_vm2, %v6396_v42 }
 0x225   : > { %5876 = vmatmul.msk.f32.gmra.mxu3 %vm290_vm1, %v5842_v52  ;;  %2793 = vst.msk [vmem:[#allocation2 + $0x1e0] sm:$0xff] %vm2732_vm2, %v6396_v42 }
 0x226   : > { %v2668_v61 = vadd.f32 %v7560_v1, %v2632_v17  ;;  %v7626_v17 = vpop.f32.mrf.mxu1  ;;  %2794 = vst.msk [vmem:[#allocation2 + $0x1e8] sm:$0xff] %vm2732_vm2, %v6396_v42 }
 0x227   : > { %v1983_v0 = vpop.f32.mrf.mxu2  ;;  %2795 = vst.msk [vmem:[#allocation2 + $0x1f0] sm:$0xff] %vm2732_vm2, %v6396_v42 }
 0x228   : > { %v2700_v51 = vmax.f32 %v2668_v61, 0.0  ;;  %v2261_v40 = vpop.f32.mrf.mxu3  ;;  %v2542_v49 = vpop.f32.mrf.mxu0  ;;  %v2077_v18 = vadd.f32 %v1983_v0, %v7136_v2  ;;  %2796 = vst.msk [vmem:[#allocation2 + $0x1f8] sm:$0xff] %vm2732_vm2, %v6396_v42 }
 0x229   : > { %2797 = vst.msk [vmem:[#allocation2 + $0x200] sm:$0xff] %vm2732_vm2, %v6396_v42 }
 0x22a   : > { %2806 = vst.msk [vmem:[#allocation2 + $0x28] sm:$0xff] %vm2732_vm2, %v2700_v51  ;;  %v2355_v2 = vadd.f32 %v2261_v40, %v2077_v18  ;;  %v5845_v18 = vld [vmem:[%s6504_s25 + $0x121] sm:$0xff] }
 0x22b   : > { %5943 = vmatmul.msk.f32.gmra.mxu0 %vm290_vm1, %v5909_v59  ;;  %2798 = vst.msk [vmem:[#allocation2 + $0x208] sm:$0xff] %vm2732_vm2, %v6396_v42 }
 0x22c   : > { %5811 = vmatmul.msk.f32.gmra.mxu2 %vm290_vm1, %v5777_v22  ;;  %v2633_v0 = vadd.f32 %v7555_v16, %v2355_v2  ;;  %2799 = vst.msk [vmem:[#allocation2 + $0x210] sm:$0xff] %vm2732_vm2, %v6396_v42 }
 0x22d   : > { %5877 = vmatmul.msk.f32.gmra.mxu3 %vm290_vm1, %v5843_v63  ;;  %2800 = vst.msk [vmem:[#allocation2 + $0x218] sm:$0xff] %vm2732_vm2, %v6396_v42 }
 0x22e   : > { %2801 = vst.msk [vmem:[#allocation2 + $0x220] sm:$0xff] %vm2732_vm2, %v6396_v42 }
 0x22f   : > { %v1986_v7 = vpop.f32.mrf.mxu2  ;;  %2802 = vst.msk [vmem:[#allocation2 + $0x228] sm:$0xff] %vm2732_vm2, %v6396_v42 }
 0x230   : > { %v2264_v19 = vpop.f32.mrf.mxu3  ;;  %v2078_v62 = vadd.f32 %v1986_v7, %v7149_v58  ;;  %v2545_v57 = vpop.f32.mrf.mxu0  ;;  %v5779_v7 = vld [vmem:[%s6504_s25 + $0x120] sm:$0xff]  ;;  %2803 = vst.msk [vmem:[#allocation2 + $0x230] sm:$0xff] %vm2732_vm2, %v6396_v42 }
 0x231   : > { %v2876_v52 = vld [vmem:[#allocation2 + $0x28] sm:$0xff]  ;;  %2804 = vst.msk [vmem:[#allocation2 + $0x238] sm:$0xff] %vm2732_vm2, %v6396_v42  ;;  %v6027_v42 = vld [vmem:[%s9122_s3 + $0x50] sm:$0xff] }
 0x232   : > { %5963 = vmatmul.msk.f32.gmra.mxu1 %vm2732_vm2, %v2876_v52  ;;  %v2356_v58 = vadd.f32 %v2264_v19, %v2078_v62  ;;  %v5911_v19 = vld [vmem:[%s6504_s25 + $0x122] sm:$0xff]  ;;  %v7662_v52 = vpop.f32.mrf.mxu1  ;;  %3475 = vmatpush.msrb.mxu3 %v6027_v42 }
 0x233   : > { %5944 = vmatmul.msk.f32.gmra.mxu0 %vm290_vm1, %v5910_v31  ;;  %v5782_v42 = vld [vmem:[%s6504_s25 + $0x140] sm:$0xff] }
 0x234   : > { %5812 = vmatmul.msk.f32.gmra.mxu2 %vm290_vm1, %v5778_v30  ;;  %v2634_v22 = vadd.f32 %v2542_v49, %v2356_v58 }
 0x235   : > { %5878 = vmatmul.msk.f32.gmra.mxu3 %vm290_vm1, %v5844_v12 }
 0x236   : > { %v2670_v49 = vadd.f32 %v7560_v1, %v2634_v22  ;;  %v5912_v22 = vld [vmem:[%s6504_s25 + $0x12a] sm:$0xff] }
 0x237   : > { %v1989_v61 = vpop.f32.mrf.mxu2 }
 0x238   : > { %v2079_v51 = vadd.f32 %v1989_v61, %v7161_v13  ;;  %v2267_v40 = vpop.f32.mrf.mxu3  ;;  %v2548_v63 = vpop.f32.mrf.mxu0  ;;  %v2669_v13 = vadd.f32 %v7560_v1, %v2633_v0  ;;  %v2702_v2 = vmax.f32 %v2670_v49, 0.0 }
 0x23a   : > { %v2357_v59 = vadd.f32 %v2267_v40, %v2079_v51  ;;  %v2701_v30 = vmax.f32 %v2669_v13, 0.0  ;;  %v5780_v51 = vld [vmem:[%s6504_s25 + $0x128] sm:$0xff]  ;;  %2808 = vst.msk [vmem:[#allocation2 + $0x48] sm:$0xff] %vm2732_vm2, %v2702_v2 }
 0x23b   : > { %5945 = vmatmul.msk.f32.gmra.mxu0 %vm290_vm1, %v5911_v19  ;;  %v5846_v40 = vld [vmem:[%s6504_s25 + $0x129] sm:$0xff] }
 0x23c   : > { %v2635_v16 = vadd.f32 %v2545_v57, %v2357_v59  ;;  %5813 = vmatmul.msk.f32.gmra.mxu2 %vm290_vm1, %v5779_v7  ;;  %2807 = vst.msk [vmem:[#allocation2 + $0x30] sm:$0xff] %vm2732_vm2, %v2701_v30  ;;  %v2872_v59 = vld [vmem:[%s9122_s3 + $0x10] sm:$0xff]  ;;  %v5847_v30 = vld [vmem:[%s6504_s25 + $0x139] sm:$0xff] }
 0x23d   : > { %5879 = vmatmul.msk.f32.gmra.mxu3 %vm290_vm1, %v5845_v18  ;;  %3229 = vmatpush.msrb.mxu2 %v2872_v59 }
 0x23e   : > { %v2671_v62 = vadd.f32 %v7560_v1, %v2635_v16  ;;  %v7692_v16 = vpop.f32.mrf.mxu1 }
 0x23f   : > { %v1992_v57 = vpop.f32.mrf.mxu2 }
 0x240   : > { %v2080_v12 = vadd.f32 %v1992_v57, %v7175_v20  ;;  %v2270_v31 = vpop.f32.mrf.mxu3  ;;  %v2551_v58 = vpop.f32.mrf.mxu0  ;;  %v2703_v61 = vmax.f32 %v2671_v62, 0.0  ;;  %v5781_v57 = vld [vmem:[%s6504_s25 + $0x138] sm:$0xff] }
 0x242   : > { %v2358_v0 = vadd.f32 %v2270_v31, %v2080_v12  ;;  %2809 = vst.msk [vmem:[#allocation2 + $0x50] sm:$0xff] %vm2732_vm2, %v2703_v61  ;;  %v5913_v31 = vld [vmem:[%s6504_s25 + $0x13a] sm:$0xff] }
 0x243   : > { %5946 = vmatmul.msk.f32.gmra.mxu0 %vm290_vm1, %v5912_v22  ;;  %v2877_v12 = vld [vmem:[#allocation2 + $0x30] sm:$0xff]  ;;  %v2878_v22 = vld [vmem:[#allocation2 + $0x48] sm:$0xff] }
 0x244   : > { %v2636_v20 = vadd.f32 %v2548_v63, %v2358_v0  ;;  %5814 = vmatmul.msk.f32.gmra.mxu2 %vm290_vm1, %v5780_v51  ;;  %5964 = vmatmul.msk.f32.gmra.mxu1 %vm2732_vm2, %v2877_v12 }
 0x245   : > { %5880 = vmatmul.msk.f32.gmra.mxu3 %vm290_vm1, %v5846_v40 }
 0x246   : > { %v2672_v63 = vadd.f32 %v7560_v1, %v2636_v20 }
 0x247   : > { %v1995_v7 = vpop.f32.mrf.mxu2 }
 0x248   : > { %v2704_v18 = vmax.f32 %v2672_v63, 0.0  ;;  %v2081_v19 = vadd.f32 %v1995_v7, %v7186_v21  ;;  %v2273_v13 = vpop.f32.mrf.mxu3  ;;  %v2554_v49 = vpop.f32.mrf.mxu0  ;;  %v6063_v21 = vld [vmem:[%s9122_s3 + $0x70] sm:$0xff]  ;;  %v5848_v63 = vld [vmem:[%s6504_s25 + $0x141] sm:$0xff] }
 0x249   : > { %3753 = vmatpush.msrb.mxu0 %v6063_v21  ;;  %v7710_v7 = vpop.f32.mrf.mxu1  ;;  %v2879_v12 = vld [vmem:[#allocation2 + $0x50] sm:$0xff] }
 0x24a   : > { %2810 = vst.msk [vmem:[#allocation2 + $0x68] sm:$0xff] %vm2732_vm2, %v2704_v18  ;;  %v2359_v62 = vadd.f32 %v2273_v13, %v2081_v19  ;;  %v5914_v18 = vld [vmem:[%s6504_s25 + $0x142] sm:$0xff]  ;;  %v5783_v21 = vld [vmem:[%s6504_s25 + $0x150] sm:$0xff] }
 0x24b   : > { %5947 = vmatmul.msk.f32.gmra.mxu0 %vm290_vm1, %v5913_v31 }
 0x24c   : > { %v2637_v2 = vadd.f32 %v2551_v58, %v2359_v62  ;;  %5815 = vmatmul.msk.f32.gmra.mxu2 %vm290_vm1, %v5781_v57  ;;  %5965 = vmatmul.msk.f32.gmra.mxu1 %vm2732_vm2, %v2878_v22 }
 0x24d   : > { %5881 = vmatmul.msk.f32.gmra.mxu3 %vm290_vm1, %v5847_v30 }
 0x24e   : > { %v2673_v61 = vadd.f32 %v7560_v1, %v2637_v2 }
 0x24f   : > { %v1998_v0 = vpop.f32.mrf.mxu2 }
 0x250   : > { %v2705_v51 = vmax.f32 %v2673_v61, 0.0  ;;  %v2082_v40 = vadd.f32 %v1998_v0, %v7197_v55  ;;  %v2276_v58 = vpop.f32.mrf.mxu3  ;;  %v2557_v20 = vpop.f32.mrf.mxu0  ;;  %v6099_v55 = vld [vmem:[%s9122_s3 + $0x90] sm:$0xff] }
 0x251   : > { %4031 = vmatpush.msrb.mxu1 %v6099_v55  ;;  %v5849_v61 = vld [vmem:[%s6504_s25 + $0x151] sm:$0xff] }
 0x252   : > { %2811 = vst.msk [vmem:[#allocation2 + $0x70] sm:$0xff] %vm2732_vm2, %v2705_v51  ;;  %v2360_v59 = vadd.f32 %v2276_v58, %v2082_v40  ;;  %v5915_v0 = vld [vmem:[%s6504_s25 + $0x152] sm:$0xff]  ;;  %v7727_v40 = vpop.f32.mrf.mxu1 }
 0x253   : > { %5948 = vmatmul.msk.f32.gmra.mxu0 %vm290_vm1, %v5914_v18  ;;  %v5784_v55 = vld [vmem:[%s6504_s25 + $0x158] sm:$0xff] }
 0x254   : > { %v2638_v19 = vadd.f32 %v2554_v49, %v2360_v59  ;;  %5816 = vmatmul.msk.f32.gmra.mxu2 %vm290_vm1, %v5782_v42  ;;  %5966 = vmatmul.msk.f32.gmra.mxu1 %vm2732_vm2, %v2879_v12 }
 0x255   : > { %5882 = vmatmul.msk.f32.gmra.mxu3 %vm290_vm1, %v5848_v63 }
 0x256   : > { %v2674_v13 = vadd.f32 %v7560_v1, %v2638_v19 }
 0x257   : > { %v2001_v62 = vpop.f32.mrf.mxu2 }
 0x258   : > { %v2706_v57 = vmax.f32 %v2674_v13, 0.0  ;;  %v2083_v30 = vadd.f32 %v2001_v62, %v7208_v25  ;;  %v2279_v49 = vpop.f32.mrf.mxu3  ;;  %v2560_v31 = vpop.f32.mrf.mxu0  ;;  %v1805_v25 = vadd.f32 %v7334_v35, %v7215_v46  ;;  %v5850_v13 = vld [vmem:[%s6504_s25 + $0x159] sm:$0xff]  ;;  %v1806_v35 = vadd.f32 %v7349_v41, %v7226_v50 }
 0x259   : > { %v5916_v62 = vld [vmem:[%s6504_s25 + $0x15a] sm:$0xff]  ;;  %v1807_v41 = vadd.f32 %v7361_v47, %v7237_v24  ;;  %v1808_v47 = vadd.f32 %v7374_v5, %v7248_v39  ;;  %v1809_v5 = vadd.f32 %v7390_v60, %v7262_v45  ;;  %v2871_v60 = vld [vmem:[%s9122_s3 + $0x8] sm:$0xff] }
 0x25a   : > { %2812 = vst.msk [vmem:[#allocation2 + $0x88] sm:$0xff] %vm2732_vm2, %v2706_v57  ;;  %v2361_v2 = vadd.f32 %v2279_v49, %v2083_v30  ;;  %v7746_v30 = vpop.f32.mrf.mxu1  ;;  %3230 = vmatpush.msrb.mxu2 %v2871_v60 }
 0x25b   : > { %5949 = vmatmul.msk.f32.gmra.mxu0 %vm290_vm1, %v5915_v0 }
 0x25c   : > { %v2639_v51 = vadd.f32 %v2557_v20, %v2361_v2  ;;  %5817 = vmatmul.msk.f32.gmra.mxu2 %vm290_vm1, %v5783_v21  ;;  %v2880_v20 = vld [vmem:[#allocation2 + $0x68] sm:$0xff] }
 0x25d   : > { %5883 = vmatmul.msk.f32.gmra.mxu3 %vm290_vm1, %v5849_v61  ;;  %5967 = vmatmul.msk.f32.gmra.mxu1 %vm2732_vm2, %v2880_v20 }
 0x25e   : > { %v2675_v58 = vadd.f32 %v7560_v1, %v2639_v51  ;;  %v5785_v51 = vld [vmem:[%s6504_s25 + $0x168] sm:$0xff] }
 0x25f   : > { %v2004_v22 = vpop.f32.mrf.mxu2 }
 0x260   : > { %v2707_v59 = vmax.f32 %v2675_v58, 0.0  ;;  %v2084_v42 = vadd.f32 %v2004_v22, %v1805_v25  ;;  %v2282_v63 = vpop.f32.mrf.mxu3  ;;  %v2563_v18 = vpop.f32.mrf.mxu0  ;;  %v5851_v25 = vld [vmem:[%s6504_s25 + $0x169] sm:$0xff] }
 0x261   : > { %v5917_v58 = vld [vmem:[%s6504_s25 + $0x16a] sm:$0xff] }
 0x262   : > { %2813 = vst.msk [vmem:[#allocation2 + $0x90] sm:$0xff] %vm2732_vm2, %v2707_v59  ;;  %v2362_v19 = vadd.f32 %v2282_v63, %v2084_v42 }
 0x263   : > { %5950 = vmatmul.msk.f32.gmra.mxu0 %vm290_vm1, %v5916_v62  ;;  %v5786_v62 = vld [vmem:[%s6504_s25 + $0x170] sm:$0xff] }
 0x264   : > { %v2640_v46 = vadd.f32 %v2560_v31, %v2362_v19  ;;  %5818 = vmatmul.msk.f32.gmra.mxu2 %vm290_vm1, %v5784_v55  ;;  %v2881_v31 = vld [vmem:[#allocation2 + $0x70] sm:$0xff]  ;;  %v7759_v19 = vpop.f32.mrf.mxu1 }
 0x265   : > { %5884 = vmatmul.msk.f32.gmra.mxu3 %vm290_vm1, %v5850_v13  ;;  %5968 = vmatmul.msk.f32.gmra.mxu1 %vm2732_vm2, %v2881_v31 }
 0x266   : > { %v2676_v57 = vadd.f32 %v7560_v1, %v2640_v46  ;;  %v5852_v46 = vld [vmem:[%s6504_s25 + $0x171] sm:$0xff] }
 0x267   : > { %v2007_v49 = vpop.f32.mrf.mxu2 }
 0x268   : > { %v2708_v12 = vmax.f32 %v2676_v57, 0.0  ;;  %v2085_v2 = vadd.f32 %v2007_v49, %v1806_v35  ;;  %v2285_v21 = vpop.f32.mrf.mxu3  ;;  %v2566_v61 = vpop.f32.mrf.mxu0  ;;  %v5918_v35 = vld [vmem:[%s6504_s25 + $0x172] sm:$0xff] }
 0x269   : > { %v2883_v31 = vld [vmem:[#allocation2 + $0x90] sm:$0xff] }
 0x26a   : > { %2814 = vst.msk [vmem:[#allocation2 + $0xa8] sm:$0xff] %vm2732_vm2, %v2708_v12  ;;  %v2363_v0 = vadd.f32 %v2285_v21, %v2085_v2 }
 0x26b   : > { %5951 = vmatmul.msk.f32.gmra.mxu0 %vm290_vm1, %v5917_v58 }
 0x26c   : > { %v2641_v50 = vadd.f32 %v2563_v18, %v2363_v0  ;;  %5819 = vmatmul.msk.f32.gmra.mxu2 %vm290_vm1, %v5785_v51  ;;  %v2882_v18 = vld [vmem:[#allocation2 + $0x88] sm:$0xff]  ;;  %v5787_v51 = vld [vmem:[%s6504_s25 + $0x180] sm:$0xff]  ;;  %v7775_v58 = vpop.f32.mrf.mxu1 }
 0x26d   : > { %5885 = vmatmul.msk.f32.gmra.mxu3 %vm290_vm1, %v5851_v25  ;;  %5969 = vmatmul.msk.f32.gmra.mxu1 %vm2732_vm2, %v2882_v18  ;;  %v5853_v25 = vld [vmem:[%s6504_s25 + $0x181] sm:$0xff] }
 0x26e   : > { %v2677_v22 = vadd.f32 %v7560_v1, %v2641_v50  ;;  %v5919_v50 = vld [vmem:[%s6504_s25 + $0x182] sm:$0xff] }
 0x26f   : > { %v2010_v59 = vpop.f32.mrf.mxu2 }
 0x270   : > { %v2709_v42 = vmax.f32 %v2677_v22, 0.0  ;;  %v2086_v63 = vadd.f32 %v2010_v59, %v1807_v41  ;;  %v2288_v20 = vpop.f32.mrf.mxu3  ;;  %v2569_v55 = vpop.f32.mrf.mxu0 }
 0x272   : > { %2815 = vst.msk [vmem:[#allocation2 + $0xb0] sm:$0xff] %vm2732_vm2, %v2709_v42  ;;  %v2364_v13 = vadd.f32 %v2288_v20, %v2086_v63  ;;  %v2884_v20 = vld [vmem:[#allocation2 + $0xa8] sm:$0xff] }
 0x273   : > { %5952 = vmatmul.msk.f32.gmra.mxu0 %vm290_vm1, %v5918_v35 }
 0x274   : > { %v2642_v24 = vadd.f32 %v2566_v61, %v2364_v13  ;;  %5820 = vmatmul.msk.f32.gmra.mxu2 %vm290_vm1, %v5786_v62  ;;  %v5788_v13 = vld [vmem:[%s6504_s25 + $0x188] sm:$0xff]  ;;  %v7790_v45 = vpop.f32.mrf.mxu1 }
 0x275   : > { %5886 = vmatmul.msk.f32.gmra.mxu3 %vm290_vm1, %v5852_v46  ;;  %5970 = vmatmul.msk.f32.gmra.mxu1 %vm2732_vm2, %v2883_v31  ;;  %v5854_v62 = vld [vmem:[%s6504_s25 + $0x189] sm:$0xff] }
 0x276   : > { %v2678_v57 = vadd.f32 %v7560_v1, %v2642_v24  ;;  %v5920_v46 = vld [vmem:[%s6504_s25 + $0x18a] sm:$0xff] }
 0x277   : > { %v2013_v49 = vpop.f32.mrf.mxu2  ;;  %v6026_v24 = vld [vmem:[%s9122_s3 + $0x48] sm:$0xff] }
 0x278   : > { %v2710_v12 = vmax.f32 %v2678_v57, 0.0  ;;  %v2087_v2 = vadd.f32 %v2013_v49, %v1808_v47  ;;  %v2291_v21 = vpop.f32.mrf.mxu3  ;;  %v2572_v0 = vpop.f32.mrf.mxu0  ;;  %v6062_v47 = vld [vmem:[%s9122_s3 + $0x68] sm:$0xff]  ;;  %v1810_v57 = vadd.f32 %v7402_v56, %v7274_v36  ;;  %3476 = vmatpush.msrb.mxu3 %v6026_v24  ;;  %v5921_v36 = vld [vmem:[%s6504_s25 + $0x19a] sm:$0xff] }
 0x279   : > { %3754 = vmatpush.msrb.mxu0 %v6062_v47  ;;  %v6098_v24 = vld [vmem:[%s9122_s3 + $0x88] sm:$0xff]  ;;  %v1812_v47 = vadd.f32 %v7449_v33, %v7296_v10 }
 0x27a   : > { %2816 = vst.msk [vmem:[#allocation2 + $0xc8] sm:$0xff] %vm2732_vm2, %v2710_v12  ;;  %v2365_v61 = vadd.f32 %v2291_v21, %v2087_v2  ;;  %4032 = vmatpush.msrb.mxu1 %v6098_v24  ;;  %v3607_v33 = vld [vmem:[#allocation2 + $0x27] sm:$0xff] }
 0x27b   : > { %5953 = vmatmul.msk.f32.gmra.mxu0 %vm290_vm1, %v5919_v50  ;;  %v5855_v50 = vld [vmem:[%s6504_s25 + $0x199] sm:$0xff] }
 0x27c   : > { %v2643_v39 = vadd.f32 %v2569_v55, %v2365_v61  ;;  %5821 = vmatmul.msk.f32.gmra.mxu2 %vm290_vm1, %v5787_v51 }
 0x27d   : > { %5887 = vmatmul.msk.f32.gmra.mxu3 %vm290_vm1, %v5853_v25  ;;  %5971 = vmatmul.msk.f32.gmra.mxu1 %vm2732_vm2, %v2884_v20  ;;  %v5789_v25 = vld [vmem:[%s6504_s25 + $0x198] sm:$0xff] }
 0x27e   : > { %v2679_v41 = vadd.f32 %v7560_v1, %v2643_v39  ;;  %v2870_v39 = vld [vmem:[%s9122_s3] sm:$0xff] }
 0x27f   : > { %v2016_v22 = vpop.f32.mrf.mxu2  ;;  %3231 = vmatpush.msrb.mxu2 %v2870_v39 }
 0x280   : > { %v2711_v59 = vmax.f32 %v2679_v41, 0.0  ;;  %v2088_v42 = vadd.f32 %v2016_v22, %v1809_v5  ;;  %v2294_v63 = vpop.f32.mrf.mxu3  ;;  %v2575_v18 = vpop.f32.mrf.mxu0  ;;  %v6025_v5 = vld [vmem:[%s9122_s3 + $0x40] sm:$0xff]  ;;  %v1811_v22 = vadd.f32 %v7417_v26, %v7285_v9 }
 0x281   : > { %v6061_v41 = vld [vmem:[%s9122_s3 + $0x60] sm:$0xff]  ;;  %3477 = vmatpush.msrb.mxu3 %v6025_v5 }
 0x282   : > { %2817 = vst.msk [vmem:[#allocation2 + $0xd0] sm:$0xff] %vm2732_vm2, %v2711_v59  ;;  %v2366_v55 = vadd.f32 %v2294_v63, %v2088_v42  ;;  %v7827_v42 = vpop.f32.mrf.mxu1  ;;  %3755 = vmatpush.msrb.mxu0 %v6061_v41  ;;  %v5790_v26 = vld [vmem:[%s6504_s25 + $0x1a0] sm:$0xff] }
 0x283   : > { %5954 = vmatmul.msk.f32.gmra.mxu0 %vm290_vm1, %v5920_v46  ;;  %v5856_v46 = vld [vmem:[%s6504_s25 + $0x1a1] sm:$0xff] }
 0x284   : > { %v2644_v35 = vadd.f32 %v2572_v0, %v2366_v55  ;;  %5822 = vmatmul.msk.f32.gmra.mxu2 %vm290_vm1, %v5788_v13  ;;  %v2885_v0 = vld [vmem:[#allocation2 + $0xb0] sm:$0xff]  ;;  %v2886_v13 = vld [vmem:[#allocation2 + $0xc8] sm:$0xff] }
 0x285   : > { %5888 = vmatmul.msk.f32.gmra.mxu3 %vm290_vm1, %v5854_v62  ;;  %5972 = vmatmul.msk.f32.gmra.mxu1 %vm2732_vm2, %v2885_v0 }
 0x286   : > { %v2680_v49 = vadd.f32 %v7560_v1, %v2644_v35  ;;  %v5922_v35 = vld [vmem:[%s6504_s25 + $0x1a2] sm:$0xff]  ;;  %s6348_s25 = scalar_lea.hbm %s6347_s6, 256 }
 0x287   : > { %v2019_v12 = vpop.f32.mrf.mxu2  ;;  %p6349_p11 = scmp.ne.s32.totalorder %s6347_s6, %s6348_s25  ;;  %p6354_p1 = scmp.lt.s32.totalorder %s6352_s9, %s6348_s25 }
 0x288   : > { %v2712_v2 = vmax.f32 %v2680_v49, 0.0  ;;  %v2089_v21 = vadd.f32 %v2019_v12, %v1810_v57  ;;  %v2297_v31 = vpop.f32.mrf.mxu3  ;;  %v2578_v61 = vpop.f32.mrf.mxu0 }
 0x289   : > { %v2887_v0 = vld [vmem:[#allocation2 + $0xd0] sm:$0xff]  ;;  %p6350_p12 = pnand %p6349_p11, %p6467_p5  ;;  %p6355_p2 = por %p6354_p1, %p6353_p0 }
 0x28a   : > { %2818 = vst.msk [vmem:[#allocation2 + $0xe8] sm:$0xff] %vm2732_vm2, %v2712_v2  ;;  %v2367_v51 = vadd.f32 %v2297_v31, %v2089_v21  ;;  %v7843_v31 = vpop.f32.mrf.mxu1 }
 0x28b   : > { %5955 = vmatmul.msk.f32.gmra.mxu0 %vm290_vm1, %v5921_v36  ;;  %v1813_v36 = vadd.f32 %v7486_v8, %v7305_v27  ;;  %v3608_v8 = vld [vmem:[#allocation2 + $0x2f] sm:$0xff]  ;;  %p6351_p13 = pneg %p6350_p12 }
 0x28c   : > { %v2645_v56 = vadd.f32 %v2575_v18, %v2367_v51  ;;  %5823 = vmatmul.msk.f32.gmra.mxu2 %vm290_vm1, %v5789_v25  ;;  %v2838_v25 = vld [vmem:[#allocation2 + $0x7] sm:$0xff] }
 0x28d   : > { %5889 = vmatmul.msk.f32.gmra.mxu3 %vm290_vm1, %v5855_v50  ;;  %5973 = vmatmul.msk.f32.gmra.mxu1 %vm2732_vm2, %v2886_v13  ;;  %v3329_v50 = vld [vmem:[#allocation2 + $0x9] sm:$0xff]  ;;  %p6356_p3 = pnand %p6355_p2, %p6351_p13 }
 0x28e   : > { %v2681_v59 = vadd.f32 %v7560_v1, %v2645_v56 }
 0x28f   : > { %v2022_v63 = vpop.f32.mrf.mxu2 }
 0x290   : > { %v2713_v20 = vmax.f32 %v2681_v59, 0.0  ;;  %v2090_v18 = vadd.f32 %v2022_v63, %v1811_v22  ;;  %v2300_v55 = vpop.f32.mrf.mxu3  ;;  %v2581_v62 = vpop.f32.mrf.mxu0 }
 0x291   : > { %v2888_v59 = vld [vmem:[#allocation2 + $0xe8] sm:$0xff] }
 0x292   : > { %2819 = vst.msk [vmem:[#allocation2 + $0xf0] sm:$0xff] %vm2732_vm2, %v2713_v20  ;;  %v2368_v9 = vadd.f32 %v2300_v55, %v2090_v18  ;;  %v2839_v20 = vld [vmem:[#allocation2 + $0xf] sm:$0xff]  ;;  %v7854_v55 = vpop.f32.mrf.mxu1 }
 0x293   : > { %5956 = vmatmul.msk.f32.gmra.mxu0 %vm290_vm1, %v5922_v35  ;;  %v3330_v18 = vld [vmem:[#allocation2 + $0x11] sm:$0xff] }
 0x294   : > { %v2646_v60 = vadd.f32 %v2578_v61, %v2368_v9  ;;  %5824 = vmatmul.msk.f32.gmra.mxu2 %vm290_vm1, %v5790_v26  ;;  %v1814_v9 = vadd.f32 %v7518_v14, %v7314_v4  ;;  %v7872_v4 = vld [vmem:[#allocation2 + $0x47] sm:$0xff]  ;;  %v1815_v14 = vadd.f32 %v7551_v38, %v7323_v15  ;;  %v7891_v38 = vld [vmem:[#allocation2 + $0x4f] sm:$0xff] }
 0x295   : > { %5890 = vmatmul.msk.f32.gmra.mxu3 %vm290_vm1, %v5856_v46  ;;  %5974 = vmatmul.msk.f32.gmra.mxu1 %vm2732_vm2, %v2887_v0 }
 0x296   : > { %v2682_v57 = vadd.f32 %v7560_v1, %v2646_v60 }
 0x297   : > { %v2025_v49 = vpop.f32.mrf.mxu2 }
 0x298   : > { %v2714_v12 = vmax.f32 %v2682_v57, 0.0  ;;  %v2091_v2 = vadd.f32 %v2025_v49, %v1812_v47  ;;  %v2303_v21 = vpop.f32.mrf.mxu3  ;;  %v2584_v61 = vpop.f32.mrf.mxu0 }
 0x299   : > { %v2889_v60 = vld [vmem:[#allocation2 + $0xf0] sm:$0xff] }
 0x29a   : > { %2820 = vst.msk [vmem:[#allocation2 + $0x108] sm:$0xff] %vm2732_vm2, %v2714_v12  ;;  %v2369_v51 = vadd.f32 %v2303_v21, %v2091_v2  ;;  %v7864_v47 = vpop.f32.mrf.mxu1  ;;  %v7867_v12 = vld [vmem:[#allocation2 + $0x29] sm:$0xff] }
 0x29b   : > { %6065 = vmatmul.msk.f32.vlgmr.msrb.gmra.mxu0 %vm2732_vm2, %v3607_v33 }
 0x29c   : > { %v2647_v10 = vadd.f32 %v2581_v62, %v2369_v51  ;;  %5993 = vmatmul.msk.f32.vlgmr.msrb.gmra.mxu2 %vm2732_vm2, %v2838_v25 }
 0x29d   : > { %6029 = vmatmul.msk.f32.vlgmr.msrb.gmra.mxu3 %vm2732_vm2, %v3329_v50  ;;  %5975 = vmatmul.msk.f32.gmra.mxu1 %vm2732_vm2, %v2888_v59 }
 0x29e   : > { %v2683_v56 = vadd.f32 %v7560_v1, %v2647_v10 }
 0x29f   : > { %v2028_v39 = vpop.f32.mrf.mxu2 }
 0x2a0   : > { %v2715_v5 = vmax.f32 %v2683_v56, 0.0  ;;  %v2092_v41 = vadd.f32 %v2028_v39, %v1813_v36  ;;  %v2306_v22 = vpop.f32.mrf.mxu3  ;;  %v2587_v13 = vpop.f32.mrf.mxu0  ;;  %v7884_v36 = vld [vmem:[#allocation2 + $0x31] sm:$0xff]  ;;  %v1816_v39 = vadd.f32 %v7594_v37, %v7332_v34  ;;  %v7909_v34 = vld [vmem:[#allocation2 + $0x67] sm:$0xff]  ;;  %v1817_v37 = vadd.f32 %v7626_v17, %v7346_v28 }
 0x2a1   : > { %v7879_v51 = vld [vmem:[#allocation2 + $0x108] sm:$0xff] }
 0x2a2   : > { %2821 = vst.msk [vmem:[#allocation2 + $0x110] sm:$0xff] %vm2732_vm2, %v2715_v5  ;;  %v2370_v63 = vadd.f32 %v2306_v22, %v2092_v41  ;;  %v7886_v56 = vpop.f32.mrf.mxu1  ;;  %v7929_v17 = vld [vmem:[#allocation2 + $0x6f] sm:$0xff] }
 0x2a3   : > { %6066 = vmatmul.msk.f32.gmra.mxu0 %vm2732_vm2, %v3608_v8 }
 0x2a4   : > { %v2648_v27 = vadd.f32 %v2584_v61, %v2370_v63  ;;  %5994 = vmatmul.msk.f32.gmra.mxu2 %vm2732_vm2, %v2839_v20 }
 0x2a5   : > { %6030 = vmatmul.msk.f32.gmra.mxu3 %vm2732_vm2, %v3330_v18  ;;  %5976 = vmatmul.msk.f32.gmra.mxu1 %vm2732_vm2, %v2889_v60 }
 0x2a6   : > { %v2684_v62 = vadd.f32 %v7560_v1, %v2648_v27  ;;  %v7903_v27 = vld [vmem:[#allocation2 + $0x49] sm:$0xff] }
 0x2a7   : > { %v2031_v46 = vpop.f32.mrf.mxu2 }
 0x2a8   : > { %v2716_v26 = vmax.f32 %v2684_v62, 0.0  ;;  %v2309_v35 = vpop.f32.mrf.mxu3  ;;  %v2093_v24 = vadd.f32 %v2031_v46, %v1814_v9  ;;  %v2590_v49 = vpop.f32.mrf.mxu0 }
 0x2a9   : > { %v7898_v59 = vld [vmem:[#allocation2 + $0x110] sm:$0xff] }
 0x2aa   : > { %2822 = vst.msk [vmem:[#allocation2 + $0x128] sm:$0xff] %vm2732_vm2, %v2716_v26  ;;  %v2371_v57 = vadd.f32 %v2309_v35, %v2093_v24 }
 0x2ab   : > { %6067 = vmatmul.msk.f32.gmra.mxu0 %vm2732_vm2, %v7872_v4 }
 0x2ac   : > { %v2649_v2 = vadd.f32 %v2587_v13, %v2371_v57  ;;  %5995 = vmatmul.msk.f32.gmra.mxu2 %vm2732_vm2, %v3607_v33 }
 0x2ad   : > { %6031 = vmatmul.msk.f32.gmra.mxu3 %vm2732_vm2, %v7867_v12  ;;  %5977 = vmatmul.msk.f32.gmra.mxu1 %vm2732_vm2, %v7879_v51 }
 0x2ae   : > { %v2685_v21 = vadd.f32 %v7560_v1, %v2649_v2  ;;  %v7923_v2 = vld [vmem:[#allocation2 + $0x51] sm:$0xff] }
 0x2af   : > { %v2034_v0 = vpop.f32.mrf.mxu2  ;;  %v7915_v62 = vpop.f32.mrf.mxu1 }
 0x2b0   : > { %v2312_v61 = vpop.f32.mrf.mxu3  ;;  %v2717_v25 = vmax.f32 %v2685_v21, 0.0  ;;  %v2094_v50 = vadd.f32 %v2034_v0, %v1815_v14  ;;  %v2593_v33 = vpop.f32.mrf.mxu0  ;;  %v1818_v14 = vadd.f32 %v7662_v52, %v7357_v32  ;;  %v7949_v52 = vld [vmem:[#allocation2 + $0x87] sm:$0xff] }
 0x2b1   : > { %v7918_v35 = vld [vmem:[#allocation2 + $0x128] sm:$0xff] }
 0x2b2   : > { %2823 = vst.msk [vmem:[#allocation2 + $0x130] sm:$0xff] %vm2732_vm2, %v2717_v25  ;;  %v2372_v10 = vadd.f32 %v2312_v61, %v2094_v50 }
 0x2b3   : > { %6068 = vmatmul.msk.f32.gmra.mxu0 %vm2732_vm2, %v7891_v38 }
 0x2b4   : > { %v2650_v15 = vadd.f32 %v2590_v49, %v2372_v10  ;;  %5996 = vmatmul.msk.f32.gmra.mxu2 %vm2732_vm2, %v3608_v8 }
 0x2b5   : > { %6032 = vmatmul.msk.f32.gmra.mxu3 %vm2732_vm2, %v7884_v36  ;;  %5978 = vmatmul.msk.f32.gmra.mxu1 %vm2732_vm2, %v7898_v59 }
 0x2b6   : > { %v2686_v5 = vadd.f32 %v7560_v1, %v2650_v15 }
 0x2b7   : > { %v2037_v41 = vpop.f32.mrf.mxu2 }
 0x2b8   : > { %v2315_v22 = vpop.f32.mrf.mxu3  ;;  %v2718_v63 = vmax.f32 %v2686_v5, 0.0  ;;  %v2095_v20 = vadd.f32 %v2037_v41, %v1816_v39  ;;  %v2596_v13 = vpop.f32.mrf.mxu0  ;;  %v7943_v5 = vld [vmem:[#allocation2 + $0x69] sm:$0xff]  ;;  %v1819_v41 = vadd.f32 %v7692_v16, %v7368_v23  ;;  %v6097_v23 = vld [vmem:[%s9122_s3 + $0x80] sm:$0xff] }
 0x2b9   : > { %v7938_v50 = vld [vmem:[#allocation2 + $0x130] sm:$0xff]  ;;  %4033 = vmatpush.msrb.mxu1 %v6097_v23 }
 0x2ba   : > { %2824 = vst.msk [vmem:[#allocation2 + $0x148] sm:$0xff] %vm2732_vm2, %v2718_v63  ;;  %v2373_v18 = vadd.f32 %v2315_v22, %v2095_v20  ;;  %v8006_v23 = vld [vmem:[#allocation2 + $0x91] sm:$0xff] }
 0x2bb   : > { %6069 = vmatmul.msk.f32.gmra.mxu0 %vm2732_vm2, %v7909_v34 }
 0x2bc   : > { %v2651_v8 = vadd.f32 %v2593_v33, %v2373_v18  ;;  %5997 = vmatmul.msk.f32.gmra.mxu2 %vm2732_vm2, %v7872_v4 }
 0x2bd   : > { %6033 = vmatmul.msk.f32.gmra.mxu3 %vm2732_vm2, %v7903_v27  ;;  %5979 = vmatmul.msk.f32.gmra.mxu1 %vm2732_vm2, %v7918_v35 }
 0x2be   : > { %v2687_v9 = vadd.f32 %v7560_v1, %v2651_v8 }
 0x2bf   : > { %v2040_v26 = vpop.f32.mrf.mxu2 }
 0x2c0   : > { %v2318_v46 = vpop.f32.mrf.mxu3  ;;  %v2719_v60 = vmax.f32 %v2687_v9, 0.0  ;;  %v2096_v24 = vadd.f32 %v2040_v26, %v1817_v37  ;;  %v2599_v49 = vpop.f32.mrf.mxu0 }
 0x2c1   : > { %v7936_v25 = vpop.f32.mrf.mxu1 }
 0x2c2   : > { %2825 = vst.msk [vmem:[#allocation2 + $0x150] sm:$0xff] %vm2732_vm2, %v2719_v60  ;;  %v2374_v57 = vadd.f32 %v2318_v46, %v2096_v24  ;;  %v7963_v46 = vld [vmem:[#allocation2 + $0x71] sm:$0xff]  ;;  %v1820_v24 = vadd.f32 %v7710_v7, %v7379_v44  ;;  %v7992_v7 = vld [vmem:[#allocation2 + $0xa7] sm:$0xff] }
 0x2c3   : > { %6070 = vmatmul.msk.f32.gmra.mxu0 %vm2732_vm2, %v7929_v17  ;;  %v7972_v60 = vld [vmem:[#allocation2 + $0x8f] sm:$0xff] }
 0x2c4   : > { %v2652_v28 = vadd.f32 %v2596_v13, %v2374_v57  ;;  %5998 = vmatmul.msk.f32.gmra.mxu2 %vm2732_vm2, %v7891_v38  ;;  %v7958_v13 = vld [vmem:[#allocation2 + $0x148] sm:$0xff] }
 0x2c5   : > { %6034 = vmatmul.msk.f32.gmra.mxu3 %vm2732_vm2, %v7923_v2  ;;  %5980 = vmatmul.msk.f32.gmra.mxu1 %vm2732_vm2, %v7938_v50 }
 0x2c6   : > { %v2688_v21 = vadd.f32 %v7560_v1, %v2652_v28 }
 0x2c7   : > { %v2043_v0 = vpop.f32.mrf.mxu2 }
 0x2c8   : > { %v2321_v61 = vpop.f32.mrf.mxu3  ;;  %v2720_v10 = vmax.f32 %v2688_v21, 0.0  ;;  %v2097_v33 = vadd.f32 %v2043_v0, %v1818_v14  ;;  %v2602_v39 = vpop.f32.mrf.mxu0 }
 0x2c9   : > { %v7956_v18 = vpop.f32.mrf.mxu1  ;;  %v7981_v21 = vld [vmem:[#allocation2 + $0x150] sm:$0xff] }
 0x2ca   : > { %2826 = vst.msk [vmem:[#allocation2 + $0x168] sm:$0xff] %vm2732_vm2, %v2720_v10  ;;  %v2375_v15 = vadd.f32 %v2321_v61, %v2097_v33 }
 0x2cb   : > { %6071 = vmatmul.msk.f32.gmra.mxu0 %vm2732_vm2, %v7949_v52 }
 0x2cc   : > { %v2653_v32 = vadd.f32 %v2599_v49, %v2375_v15  ;;  %5999 = vmatmul.msk.f32.gmra.mxu2 %vm2732_vm2, %v7909_v34  ;;  %v7986_v15 = vld [vmem:[#allocation2 + $0x89] sm:$0xff] }
 0x2cd   : > { %6035 = vmatmul.msk.f32.gmra.mxu3 %vm2732_vm2, %v7943_v5  ;;  %5981 = vmatmul.msk.f32.gmra.mxu1 %vm2732_vm2, %v7958_v13 }
 0x2ce   : > { %v2689_v22 = vadd.f32 %v7560_v1, %v2653_v32 }
 0x2cf   : > { %v2046_v63 = vpop.f32.mrf.mxu2 }
 0x2d0   : > { %v2324_v20 = vpop.f32.mrf.mxu3  ;;  %v2721_v8 = vmax.f32 %v2689_v22, 0.0  ;;  %v2098_v37 = vadd.f32 %v2046_v63, %v1819_v41  ;;  %v2605_v26 = vpop.f32.mrf.mxu0 }
 0x2d1   : > { %v7979_v14 = vpop.f32.mrf.mxu1 }
 0x2d2   : > { %2827 = vst.msk [vmem:[#allocation2 + $0x170] sm:$0xff] %vm2732_vm2, %v2721_v8  ;;  %v2376_v9 = vadd.f32 %v2324_v20, %v2098_v37  ;;  %v8001_v20 = vld [vmem:[#allocation2 + $0x168] sm:$0xff] }
 0x2d3   : > { %6072 = vmatmul.msk.f32.gmra.mxu0 %vm2732_vm2, %v7972_v60 }
 0x2d4   : > { %v2654_v16 = vadd.f32 %v2602_v39, %v2376_v9  ;;  %6000 = vmatmul.msk.f32.gmra.mxu2 %vm2732_vm2, %v7929_v17  ;;  %v1821_v39 = vadd.f32 %v7727_v40, %v7388_v6  ;;  %v8012_v40 = vld [vmem:[#allocation2 + $0xaf] sm:$0xff] }
 0x2d5   : > { %6036 = vmatmul.msk.f32.gmra.mxu3 %vm2732_vm2, %v7963_v46  ;;  %5982 = vmatmul.msk.f32.gmra.mxu1 %vm2732_vm2, %v7981_v21 }
 0x2d6   : > { %v2690_v57 = vadd.f32 %v7560_v1, %v2654_v16  ;;  %v1822_v16 = vadd.f32 %v7746_v30, %v7399_v3  ;;  %v1823_v30 = vadd.f32 %v7759_v19, %v7410_v54  ;;  %v8051_v54 = vld [vmem:[#allocation2 + $0xb1] sm:$0xff] }
 0x2d7   : > { %v2049_v49 = vpop.f32.mrf.mxu2 }
 0x2d8   : > { %v2327_v28 = vpop.f32.mrf.mxu3  ;;  %v2722_v0 = vmax.f32 %v2690_v57, 0.0  ;;  %v2099_v61 = vadd.f32 %v2049_v49, %v1820_v24  ;;  %v2608_v33 = vpop.f32.mrf.mxu0 }
 0x2da   : > { %2828 = vst.msk [vmem:[#allocation2 + $0x188] sm:$0xff] %vm2732_vm2, %v2722_v0  ;;  %v2377_v10 = vadd.f32 %v2327_v28, %v2099_v61  ;;  %v7999_v63 = vpop.f32.mrf.mxu1  ;;  %v8021_v0 = vld [vmem:[#allocation2 + $0x170] sm:$0xff] }
 0x2db   : > { %6073 = vmatmul.msk.f32.gmra.mxu0 %vm2732_vm2, %v7992_v7 }
 0x2dc   : > { %v2655_v44 = vadd.f32 %v2605_v26, %v2377_v10  ;;  %6001 = vmatmul.msk.f32.gmra.mxu2 %vm2732_vm2, %v7949_v52 }
 0x2dd   : > { %6037 = vmatmul.msk.f32.gmra.mxu3 %vm2732_vm2, %v7986_v15  ;;  %5983 = vmatmul.msk.f32.gmra.mxu1 %vm2732_vm2, %v8001_v20 }
 0x2de   : > { %v2691_v32 = vadd.f32 %v7560_v1, %v2655_v44 }
 0x2df   : > { %v2052_v41 = vpop.f32.mrf.mxu2 }
 0x2e0   : > { %v2330_v22 = vpop.f32.mrf.mxu3  ;;  %v2723_v8 = vmax.f32 %v2691_v32, 0.0  ;;  %v2100_v37 = vadd.f32 %v2052_v41, %v1821_v39  ;;  %v2611_v26 = vpop.f32.mrf.mxu0  ;;  %v8026_v39 = vld [vmem:[#allocation2 + $0xa9] sm:$0xff]  ;;  %v8041_v32 = vld [vmem:[%s9121_s2] ss:$0 sm:$0xff] }
 0x2e2   : > { %2829 = vst.msk [vmem:[#allocation2 + $0x190] sm:$0xff] %vm2732_vm2, %v2723_v8  ;;  %v2378_v9 = vadd.f32 %v2330_v22, %v2100_v37  ;;  %v8019_v28 = vpop.f32.mrf.mxu1 }
 0x2e3   : > { %6074 = vmatmul.msk.f32.gmra.mxu0 %vm2732_vm2, %v8012_v40 }
 0x2e4   : > { %v2656_v6 = vadd.f32 %v2608_v33, %v2378_v9  ;;  %6002 = vmatmul.msk.f32.gmra.mxu2 %vm2732_vm2, %v7972_v60  ;;  %v8046_v9 = vld [vmem:[#allocation2 + $0x188] sm:$0xff] }
 0x2e5   : > { %6038 = vmatmul.msk.f32.gmra.mxu3 %vm2732_vm2, %v8006_v23  ;;  %5984 = vmatmul.msk.f32.gmra.mxu1 %vm2732_vm2, %v8021_v0 }
 0x2e6   : > { %v2692_v24 = vadd.f32 %v7560_v1, %v2656_v6  ;;  %v8032_v1 = vld [vmem:[#allocation2 + $0xc7] sm:$0xff] }
 0x2e7   : > { %v2055_v57 = vpop.f32.mrf.mxu2 }
 0x2e8   : > { %v2333_v49 = vpop.f32.mrf.mxu3  ;;  %v2724_v61 = vmax.f32 %v2692_v24, 0.0  ;;  %v2101_v10 = vadd.f32 %v2055_v57, %v1822_v16  ;;  %v2614_v44 = vpop.f32.mrf.mxu0  ;;  %v8057_v57 = vld [vmem:[#allocation2 + $0xcf] sm:$0xff] }
 0x2e9   : > { %9270 = vst [vmem:[#allocation6_spill] sm:$0xff] %v8057_v57 }
 0x2ea   : > { %2830 = vst.msk [vmem:[#allocation2 + $0x1a8] sm:$0xff] %vm2732_vm2, %v2724_v61  ;;  %v2379_v33 = vadd.f32 %v2333_v49, %v2101_v10  ;;  %v8044_v37 = vpop.f32.mrf.mxu1  ;;  %v1824_v49 = vadd.f32 %v7775_v58, %v7429_v43  ;;  %v8077_v58 = vld [vmem:[#allocation2 + $0xe7] sm:$0xff] }
 0x2eb   : > { %6075 = vmatmul.msk.f32.gmra.mxu0 %vm2732_vm2, %v8032_v1  ;;  %9273 = vst [vmem:[#allocation9_spill] sm:$0xff] %v8077_v58 }
 0x2ec   : > { %v2657_v3 = vadd.f32 %v2611_v26, %v2379_v33  ;;  %6003 = vmatmul.msk.f32.gmra.mxu2 %vm2732_vm2, %v7992_v7 }
 0x2ed   : > { %6039 = vmatmul.msk.f32.gmra.mxu3 %vm2732_vm2, %v8026_v39  ;;  %5985 = vmatmul.msk.f32.gmra.mxu1 %vm2732_vm2, %v8046_v9 }
 0x2ee   : > { %v2693_v41 = vadd.f32 %v8041_v32, %v2657_v3 }
 0x2ef   : > { %v2058_v22 = vpop.f32.mrf.mxu2 }
 0x2f0   : > { %v2336_v8 = vpop.f32.mrf.mxu3  ;;  %v2725_v26 = vmax.f32 %v2693_v41, 0.0  ;;  %v2102_v6 = vadd.f32 %v2058_v22, %v1823_v30  ;;  %v2617_v24 = vpop.f32.mrf.mxu0 }
 0x2f2   : > { %2831 = vst.msk [vmem:[#allocation2 + $0x1b0] sm:$0xff] %vm2732_vm2, %v2725_v26  ;;  %v2380_v16 = vadd.f32 %v2336_v8, %v2102_v6  ;;  %v8064_v3 = vpop.f32.mrf.mxu1  ;;  %v8071_v26 = vld [vmem:[#allocation2 + $0xc9] sm:$0xff]  ;;  %v1825_v6 = vadd.f32 %v7790_v45, %v7456_v53  ;;  %v6136_v53 = vld [vmem:[%s9122_s3 + $0xb8] sm:$0xff] }
 0x2f3   : > { %6076 = vmatmul.msk.f32.gmra.mxu0 %vm2732_vm2, %v8057_v57  ;;  %9272 = vst [vmem:[#allocation8_spill] sm:$0xff] %v8071_v26  ;;  %4308 = vmatpush.msra.mxu2 %v6136_v53 }
 0x2f4   : > { %v2658_v19 = vadd.f32 %v2614_v44, %v2380_v16  ;;  %6004 = vmatmul.msk.f32.gmra.mxu2 %vm2732_vm2, %v8012_v40  ;;  %v8066_v44 = vld [vmem:[#allocation2 + $0x190] sm:$0xff] }
 0x2f5   : > { %6040 = vmatmul.msk.f32.gmra.mxu3 %vm2732_vm2, %v8051_v54  ;;  %9271 = vst [vmem:[#allocation7_spill] sm:$0xff] %v8066_v44  ;;  %5986 = vmatmul.msk.f32.gmra.mxu1 %vm2732_vm2, %v8066_v44 }
 0x2f6   : > { %v2694_v61 = vadd.f32 %v8041_v32, %v2658_v19 }
 0x2f7   : > { %v2061_v10 = vpop.f32.mrf.mxu2 }
 0x2f8   : > { %v2339_v33 = vpop.f32.mrf.mxu3  ;;  %v2726_v30 = vmax.f32 %v2694_v61, 0.0  ;;  %v2103_v41 = vadd.f32 %v2061_v10, %v1824_v49  ;;  %v2620_v8 = vpop.f32.mrf.mxu0 }
 0x2fa   : > { %2832 = vst.msk [vmem:[#allocation2 + $0x1c8] sm:$0xff] %vm2732_vm2, %v2726_v30  ;;  %v2381_v22 = vadd.f32 %v2339_v33, %v2103_v41  ;;  %v8084_v61 = vpop.f32.mrf.mxu1 }
 0x2fb   : > { %6077 = vmatmul.msk.f32.gmra.mxu0 %vm2732_vm2, %v8077_v58 }
 0x2fc   : > { %v2659_v43 = vadd.f32 %v2617_v24, %v2381_v22  ;;  %6005 = vmatmul.msk.f32.gmra.mxu2 %vm2732_vm2, %v8032_v1  ;;  %v8086_v24 = vld [vmem:[#allocation2 + $0x1a8] sm:$0xff]  ;;  %v8091_v22 = vld [vmem:[#allocation2 + $0xd1] sm:$0xff] }
 0x2fd   : > { %6041 = vmatmul.msk.f32.gmra.mxu3 %vm2732_vm2, %v8071_v26  ;;  %9274 = vst [vmem:[#allocation10_spill] sm:$0xff] %v8086_v24  ;;  %5987 = vmatmul.msk.f32.gmra.mxu1 %vm2732_vm2, %v8086_v24 }
 0x2fe   : > { %v2695_v16 = vadd.f32 %v8041_v32, %v2659_v43  ;;  %9275 = vst [vmem:[#allocation11_spill] sm:$0xff] %v8091_v22  ;;  %v8100_v43 = vld [vmem:[#allocation2 + $0xef] sm:$0xff] }
 0x2ff   : > { %v2064_v19 = vpop.f32.mrf.mxu2  ;;  %9276 = vst [vmem:[#allocation12_spill] sm:$0xff] %v8100_v43 }
 0x300   : > { %v2342_v49 = vpop.f32.mrf.mxu3  ;;  %v2727_v10 = vmax.f32 %v2695_v16, 0.0  ;;  %v2104_v33 = vadd.f32 %v2064_v19, %v1825_v6  ;;  %v2623_v41 = vpop.f32.mrf.mxu0  ;;  %v1826_v6 = vadd.f32 %v7827_v42, %v7482_v48  ;;  %v8117_v48 = vld [vmem:[#allocation2 + $0xe9] sm:$0xff] }
 0x301   : > { %9278 = vst [vmem:[#allocation15_spill] sm:$0xff] %v8117_v48 }
 0x302   : > { %2833 = vst.msk [vmem:[#allocation2 + $0x1d0] sm:$0xff] %vm2732_vm2, %v2727_v10  ;;  %v2382_v30 = vadd.f32 %v2342_v49, %v2104_v33  ;;  %v8109_v10 = vld [vmem:[#allocation2 + $0x1b0] sm:$0xff] }
 0x303   : > { %6078 = vmatmul.msk.f32.gmra.mxu0 %vm2732_vm2, %v8100_v43  ;;  %9277 = vst [vmem:[#allocation41_spill] sm:$0xff] %v8109_v10 }
 0x304   : > { %v2660_v45 = vadd.f32 %v2620_v8, %v2382_v30  ;;  %6006 = vmatmul.msk.f32.gmra.mxu2 %vm2732_vm2, %v8057_v57  ;;  %v8107_v8 = vpop.f32.mrf.mxu1 }
 0x305   : > { %6042 = vmatmul.msk.f32.gmra.mxu3 %vm2732_vm2, %v8091_v22  ;;  %v6172_v22 = vld [vmem:[%s9122_s3 + $0xd8] sm:$0xff]  ;;  %5988 = vmatmul.msk.f32.gmra.mxu1 %vm2732_vm2, %v8109_v10 }
 0x306   : > { %v2696_v16 = vadd.f32 %v8041_v32, %v2660_v45  ;;  %4587 = vmatpush.msra.mxu3 %v6172_v22  ;;  %v8123_v45 = vld [vmem:[#allocation2 + $0x107] sm:$0xff]  ;;  %v1827_v22 = vadd.f32 %v7843_v31, %v7509_v29  ;;  %v8140_v29 = vld [vmem:[#allocation2 + $0xf1] sm:$0xff] }
 0x307   : > { %v2067_v19 = vpop.f32.mrf.mxu2  ;;  %9279 = vst [vmem:[#allocation13_spill] sm:$0xff] %v8123_v45  ;;  %v6244_v31 = vld [vmem:[%s9122_s3 + $0x118] sm:$0xff] }
 0x308   : > { %v2345_v49 = vpop.f32.mrf.mxu3  ;;  %v2728_v33 = vmax.f32 %v2696_v16, 0.0  ;;  %v2105_v30 = vadd.f32 %v2067_v19, %v1826_v6  ;;  %v2626_v24 = vpop.f32.mrf.mxu0  ;;  %9281 = vst [vmem:[#allocation14_spill] sm:$0xff] %v8140_v29  ;;  %5143 = vmatpush.msra.mxu1 %v6244_v31  ;;  %v8163_v31 = vld [vmem:[#allocation2 + $0x109] sm:$0xff] }
 0x309   : > { %9284 = vst [vmem:[#allocation21_spill] sm:$0xff] %v8163_v31 }
 0x30a   : > { %2834 = vst.msk [vmem:[#allocation2 + $0x1e8] sm:$0xff] %vm2732_vm2, %v2728_v33  ;;  %v2383_v53 = vadd.f32 %v2345_v49, %v2105_v30 }
 0x30b   : > { %6079 = vmatmul.msk.f32.gmra.mxu0 %vm2732_vm2, %v8123_v45 }
 0x30c   : > { %v2661_v42 = vadd.f32 %v2623_v41, %v2383_v53  ;;  %6007 = vmatmul.msk.f32.gmra.mxu2 %vm2732_vm2, %v8077_v58  ;;  %v8130_v49 = vpop.f32.mrf.mxu1  ;;  %v8132_v41 = vld [vmem:[#allocation2 + $0x1c8] sm:$0xff]  ;;  %v6208_v53 = vld [vmem:[%s9122_s3 + $0xf8] sm:$0xff] }
 0x30d   : > { %6043 = vmatmul.msk.f32.gmra.mxu3 %vm2732_vm2, %v8117_v48  ;;  %9280 = vst [vmem:[#allocation17_spill] sm:$0xff] %v8132_v41  ;;  %4865 = vmatpush.msra.mxu0 %v6208_v53 }
 0x30e   : > { %v2697_v6 = vadd.f32 %v8041_v32, %v2661_v42  ;;  %5989 = vmatmul.msk.f32.gmra.mxu1 %vm2732_vm2, %v8132_v41 }
 0x30f   : > { %v2070_v16 = vpop.f32.mrf.mxu2 }
 0x310   : > { %v2348_v19 = vpop.f32.mrf.mxu3  ;;  %v2729_v33 = vmax.f32 %v2697_v6, 0.0  ;;  %v2106_v30 = vadd.f32 %v2070_v16, %v1827_v22  ;;  %v2629_v10 = vpop.f32.mrf.mxu0  ;;  %v8149_v22 = vld [vmem:[#allocation2 + $0x10f] sm:$0xff]  ;;  %v1828_v6 = vadd.f32 %v7854_v55, %v7536_v11  ;;  %v8169_v55 = vld [vmem:[#allocation2 + $0x127] sm:$0xff] }
 0x311   : > { %9282 = vst [vmem:[#allocation19_spill] sm:$0xff] %v8149_v22 }
 0x312   : > { %2835 = vst.msk [vmem:[#allocation2 + $0x1f0] sm:$0xff] %vm2732_vm2, %v2729_v33  ;;  %v2384_v48 = vadd.f32 %v2348_v19, %v2106_v30 }
 0x313   : > { %6080 = vmatmul.msk.f32.gmra.mxu0 %vm2732_vm2, %v8149_v22  ;;  %9285 = vst [vmem:[#allocation18_spill] sm:$0xff] %v8169_v55 }
 0x314   : > { %v2662_v42 = vadd.f32 %v2626_v24, %v2384_v48  ;;  %6008 = vmatmul.msk.f32.gmra.mxu2 %vm2732_vm2, %v8100_v43  ;;  %v8156_v24 = vpop.f32.mrf.mxu1  ;;  %v8158_v48 = vld [vmem:[#allocation2 + $0x1d0] sm:$0xff] }
 0x315   : > { %6044 = vmatmul.msk.f32.gmra.mxu3 %vm2732_vm2, %v8140_v29  ;;  %9283 = vst [vmem:[#allocation16_spill] sm:$0xff] %v8158_v48 }
 0x316   : > { %v2698_v16 = vadd.f32 %v8041_v32, %v2662_v42  ;;  %5990 = vmatmul.msk.f32.gmra.mxu1 %vm2732_vm2, %v8158_v48 }
 0x317   : > { %v2073_v19 = vpop.f32.mrf.mxu2 }
 0x318   : > { %v2351_v33 = vpop.f32.mrf.mxu3  ;;  %v2730_v30 = vmax.f32 %v2698_v16, 0.0  ;;  %v2107_v53 = vadd.f32 %v2073_v19, %v1828_v6  ;;  %v3757_v41 = vpop.f32.mrf.mxu0 }
 0x31a   : > { %2836 = vst.msk [vmem:[#allocation2 + $0x208] sm:$0xff] %vm2732_vm2, %v2730_v30  ;;  %v2385_v29 = vadd.f32 %v2351_v33, %v2107_v53  ;;  %v8176_v33 = vld [vmem:[#allocation2 + $0x1e8] sm:$0xff] }
 0x31b   : > { %6081 = vmatmul.msk.f32.gmra.mxu0 %vm2732_vm2, %v8169_v55  ;;  %9286 = vst [vmem:[#allocation23_spill] sm:$0xff] %v8176_v33 }
 0x31c   : > { %v2663_v11 = vadd.f32 %v2629_v10, %v2385_v29  ;;  %6009 = vmatmul.msk.f32.gmra.mxu2 %vm2732_vm2, %v8123_v45  ;;  %v8174_v19 = vpop.f32.mrf.mxu1  ;;  %v8317_v45 = vld [vmem:[#allocation2 + $0x70] sm:$0xff] }
 0x31d   : > { %6045 = vmatmul.msk.f32.gmra.mxu3 %vm2732_vm2, %v8163_v31  ;;  %v8182_v31 = vld [vmem:[#allocation2 + $0x111] sm:$0xff] }
 0x31e   : > { %v2699_v42 = vadd.f32 %v8041_v32, %v2663_v11  ;;  %5991 = vmatmul.msk.f32.gmra.mxu1 %vm2732_vm2, %v8176_v33  ;;  %9287 = vst [vmem:[#allocation20_spill] sm:$0xff] %v8182_v31  ;;  %v8188_v32 = vld [vmem:[#allocation2 + $0x12f] sm:$0xff] }
 0x31f   : > { %v3233_v6 = vpop.f32.mrf.mxu2  ;;  %9288 = vst [vmem:[#allocation25_spill] sm:$0xff] %v8188_v32 }
 0x320   : > { %v3479_v16 = vpop.f32.mrf.mxu3  ;;  %v2731_v10 = vmax.f32 %v2699_v42, 0.0  ;;  %v3234_v29 = vadd.f32 %v3233_v6, %v7864_v47  ;;  %v3760_v53 = vpop.f32.mrf.mxu0 }
 0x322   : > { %2837 = vst.msk [vmem:[#allocation2 + $0x210] sm:$0xff] %vm2732_vm2, %v2731_v10  ;;  %v3575_v30 = vadd.f32 %v3479_v16, %v3234_v29  ;;  %v8196_v16 = vld [vmem:[#allocation2 + $0x1f0] sm:$0xff] }
 0x323   : > { %6082 = vmatmul.msk.f32.gmra.mxu0 %vm2732_vm2, %v8188_v32  ;;  %9290 = vst [vmem:[#allocation27_spill] sm:$0xff] %v8196_v16 }
 0x324   : > { %6010 = vmatmul.msk.f32.gmra.mxu2 %vm2732_vm2, %v8149_v22  ;;  %v8190_v11 = vadd.f32 %v3757_v41, %v3575_v30  ;;  %v8194_v6 = vpop.f32.mrf.mxu1  ;;  %v8207_v41 = vld [vmem:[#allocation2 + $0x147] sm:$0xff] }
 0x325   : > { %6046 = vmatmul.msk.f32.gmra.mxu3 %vm2732_vm2, %v8182_v31  ;;  %v8201_v31 = vld [vmem:[#allocation2 + $0x129] sm:$0xff]  ;;  %9292 = vst [vmem:[#allocation29_spill] sm:$0xff] %v8207_v41 }
 0x326   : > { %9289 = vst [vmem:[#allocation22_spill] sm:$0xff] %v8190_v11  ;;  %5992 = vmatmul.msk.f32.gmra.mxu1 %vm2732_vm2, %v8196_v16  ;;  %v3885_v11 = vld [vmem:[#allocation2 + $0x28] sm:$0xff] }
 0x327   : > { %v3236_v47 = vpop.f32.mrf.mxu2  ;;  %9291 = vst [vmem:[#allocation24_spill] sm:$0xff] %v8201_v31 }
 0x328   : > { %v3482_v42 = vpop.f32.mrf.mxu3  ;;  %v3237_v10 = vadd.f32 %v3236_v47, %v7886_v56  ;;  %v3763_v33 = vpop.f32.mrf.mxu0 }
 0x32a   : > { %v3576_v29 = vadd.f32 %v3482_v42, %v3237_v10 }
 0x32b   : > { %6083 = vmatmul.msk.f32.gmra.mxu0 %vm2732_vm2, %v8207_v41 }
 0x32c   : > { %6011 = vmatmul.msk.f32.gmra.mxu2 %vm2732_vm2, %v8169_v55  ;;  %v8209_v30 = vadd.f32 %v3760_v53, %v3576_v29  ;;  %v8213_v42 = vpop.f32.mrf.mxu1  ;;  %v8217_v55 = vld [vmem:[#allocation2 + $0x131] sm:$0xff] }
 0x32d   : > { %6047 = vmatmul.msk.f32.gmra.mxu3 %vm2732_vm2, %v8201_v31  ;;  %9294 = vst [vmem:[#allocation31_spill] sm:$0xff] %v8217_v55  ;;  %v8223_v53 = vld [vmem:[#allocation2 + $0x14f] sm:$0xff] }
 0x32e   : > { %9293 = vst [vmem:[#allocation26_spill] sm:$0xff] %v8209_v30  ;;  %6101 = vmatmul.msk.f32.vlgmr.msrb.gmra.mxu1 %vm2732_vm2, %v3885_v11 }
 0x32f   : > { %v3239_v56 = vpop.f32.mrf.mxu2  ;;  %9295 = vst [vmem:[#allocation28_spill] sm:$0xff] %v8223_v53 }
 0x330   : > { %v3485_v47 = vpop.f32.mrf.mxu3  ;;  %v3240_v10 = vadd.f32 %v3239_v56, %v7915_v62  ;;  %v3766_v48 = vpop.f32.mrf.mxu0 }
 0x332   : > { %v3577_v16 = vadd.f32 %v3485_v47, %v3240_v10  ;;  %v3886_v10 = vld [vmem:[#allocation2 + $0x30] sm:$0xff] }
 0x333   : > { %6084 = vmatmul.msk.f32.gmra.mxu0 %vm2732_vm2, %v8223_v53 }
 0x334   : > { %6012 = vmatmul.msk.f32.gmra.mxu2 %vm2732_vm2, %v8188_v32  ;;  %v8225_v29 = vadd.f32 %v3763_v33, %v3577_v16  ;;  %v8229_v47 = vpop.f32.mrf.mxu1  ;;  %v8233_v32 = vld [vmem:[#allocation2 + $0x149] sm:$0xff] }
 0x335   : > { %6048 = vmatmul.msk.f32.gmra.mxu3 %vm2732_vm2, %v8217_v55  ;;  %9297 = vst [vmem:[#allocation30_spill] sm:$0xff] %v8233_v32  ;;  %v8239_v33 = vld [vmem:[#allocation2 + $0x167] sm:$0xff] }
 0x336   : > { %9296 = vst [vmem:[#allocation33_spill] sm:$0xff] %v8225_v29  ;;  %6102 = vmatmul.msk.f32.gmra.mxu1 %vm2732_vm2, %v3886_v10  ;;  %v8248_v10 = vld [vmem:[#allocation2 + $0x48] sm:$0xff] }
 0x337   : > { %v3242_v62 = vpop.f32.mrf.mxu2  ;;  %9298 = vst [vmem:[#allocation35_spill] sm:$0xff] %v8239_v33 }
 0x338   : > { %v3488_v56 = vpop.f32.mrf.mxu3  ;;  %v3243_v11 = vadd.f32 %v3242_v62, %v7936_v25  ;;  %v3769_v31 = vpop.f32.mrf.mxu0 }
 0x33a   : > { %v3578_v30 = vadd.f32 %v3488_v56, %v3243_v11 }
 0x33b   : > { %6085 = vmatmul.msk.f32.gmra.mxu0 %vm2732_vm2, %v8239_v33 }
 0x33c   : > { %6013 = vmatmul.msk.f32.gmra.mxu2 %vm2732_vm2, %v8207_v41  ;;  %v8241_v16 = vadd.f32 %v3766_v48, %v3578_v30  ;;  %v8245_v56 = vpop.f32.mrf.mxu1  ;;  %v6135_v48 = vld [vmem:[%s9122_s3 + $0xb0] sm:$0xff] }
 0x33d   : > { %6049 = vmatmul.msk.f32.gmra.mxu3 %vm2732_vm2, %v8233_v32  ;;  %v8252_v32 = vld [vmem:[#allocation2 + $0x151] sm:$0xff]  ;;  %4309 = vmatpush.msra.mxu2 %v6135_v48 }
 0x33e   : > { %9299 = vst [vmem:[#allocation32_spill] sm:$0xff] %v8241_v16  ;;  %6103 = vmatmul.msk.f32.gmra.mxu1 %vm2732_vm2, %v8248_v10 }
 0x33f   : > { %v3245_v25 = vpop.f32.mrf.mxu2  ;;  %9300 = vst [vmem:[#allocation37_spill] sm:$0xff] %v8252_v32 }
 0x340   : > { %v3491_v62 = vpop.f32.mrf.mxu3  ;;  %v3246_v11 = vadd.f32 %v3245_v25, %v7956_v18  ;;  %v3772_v55 = vpop.f32.mrf.mxu0  ;;  %v8261_v18 = vld [vmem:[#allocation2 + $0x16f] sm:$0xff] }
 0x341   : > { %9301 = vst [vmem:[#allocation34_spill] sm:$0xff] %v8261_v18 }
 0x342   : > { %v3579_v29 = vadd.f32 %v3491_v62, %v3246_v11 }
 0x343   : > { %6086 = vmatmul.msk.f32.gmra.mxu0 %vm2732_vm2, %v8261_v18 }
 0x344   : > { %6014 = vmatmul.msk.f32.gmra.mxu2 %vm2732_vm2, %v8223_v53  ;;  %v8263_v30 = vadd.f32 %v3769_v31, %v3579_v29  ;;  %v8267_v11 = vpop.f32.mrf.mxu1  ;;  %v6171_v53 = vld [vmem:[%s9122_s3 + $0xd0] sm:$0xff] }
 0x345   : > { %6050 = vmatmul.msk.f32.gmra.mxu3 %vm2732_vm2, %v8252_v32  ;;  %v8273_v32 = vld [vmem:[#allocation2 + $0x50] sm:$0xff] }
 0x346   : > { %9302 = vst [vmem:[#allocation39_spill] sm:$0xff] %v8263_v30  ;;  %4588 = vmatpush.msra.mxu3 %v6171_v53  ;;  %6104 = vmatmul.msk.f32.gmra.mxu1 %vm2732_vm2, %v8273_v32  ;;  %v8277_v29 = vld [vmem:[#allocation2 + $0x169] sm:$0xff] }
 0x347   : > { %v3248_v25 = vpop.f32.mrf.mxu2  ;;  %9303 = vst [vmem:[#allocation36_spill] sm:$0xff] %v8277_v29  ;;  %v6207_v30 = vld [vmem:[%s9122_s3 + $0xf0] sm:$0xff] }
 0x348   : > { %v3494_v62 = vpop.f32.mrf.mxu3  ;;  %v3249_v16 = vadd.f32 %v3248_v25, %v7979_v14  ;;  %v3775_v31 = vpop.f32.mrf.mxu0  ;;  %v8283_v14 = vld [vmem:[#allocation2 + $0x187] sm:$0xff]  ;;  %4866 = vmatpush.msra.mxu0 %v6207_v30 }
 0x349   : > { %9304 = vst [vmem:[#allocation42_spill] sm:$0xff] %v8283_v14 }
 0x34a   : > { %v3580_v41 = vadd.f32 %v3494_v62, %v3249_v16 }
 0x34b   : > { %6087 = vmatmul.msk.f32.gmra.mxu0 %vm2732_vm2, %v8283_v14 }
 0x34c   : > { %6015 = vmatmul.msk.f32.gmra.mxu2 %vm2732_vm2, %v8239_v33  ;;  %v8285_v48 = vadd.f32 %v3772_v55, %v3580_v41  ;;  %v8289_v25 = vpop.f32.mrf.mxu1  ;;  %v8295_v33 = vld [vmem:[#allocation2 + $0x68] sm:$0xff]  ;;  %v8299_v55 = vld [vmem:[#allocation2 + $0x171] sm:$0xff] }
 0x34d   : > { %6051 = vmatmul.msk.f32.gmra.mxu3 %vm2732_vm2, %v8277_v29  ;;  %9306 = vst [vmem:[#allocation40_spill] sm:$0xff] %v8299_v55  ;;  %v6243_v41 = vld [vmem:[%s9122_s3 + $0x110] sm:$0xff] }
 0x34e   : > { %9305 = vst [vmem:[#allocation38_spill] sm:$0xff] %v8285_v48  ;;  %6105 = vmatmul.msk.f32.gmra.mxu1 %vm2732_vm2, %v8295_v33 }
 0x34f   : > { %v3251_v53 = vpop.f32.mrf.mxu2  ;;  %5144 = vmatpush.msra.mxu1 %v6243_v41 }
 0x350   : > { %v3497_v16 = vpop.f32.mrf.mxu3  ;;  %v3252_v62 = vadd.f32 %v3251_v53, %v7999_v63  ;;  %v3778_v22 = vpop.f32.mrf.mxu0  ;;  %v8308_v63 = vld [vmem:[#allocation2 + $0x18f] sm:$0xff] }
 0x351   : > { %9307 = vst [vmem:[#allocation43_spill] sm:$0xff] %v8308_v63 }
 0x352   : > { %v3581_v29 = vadd.f32 %v3497_v16, %v3252_v62 }
 0x353   : > { %6088 = vmatmul.msk.f32.gmra.mxu0 %vm2732_vm2, %v8308_v63 }
 0x354   : > { %6016 = vmatmul.msk.f32.gmra.mxu2 %vm2732_vm2, %v8261_v18  ;;  %v8310_v30 = vadd.f32 %v3775_v31, %v3581_v29  ;;  %v8314_v62 = vpop.f32.mrf.mxu1  ;;  %v8327_v31 = vld [vmem:[#allocation2 + $0x1a7] sm:$0xff] }
 0x355   : > { %6052 = vmatmul.msk.f32.gmra.mxu3 %vm2732_vm2, %v8299_v55  ;;  %v8321_v55 = vld [vmem:[#allocation2 + $0x189] sm:$0xff]  ;;  %9310 = vst [vmem:[#allocation46_spill] sm:$0xff] %v8327_v31 }
 0x356   : > { %9308 = vst [vmem:[#allocation44_spill] sm:$0xff] %v8310_v30  ;;  %6106 = vmatmul.msk.f32.gmra.mxu1 %vm2732_vm2, %v8317_v45 }
 0x357   : > { %v3254_v53 = vpop.f32.mrf.mxu2  ;;  %9309 = vst [vmem:[#allocation45_spill] sm:$0xff] %v8321_v55 }
 0x358   : > { %v3500_v16 = vpop.f32.mrf.mxu3  ;;  %v3255_v48 = vadd.f32 %v3254_v53, %v8019_v28  ;;  %v3781_v43 = vpop.f32.mrf.mxu0 }
 0x35a   : > { %v3582_v18 = vadd.f32 %v3500_v16, %v3255_v48  ;;  %v8336_v16 = vld [vmem:[#allocation2 + $0x88] sm:$0xff] }
 0x35b   : > { %6089 = vmatmul.msk.f32.gmra.mxu0 %vm2732_vm2, %v8327_v31 }
 0x35c   : > { %6017 = vmatmul.msk.f32.gmra.mxu2 %vm2732_vm2, %v8283_v14  ;;  %v8329_v29 = vadd.f32 %v3778_v22, %v3582_v18  ;;  %v8333_v41 = vpop.f32.mrf.mxu1  ;;  %v8346_v22 = vld [vmem:[#allocation2 + $0x1af] sm:$0xff] }
 0x35d   : > { %6053 = vmatmul.msk.f32.gmra.mxu3 %vm2732_vm2, %v8321_v55  ;;  %v8340_v55 = vld [vmem:[#allocation2 + $0x191] sm:$0xff]  ;;  %9313 = vst [vmem:[#allocation49_spill] sm:$0xff] %v8346_v22 }
 0x35e   : > { %9311 = vst [vmem:[#allocation47_spill] sm:$0xff] %v8329_v29  ;;  %6107 = vmatmul.msk.f32.gmra.mxu1 %vm2732_vm2, %v8336_v16  ;;  %v8355_v29 = vld [vmem:[#allocation2 + $0x90] sm:$0xff] }
 0x35f   : > { %v3257_v28 = vpop.f32.mrf.mxu2  ;;  %9312 = vst [vmem:[#allocation48_spill] sm:$0xff] %v8340_v55 }
 0x360   : > { %v3503_v48 = vpop.f32.mrf.mxu3  ;;  %v3258_v53 = vadd.f32 %v3257_v28, %v8044_v37  ;;  %v3784_v14 = vpop.f32.mrf.mxu0 }
 0x362   : > { %v3583_v30 = vadd.f32 %v3503_v48, %v3258_v53 }
 0x363   : > { %6090 = vmatmul.msk.f32.gmra.mxu0 %vm2732_vm2, %v8346_v22 }
 0x364   : > { %6018 = vmatmul.msk.f32.gmra.mxu2 %vm2732_vm2, %v8308_v63  ;;  %v8348_v18 = vadd.f32 %v3781_v43, %v3583_v30  ;;  %v8352_v48 = vpop.f32.mrf.mxu1  ;;  %v8365_v43 = vld [vmem:[#allocation2 + $0x1c7] sm:$0xff] }
 0x365   : > { %6054 = vmatmul.msk.f32.gmra.mxu3 %vm2732_vm2, %v8340_v55  ;;  %v8359_v55 = vld [vmem:[#allocation2 + $0x1a9] sm:$0xff]  ;;  %9316 = vst [vmem:[#allocation52_spill] sm:$0xff] %v8365_v43 }
 0x366   : > { %9314 = vst [vmem:[#allocation50_spill] sm:$0xff] %v8348_v18  ;;  %6108 = vmatmul.msk.f32.gmra.mxu1 %vm2732_vm2, %v8355_v29  ;;  %v8374_v18 = vld [vmem:[#allocation2 + $0xa8] sm:$0xff] }
 0x367   : > { %v3260_v37 = vpop.f32.mrf.mxu2  ;;  %9315 = vst [vmem:[#allocation51_spill] sm:$0xff] %v8359_v55 }
 0x368   : > { %v3506_v28 = vpop.f32.mrf.mxu3  ;;  %v3261_v53 = vadd.f32 %v3260_v37, %v8064_v3  ;;  %v3787_v63 = vpop.f32.mrf.mxu0 }
 0x36a   : > { %v3584_v58 = vadd.f32 %v3506_v28, %v3261_v53 }
 0x36b   : > { %6091 = vmatmul.msk.f32.gmra.mxu0 %vm2732_vm2, %v8365_v43 }
 0x36c   : > { %6019 = vmatmul.msk.f32.gmra.mxu2 %vm2732_vm2, %v8327_v31  ;;  %v8367_v30 = vadd.f32 %v3784_v14, %v3584_v58  ;;  %v8371_v28 = vpop.f32.mrf.mxu1  ;;  %v8384_v58 = vld [vmem:[#allocation2 + $0x1cf] sm:$0xff] }
 0x36d   : > { %6055 = vmatmul.msk.f32.gmra.mxu3 %vm2732_vm2, %v8359_v55  ;;  %v8378_v55 = vld [vmem:[#allocation2 + $0x1b1] sm:$0xff]  ;;  %9319 = vst [vmem:[#allocation55_spill] sm:$0xff] %v8384_v58 }
 0x36e   : > { %9317 = vst [vmem:[#allocation53_spill] sm:$0xff] %v8367_v30  ;;  %6109 = vmatmul.msk.f32.gmra.mxu1 %vm2732_vm2, %v8374_v18  ;;  %v8393_v30 = vld [vmem:[#allocation2 + $0xb0] sm:$0xff] }
 0x36f   : > { %v3263_v3 = vpop.f32.mrf.mxu2  ;;  %9318 = vst [vmem:[#allocation54_spill] sm:$0xff] %v8378_v55 }
 0x370   : > { %v3509_v37 = vpop.f32.mrf.mxu3  ;;  %v3264_v53 = vadd.f32 %v3263_v3, %v8084_v61  ;;  %v3790_v31 = vpop.f32.mrf.mxu0 }
 0x372   : > { %v3585_v26 = vadd.f32 %v3509_v37, %v3264_v53 }
 0x373   : > { %6092 = vmatmul.msk.f32.gmra.mxu0 %vm2732_vm2, %v8384_v58 }
 0x374   : > { %6020 = vmatmul.msk.f32.gmra.mxu2 %vm2732_vm2, %v8346_v22  ;;  %v8386_v14 = vadd.f32 %v3787_v63, %v3585_v26  ;;  %v8390_v37 = vpop.f32.mrf.mxu1  ;;  %v8403_v26 = vld [vmem:[#allocation2 + $0x1e7] sm:$0xff] }
 0x375   : > { %6056 = vmatmul.msk.f32.gmra.mxu3 %vm2732_vm2, %v8378_v55  ;;  %9321 = vst [vmem:[#allocation57_spill] sm:$0xff] %v8390_v37  ;;  %v8397_v55 = vld [vmem:[#allocation2 + $0x1c9] sm:$0xff] }
 0x376   : > { %9320 = vst [vmem:[#allocation56_spill] sm:$0xff] %v8386_v14  ;;  %6110 = vmatmul.msk.f32.gmra.mxu1 %vm2732_vm2, %v8393_v30  ;;  %v8412_v14 = vld [vmem:[#allocation2 + $0xc8] sm:$0xff] }
 0x377   : > { %v3266_v61 = vpop.f32.mrf.mxu2  ;;  %9322 = vst [vmem:[#allocation58_spill] sm:$0xff] %v8397_v55 }
 0x378   : > { %v3512_v3 = vpop.f32.mrf.mxu3  ;;  %v3267_v53 = vadd.f32 %v3266_v61, %v8107_v8  ;;  %v3793_v22 = vpop.f32.mrf.mxu0  ;;  %9323 = vst [vmem:[#allocation59_spill] sm:$0xff] %v8403_v26 }
 0x37a   : > { %v3586_v44 = vadd.f32 %v3512_v3, %v3267_v53 }
 0x37b   : > { %6093 = vmatmul.msk.f32.gmra.mxu0 %vm2732_vm2, %v8403_v26 }
 0x37c   : > { %6021 = vmatmul.msk.f32.gmra.mxu2 %vm2732_vm2, %v8365_v43  ;;  %v8405_v63 = vadd.f32 %v3790_v31, %v3586_v44  ;;  %v8409_v3 = vpop.f32.mrf.mxu1  ;;  %v6134_v44 = vld [vmem:[%s9122_s3 + $0xa8] sm:$0xff] }
 0x37d   : > { %6057 = vmatmul.msk.f32.gmra.mxu3 %vm2732_vm2, %v8397_v55  ;;  %9325 = vst [vmem:[#allocation61_spill] sm:$0xff] %v8409_v3  ;;  %v8416_v55 = vld [vmem:[#allocation2 + $0x1d1] sm:$0xff]  ;;  %4310 = vmatpush.msra.mxu2 %v6134_v44 }
 0x37e   : > { %9324 = vst [vmem:[#allocation60_spill] sm:$0xff] %v8405_v63  ;;  %6111 = vmatmul.msk.f32.gmra.mxu1 %vm2732_vm2, %v8412_v14 }
 0x37f   : > { %v3269_v8 = vpop.f32.mrf.mxu2  ;;  %9326 = vst [vmem:[#allocation62_spill] sm:$0xff] %v8416_v55 }
 0x380   : > { %v3515_v61 = vpop.f32.mrf.mxu3  ;;  %v3270_v53 = vadd.f32 %v3269_v8, %v8130_v49  ;;  %v3796_v43 = vpop.f32.mrf.mxu0  ;;  %v8425_v49 = vld [vmem:[#allocation2 + $0x1ef] sm:$0xff] }
 0x382   : > { %v3587_v37 = vadd.f32 %v3515_v61, %v3270_v53 }
 0x383   : > { %6094 = vmatmul.msk.f32.gmra.mxu0 %vm2732_vm2, %v8425_v49 }
 0x384   : > { %6022 = vmatmul.msk.f32.gmra.mxu2 %vm2732_vm2, %v8384_v58  ;;  %v8427_v31 = vadd.f32 %v3793_v22, %v3587_v37  ;;  %v8431_v53 = vpop.f32.mrf.mxu1  ;;  %v6170_v58 = vld [vmem:[%s9122_s3 + $0xc8] sm:$0xff]  ;;  %v8440_v22 = vld [vmem:[#allocation2 + $0xd0] sm:$0xff] }
 0x385   : > { %6058 = vmatmul.msk.f32.gmra.mxu3 %vm2732_vm2, %v8416_v55  ;;  %9328 = vst [vmem:[#allocation64_spill] sm:$0xff] %v8431_v53  ;;  %v6206_v55 = vld [vmem:[%s9122_s3 + $0xe8] sm:$0xff] }
 0x386   : > { %9327 = vst [vmem:[#allocation63_spill] sm:$0xff] %v8427_v31  ;;  %4589 = vmatpush.msra.mxu3 %v6170_v58  ;;  %4867 = vmatpush.msra.mxu0 %v6206_v55  ;;  %v8442_v31 = vld [vmem:[#allocation2 + $0x1e9] sm:$0xff]  ;;  %v6205_v55 = vld [vmem:[%s9122_s3 + $0xe0] sm:$0xff] }
 0x387   : > { %v3272_v8 = vpop.f32.mrf.mxu2  ;;  %9329 = vst [vmem:[#allocation65_spill] sm:$0xff] %v8440_v22  ;;  %6112 = vmatmul.msk.f32.gmra.mxu1 %vm2732_vm2, %v8440_v22  ;;  %v8459_v58 = vld [vmem:[#allocation2 + $0x207] sm:$0xff] }
 0x388   : > { %v3518_v61 = vpop.f32.mrf.mxu3  ;;  %v3273_v63 = vadd.f32 %v3272_v8, %v8156_v24  ;;  %v3799_v44 = vpop.f32.mrf.mxu0  ;;  %9330 = vst [vmem:[#allocation66_spill] sm:$0xff] %v8442_v31  ;;  %v6133_v24 = vld [vmem:[%s9122_s3 + $0xa0] sm:$0xff]  ;;  %4868 = vmatpush.msra.mxu0 %v6205_v55 }
 0x389   : > { %v6169_v8 = vld [vmem:[%s9122_s3 + $0xc0] sm:$0xff]  ;;  %9331 = vst [vmem:[#allocation67_spill] sm:$0xff] %v8459_v58  ;;  %4311 = vmatpush.msra.mxu2 %v6133_v24 }
 0x38a   : > { %v3588_v37 = vadd.f32 %v3518_v61, %v3273_v63  ;;  %4590 = vmatpush.msra.mxu3 %v6169_v8 }
 0x38b   : > { %6095 = vmatmul.msk.f32.gmra.mxu0 %vm2732_vm2, %v8459_v58  ;;  %v6331_v58 = vld [vmem:[#allocation2 + $0xf0] sm:$0xff] }
 0x38c   : > { %6023 = vmatmul.msk.f32.gmra.mxu2 %vm2732_vm2, %v8403_v26  ;;  %v8461_v63 = vadd.f32 %v3796_v43, %v3588_v37  ;;  %v8465_v3 = vpop.f32.mrf.mxu1  ;;  %v8468_v26 = vld [vmem:[#allocation2 + $0xe8] sm:$0xff]  ;;  %v8472_v43 = vld [vmem:[#allocation2 + $0x1f1] sm:$0xff] }
 0x38d   : > { %6059 = vmatmul.msk.f32.gmra.mxu3 %vm2732_vm2, %v8442_v31  ;;  %v6242_v37 = vld [vmem:[%s9122_s3 + $0x108] sm:$0xff] }
 0x38e   : > { %9332 = vst [vmem:[#allocation68_spill] sm:$0xff] %v8461_v63  ;;  %5145 = vmatpush.msra.mxu1 %v6242_v37 }
 0x38f   : > { %v3275_v61 = vpop.f32.mrf.mxu2  ;;  %6113 = vmatmul.msk.f32.gmra.mxu1 %vm2732_vm2, %v8468_v26 }
 0x390   : > { %v3521_v53 = vpop.f32.mrf.mxu3  ;;  %v3276_v22 = vadd.f32 %v3275_v61, %v8174_v19  ;;  %v3802_v31 = vpop.f32.mrf.mxu0  ;;  %v8481_v19 = vld [vmem:[#allocation2 + $0x20f] sm:$0xff] }
 0x392   : > { %v3589_v57 = vadd.f32 %v3521_v53, %v3276_v22 }
 0x393   : > { %6096 = vmatmul.msk.f32.gmra.mxu0 %vm2732_vm2, %v8481_v19 }
 0x394   : > { %6024 = vmatmul.msk.f32.gmra.mxu2 %vm2732_vm2, %v8425_v49  ;;  %v8483_v24 = vadd.f32 %v3799_v44, %v3589_v57  ;;  %v8487_v8 = vpop.f32.mrf.mxu1 }
 0x395   : > { %6060 = vmatmul.msk.f32.gmra.mxu3 %vm2732_vm2, %v8472_v43 }
 0x396   : > { %9333 = vst [vmem:[#allocation69_spill] sm:$0xff] %v8483_v24 }
 0x397   : > { %v3278_v53 = vpop.f32.mrf.mxu2  ;;  %6114 = vmatmul.msk.f32.gmra.mxu1 %vm2732_vm2, %v6331_v58 }
 0x398   : > { %v3524_v22 = vpop.f32.mrf.mxu3  ;;  %v3279_v55 = vadd.f32 %v3278_v53, %v8194_v6  ;;  %v3805_v63 = vpop.f32.mrf.mxu0 }
 0x39a   : > { %v3590_v61 = vadd.f32 %v3524_v22, %v3279_v55 }
 0x39b   : > { %6209 = vmatmul.msk.f32.vlgmr.msra.gmra.mxu0 %vm2732_vm2, %v8248_v10 }
 0x39c   : > { %6137 = vmatmul.msk.f32.vlgmr.msra.gmra.mxu2 %vm2732_vm2, %v7867_v12  ;;  %v8495_v57 = vadd.f32 %v3802_v31, %v3590_v61  ;;  %v8499_v24 = vpop.f32.mrf.mxu1 }
 0x39d   : > { %6173 = vmatmul.msk.f32.vlgmr.msra.gmra.mxu3 %vm2732_vm2, %v7872_v4 }
 0x39f   : > { %v3281_v44 = vpop.f32.mrf.mxu2  ;;  %6115 = vmatmul.msk.f32.gmra.mxu1 %vm2732_vm2, %v7879_v51 }
 0x3a0   : > { %v3527_v37 = vpop.f32.mrf.mxu3  ;;  %v3282_v6 = vadd.f32 %v3281_v44, %v8213_v42  ;;  %v3808_v22 = vpop.f32.mrf.mxu0 }
 0x3a2   : > { %v3591_v53 = vadd.f32 %v3527_v37, %v3282_v6 }
 0x3a3   : > { %6210 = vmatmul.msk.f32.gmra.mxu0 %vm2732_vm2, %v8273_v32 }
 0x3a4   : > { %6138 = vmatmul.msk.f32.gmra.mxu2 %vm2732_vm2, %v7884_v36  ;;  %v8508_v12 = vadd.f32 %v3805_v63, %v3591_v53  ;;  %v8512_v31 = vpop.f32.mrf.mxu1 }
 0x3a5   : > { %6174 = vmatmul.msk.f32.gmra.mxu3 %vm2732_vm2, %v7891_v38 }
 0x3a7   : > { %v3284_v4 = vpop.f32.mrf.mxu2  ;;  %6116 = vmatmul.msk.f32.gmra.mxu1 %vm2732_vm2, %v7898_v59 }
 0x3a8   : > { %v3530_v10 = vpop.f32.mrf.mxu3  ;;  %v3285_v42 = vadd.f32 %v3284_v4, %v8229_v47  ;;  %v3811_v55 = vpop.f32.mrf.mxu0 }
 0x3aa   : > { %v3592_v58 = vadd.f32 %v3530_v10, %v3285_v42 }
 0x3ab   : > { %6211 = vmatmul.msk.f32.gmra.mxu0 %vm2732_vm2, %v8295_v33 }
 0x3ac   : > { %6139 = vmatmul.msk.f32.gmra.mxu2 %vm2732_vm2, %v7903_v27  ;;  %v8521_v51 = vadd.f32 %v3808_v22, %v3592_v58  ;;  %v8525_v32 = vpop.f32.mrf.mxu1 }
 0x3ad   : > { %6175 = vmatmul.msk.f32.gmra.mxu3 %vm2732_vm2, %v7909_v34 }
 0x3af   : > { %v3287_v36 = vpop.f32.mrf.mxu2  ;;  %6117 = vmatmul.msk.f32.gmra.mxu1 %vm2732_vm2, %v7918_v35 }
 0x3b0   : > { %v3533_v38 = vpop.f32.mrf.mxu3  ;;  %v3288_v47 = vadd.f32 %v3287_v36, %v8245_v56  ;;  %v3814_v61 = vpop.f32.mrf.mxu0 }
 0x3b2   : > { %v3593_v63 = vadd.f32 %v3533_v38, %v3288_v47 }
 0x3b3   : > { %6212 = vmatmul.msk.f32.gmra.mxu0 %vm2732_vm2, %v8317_v45 }
 0x3b4   : > { %6140 = vmatmul.msk.f32.gmra.mxu2 %vm2732_vm2, %v7923_v2  ;;  %v8534_v59 = vadd.f32 %v3811_v55, %v3593_v63  ;;  %v8538_v33 = vpop.f32.mrf.mxu1 }
 0x3b5   : > { %6176 = vmatmul.msk.f32.gmra.mxu3 %vm2732_vm2, %v7929_v17 }
 0x3b7   : > { %v3290_v27 = vpop.f32.mrf.mxu2  ;;  %6118 = vmatmul.msk.f32.gmra.mxu1 %vm2732_vm2, %v7938_v50 }
 0x3b8   : > { %v3536_v34 = vpop.f32.mrf.mxu3  ;;  %v3291_v56 = vadd.f32 %v3290_v27, %v8267_v11  ;;  %v3817_v37 = vpop.f32.mrf.mxu0 }
 0x3ba   : > { %v3594_v44 = vadd.f32 %v3536_v34, %v3291_v56 }
 0x3bb   : > { %6213 = vmatmul.msk.f32.gmra.mxu0 %vm2732_vm2, %v8336_v16 }
 0x3bc   : > { %6141 = vmatmul.msk.f32.gmra.mxu2 %vm2732_vm2, %v7943_v5  ;;  %v8547_v35 = vadd.f32 %v3814_v61, %v3594_v44  ;;  %v8551_v45 = vpop.f32.mrf.mxu1  ;;  %v9339_v44 = vld [vmem:[#allocation9_spill] sm:$0xff] }
 0x3bd   : > { %6177 = vmatmul.msk.f32.gmra.mxu3 %vm2732_vm2, %v7949_v52 }
 0x3bf   : > { %v3293_v2 = vpop.f32.mrf.mxu2  ;;  %6119 = vmatmul.msk.f32.gmra.mxu1 %vm2732_vm2, %v7958_v13 }
 0x3c0   : > { %v3539_v17 = vpop.f32.mrf.mxu3  ;;  %v3294_v11 = vadd.f32 %v3293_v2, %v8289_v25  ;;  %v3820_v53 = vpop.f32.mrf.mxu0 }
 0x3c2   : > { %v3595_v6 = vadd.f32 %v3539_v17, %v3294_v11 }
 0x3c3   : > { %6214 = vmatmul.msk.f32.gmra.mxu0 %vm2732_vm2, %v8355_v29 }
 0x3c4   : > { %6142 = vmatmul.msk.f32.gmra.mxu2 %vm2732_vm2, %v7963_v46  ;;  %v8560_v50 = vadd.f32 %v3817_v37, %v3595_v6  ;;  %v8564_v16 = vpop.f32.mrf.mxu1  ;;  %v9340_v6 = vld [vmem:[#allocation61_spill] sm:$0xff] }
 0x3c5   : > { %6178 = vmatmul.msk.f32.gmra.mxu3 %vm2732_vm2, %v7972_v60 }
 0x3c7   : > { %v3296_v5 = vpop.f32.mrf.mxu2  ;;  %6120 = vmatmul.msk.f32.gmra.mxu1 %vm2732_vm2, %v7981_v21  ;;  %v6241_v21 = vld [vmem:[%s9122_s3 + $0x100] sm:$0xff] }
 0x3c8   : > { %v3542_v52 = vpop.f32.mrf.mxu3  ;;  %v3297_v25 = vadd.f32 %v3296_v5, %v8314_v62  ;;  %v3823_v4 = vpop.f32.mrf.mxu0  ;;  %5146 = vmatpush.msra.mxu1 %v6241_v21 }
 0x3ca   : > { %v3596_v22 = vadd.f32 %v3542_v52, %v3297_v25  ;;  %v9341_v25 = vld [vmem:[#allocation10_spill] sm:$0xff] }
 0x3cb   : > { %6215 = vmatmul.msk.f32.gmra.mxu0 %vm2732_vm2, %v8374_v18 }
 0x3cc   : > { %6143 = vmatmul.msk.f32.gmra.mxu2 %vm2732_vm2, %v7986_v15  ;;  %v8573_v13 = vadd.f32 %v3820_v53, %v3596_v22  ;;  %v8577_v29 = vpop.f32.mrf.mxu1  ;;  %v9342_v22 = vld [vmem:[#allocation11_spill] sm:$0xff] }
 0x3cd   : > { %6179 = vmatmul.msk.f32.gmra.mxu3 %vm2732_vm2, %v7992_v7 }
 0x3cf   : > { %v3299_v46 = vpop.f32.mrf.mxu2  ;;  %6121 = vmatmul.msk.f32.gmra.mxu1 %vm2732_vm2, %v8001_v20 }
 0x3d0   : > { %v3545_v60 = vpop.f32.mrf.mxu3  ;;  %v3300_v62 = vadd.f32 %v3299_v46, %v8333_v41  ;;  %v3826_v42 = vpop.f32.mrf.mxu0  ;;  %v4731_v46 = vld [vmem:[#allocation2 + $0xf0] sm:$0xff] }
 0x3d2   : > { %v3597_v10 = vadd.f32 %v3545_v60, %v3300_v62 }
 0x3d3   : > { %6216 = vmatmul.msk.f32.gmra.mxu0 %vm2732_vm2, %v8393_v30 }
 0x3d4   : > { %6144 = vmatmul.msk.f32.gmra.mxu2 %vm2732_vm2, %v8006_v23  ;;  %v8589_v15 = vadd.f32 %v3823_v4, %v3597_v10  ;;  %v8593_v18 = vpop.f32.mrf.mxu1  ;;  %v9343_v4 = vld [vmem:[#allocation12_spill] sm:$0xff] }
 0x3d5   : > { %6180 = vmatmul.msk.f32.gmra.mxu3 %vm2732_vm2, %v8012_v40 }
 0x3d7   : > { %v3302_v7 = vpop.f32.mrf.mxu2  ;;  %6122 = vmatmul.msk.f32.gmra.mxu1 %vm2732_vm2, %v8021_v0  ;;  %v9334_v0 = vld [vmem:[#allocation6_spill] sm:$0xff] }
 0x3d8   : > { %v3548_v41 = vpop.f32.mrf.mxu3  ;;  %v3303_v20 = vadd.f32 %v3302_v7, %v8352_v48  ;;  %v3829_v55 = vpop.f32.mrf.mxu0 }
 0x3da   : > { %v3598_v58 = vadd.f32 %v3548_v41, %v3303_v20  ;;  %v9345_v20 = vld [vmem:[#allocation41_spill] sm:$0xff] }
 0x3db   : > { %6217 = vmatmul.msk.f32.gmra.mxu0 %vm2732_vm2, %v8412_v14 }
 0x3dc   : > { %6145 = vmatmul.msk.f32.gmra.mxu2 %vm2732_vm2, %v8026_v39  ;;  %v8602_v23 = vadd.f32 %v3826_v42, %v3598_v58  ;;  %v8606_v36 = vpop.f32.mrf.mxu1  ;;  %v9344_v42 = vld [vmem:[#allocation64_spill] sm:$0xff]  ;;  %v9346_v58 = vld [vmem:[#allocation15_spill] sm:$0xff] }
 0x3dd   : > { %6181 = vmatmul.msk.f32.gmra.mxu3 %vm2732_vm2, %v8032_v1  ;;  %v9335_v1 = vld [vmem:[#allocation65_spill] sm:$0xff] }
 0x3df   : > { %v3305_v40 = vpop.f32.mrf.mxu2  ;;  %6123 = vmatmul.msk.f32.gmra.mxu1 %vm2732_vm2, %v8046_v9  ;;  %v9337_v9 = vld [vmem:[#allocation7_spill] sm:$0xff] }
 0x3e0   : > { %v3551_v30 = vpop.f32.mrf.mxu3  ;;  %v3306_v48 = vadd.f32 %v3305_v40, %v8371_v28  ;;  %v3832_v47 = vpop.f32.mrf.mxu0  ;;  %v9336_v28 = vld [vmem:[#allocation57_spill] sm:$0xff]  ;;  %v4732_v40 = vld [vmem:[#allocation2 + $0x108] sm:$0xff] }
 0x3e2   : > { %v3599_v38 = vadd.f32 %v3551_v30, %v3306_v48 }
 0x3e3   : > { %6218 = vmatmul.msk.f32.gmra.mxu0 %vm2732_vm2, %v9335_v1 }
 0x3e4   : > { %6146 = vmatmul.msk.f32.gmra.mxu2 %vm2732_vm2, %v8051_v54  ;;  %v8615_v39 = vadd.f32 %v3829_v55, %v3599_v38  ;;  %v8619_v61 = vpop.f32.mrf.mxu1  ;;  %v9338_v54 = vld [vmem:[#allocation8_spill] sm:$0xff]  ;;  %v9347_v55 = vld [vmem:[#allocation13_spill] sm:$0xff] }
 0x3e5   : > { %6182 = vmatmul.msk.f32.gmra.mxu3 %vm2732_vm2, %v9334_v0 }
 0x3e7   : > { %v3308_v14 = vpop.f32.mrf.mxu2  ;;  %6124 = vmatmul.msk.f32.gmra.mxu1 %vm2732_vm2, %v9337_v9 }
 0x3e8   : > { %v3554_v63 = vpop.f32.mrf.mxu3  ;;  %v3309_v27 = vadd.f32 %v3308_v14, %v9336_v28  ;;  %v3835_v56 = vpop.f32.mrf.mxu0  ;;  %v9349_v28 = vld [vmem:[#allocation14_spill] sm:$0xff] }
 0x3ea   : > { %v3600_v34 = vadd.f32 %v3554_v63, %v3309_v27  ;;  %v9348_v63 = vld [vmem:[#allocation17_spill] sm:$0xff]  ;;  %v9350_v27 = vld [vmem:[#allocation19_spill] sm:$0xff] }
 0x3eb   : > { %6219 = vmatmul.msk.f32.gmra.mxu0 %vm2732_vm2, %v8468_v26 }
 0x3ec   : > { %6147 = vmatmul.msk.f32.gmra.mxu2 %vm2732_vm2, %v9338_v54  ;;  %v8628_v37 = vadd.f32 %v3832_v47, %v3600_v34  ;;  %v8632_v11 = vpop.f32.mrf.mxu1  ;;  %v4733_v34 = vld [vmem:[#allocation2 + $0x110] sm:$0xff] }
 0x3ed   : > { %6183 = vmatmul.msk.f32.gmra.mxu3 %vm2732_vm2, %v9339_v44 }
 0x3ef   : > { %v3311_v2 = vpop.f32.mrf.mxu2  ;;  %6125 = vmatmul.msk.f32.gmra.mxu1 %vm2732_vm2, %v9341_v25 }
 0x3f0   : > { %v3557_v17 = vpop.f32.mrf.mxu3  ;;  %v3312_v53 = vadd.f32 %v3311_v2, %v9340_v6  ;;  %v3838_v52 = vpop.f32.mrf.mxu0  ;;  %v9352_v6 = vld [vmem:[#allocation16_spill] sm:$0xff] }
 0x3f2   : > { %v3601_v5 = vadd.f32 %v3557_v17, %v3312_v53  ;;  %v9353_v53 = vld [vmem:[#allocation21_spill] sm:$0xff] }
 0x3f3   : > { %6220 = vmatmul.msk.f32.gmra.mxu0 %vm2732_vm2, %v4731_v46 }
 0x3f4   : > { %6148 = vmatmul.msk.f32.gmra.mxu2 %vm2732_vm2, %v9342_v22  ;;  %v8641_v60 = vadd.f32 %v3835_v56, %v3601_v5  ;;  %v8644_v10 = vpop.f32.mrf.mxu1  ;;  %v9354_v5 = vld [vmem:[#allocation18_spill] sm:$0xff] }
 0x3f5   : > { %6184 = vmatmul.msk.f32.gmra.mxu3 %vm2732_vm2, %v9343_v4 }
 0x3f7   : > { %v3314_v26 = vpop.f32.mrf.mxu2  ;;  %6126 = vmatmul.msk.f32.gmra.mxu1 %vm2732_vm2, %v9345_v20 }
 0x3f8   : > { %v3560_v62 = vpop.f32.mrf.mxu3  ;;  %v3315_v21 = vadd.f32 %v3314_v26, %v9344_v42  ;;  %v3841_v41 = vpop.f32.mrf.mxu0  ;;  %v9356_v42 = vld [vmem:[#allocation23_spill] sm:$0xff] }
 0x3fa   : > { %v3602_v7 = vadd.f32 %v3560_v62, %v3315_v21  ;;  %v9357_v21 = vld [vmem:[#allocation20_spill] sm:$0xff] }
 0x3fb   : > { %6221 = vmatmul.msk.f32.gmra.mxu0 %vm2732_vm2, %v4732_v40 }
 0x3fc   : > { %6149 = vmatmul.msk.f32.gmra.mxu2 %vm2732_vm2, %v9346_v58  ;;  %v8653_v30 = vadd.f32 %v3838_v52, %v3602_v7  ;;  %v8656_v47 = vpop.f32.mrf.mxu1  ;;  %v4734_v52 = vld [vmem:[#allocation2 + $0x128] sm:$0xff]  ;;  %v9358_v7 = vld [vmem:[#allocation25_spill] sm:$0xff] }
 0x3fd   : > { %6185 = vmatmul.msk.f32.gmra.mxu3 %vm2732_vm2, %v9347_v55 }
 0x3ff   : > { %v3317_v48 = vpop.f32.mrf.mxu2  ;;  %6127 = vmatmul.msk.f32.gmra.mxu1 %vm2732_vm2, %v9348_v63  ;;  %v4736_v63 = vld [vmem:[#allocation2 + $0x148] sm:$0xff] }
 0x400   : > { %v3563_v38 = vpop.f32.mrf.mxu3  ;;  %v3318_v0 = vadd.f32 %v3317_v48, %v8465_v3  ;;  %v3844_v14 = vpop.f32.mrf.mxu0 }
 0x402   : > { %v3603_v1 = vadd.f32 %v3563_v38, %v3318_v0  ;;  %v9360_v0 = vld [vmem:[#allocation27_spill] sm:$0xff] }
 0x403   : > { %6222 = vmatmul.msk.f32.gmra.mxu0 %vm2732_vm2, %v4733_v34 }
 0x404   : > { %6150 = vmatmul.msk.f32.gmra.mxu2 %vm2732_vm2, %v9349_v28  ;;  %v8665_v56 = vadd.f32 %v3841_v41, %v3603_v1  ;;  %v8668_v44 = vpop.f32.mrf.mxu1  ;;  %v4735_v41 = vld [vmem:[#allocation2 + $0x130] sm:$0xff] }
 0x405   : > { %6186 = vmatmul.msk.f32.gmra.mxu3 %vm2732_vm2, %v9350_v27  ;;  %v9361_v1 = vld [vmem:[#allocation24_spill] sm:$0xff]  ;;  %v9364_v27 = vld [vmem:[#allocation22_spill] sm:$0xff] }
 0x406   : > { %9351 = vst [vmem:[#allocation6_spill] sm:$0xff] %v8665_v56  ;;  %v4131_v34 = vadd.f32 %v8525_v32, %v9364_v27  ;;  %v4998_v27 = vld [vmem:[#allocation2 + $0x49] sm:$0xff]  ;;  %v9401_v56 = vld [vmem:[#allocation53_spill] sm:$0xff] }
 0x407   : > { %v3320_v9 = vpop.f32.mrf.mxu2  ;;  %6128 = vmatmul.msk.f32.gmra.mxu1 %vm2732_vm2, %v9352_v6 }
 0x408   : > { %v3566_v54 = vpop.f32.mrf.mxu3  ;;  %v3321_v3 = vadd.f32 %v3320_v9, %v8487_v8  ;;  %v3847_v17 = vpop.f32.mrf.mxu0 }
 0x40a   : > { %v3604_v2 = vadd.f32 %v3566_v54, %v3321_v3 }
 0x40b   : > { %6223 = vmatmul.msk.f32.gmra.mxu0 %vm2732_vm2, %v4734_v52  ;;  %v4737_v52 = vld [vmem:[#allocation2 + $0x150] sm:$0xff] }
 0x40c   : > { %6151 = vmatmul.msk.f32.gmra.mxu2 %vm2732_vm2, %v9353_v53  ;;  %v8677_v25 = vadd.f32 %v3844_v14, %v3604_v2  ;;  %v8680_v46 = vpop.f32.mrf.mxu1  ;;  %v9362_v14 = vld [vmem:[#allocation29_spill] sm:$0xff]  ;;  %v8708_v2 = vld [vmem:[#allocation2 + $0x208] sm:$0xff] }
 0x40d   : > { %6187 = vmatmul.msk.f32.gmra.mxu3 %vm2732_vm2, %v9354_v5  ;;  %v9365_v53 = vld [vmem:[#allocation31_spill] sm:$0xff]  ;;  %v9366_v5 = vld [vmem:[#allocation28_spill] sm:$0xff] }
 0x40e   : > { %9355 = vst [vmem:[#allocation65_spill] sm:$0xff] %v8677_v25 }
 0x40f   : > { %v3323_v22 = vpop.f32.mrf.mxu2  ;;  %6129 = vmatmul.msk.f32.gmra.mxu1 %vm2732_vm2, %v9356_v42 }
 0x410   : > { %v3569_v4 = vpop.f32.mrf.mxu3  ;;  %v3324_v8 = vadd.f32 %v3323_v22, %v8499_v24  ;;  %v3850_v62 = vpop.f32.mrf.mxu0  ;;  %v9367_v22 = vld [vmem:[#allocation26_spill] sm:$0xff] }
 0x412   : > { %v3605_v26 = vadd.f32 %v3569_v4, %v3324_v8  ;;  %v4132_v4 = vadd.f32 %v8538_v33, %v9367_v22 }
 0x413   : > { %6224 = vmatmul.msk.f32.gmra.mxu0 %vm2732_vm2, %v4735_v41 }
 0x414   : > { %6152 = vmatmul.msk.f32.gmra.mxu2 %vm2732_vm2, %v9357_v21  ;;  %v8689_v20 = vadd.f32 %v3847_v17, %v3605_v26  ;;  %v8692_v40 = vpop.f32.mrf.mxu1  ;;  %v8723_v21 = vld [vmem:[#allocation2 + $0x210] sm:$0xff] }
 0x415   : > { %6188 = vmatmul.msk.f32.gmra.mxu3 %vm2732_vm2, %v9358_v7 }
 0x416   : > { %9359 = vst [vmem:[#allocation57_spill] sm:$0xff] %v8689_v20 }
 0x417   : > { %v3326_v58 = vpop.f32.mrf.mxu2  ;;  %6130 = vmatmul.msk.f32.gmra.mxu1 %vm2732_vm2, %v9360_v0 }
 0x418   : > { %v3572_v55 = vpop.f32.mrf.mxu3  ;;  %v3327_v24 = vadd.f32 %v3326_v58, %v8512_v31  ;;  %v4870_v38 = vpop.f32.mrf.mxu0  ;;  %v9368_v58 = vld [vmem:[#allocation30_spill] sm:$0xff] }
 0x41a   : > { %v3606_v48 = vadd.f32 %v3572_v55, %v3327_v24  ;;  %v9369_v55 = vld [vmem:[#allocation35_spill] sm:$0xff] }
 0x41b   : > { %6225 = vmatmul.msk.f32.gmra.mxu0 %vm2732_vm2, %v4736_v63  ;;  %v4738_v24 = vld [vmem:[#allocation2 + $0x168] sm:$0xff] }
 0x41c   : > { %6153 = vmatmul.msk.f32.gmra.mxu2 %vm2732_vm2, %v9361_v1  ;;  %v8701_v28 = vadd.f32 %v3850_v62, %v3606_v48  ;;  %v8706_v54 = vpop.f32.mrf.mxu1  ;;  %v9370_v48 = vld [vmem:[#allocation33_spill] sm:$0xff] }
 0x41d   : > { %6189 = vmatmul.msk.f32.gmra.mxu3 %vm2732_vm2, %v9362_v14 }
 0x41e   : > { %9363 = vst [vmem:[#allocation7_spill] sm:$0xff] %v8701_v28 }
 0x41f   : > { %v4313_v31 = vpop.f32.mrf.mxu2  ;;  %6131 = vmatmul.msk.f32.gmra.mxu1 %vm2732_vm2, %v8708_v2 }
 0x420   : > { %v4592_v9 = vpop.f32.mrf.mxu3  ;;  %v4409_v3 = vadd.f32 %v4313_v31, %v4131_v34  ;;  %v4873_v6 = vpop.f32.mrf.mxu0 }
 0x422   : > { %v4688_v17 = vadd.f32 %v4592_v9, %v4409_v3  ;;  %v9371_v9 = vld [vmem:[#allocation37_spill] sm:$0xff]  ;;  %v9372_v3 = vld [vmem:[#allocation34_spill] sm:$0xff] }
 0x423   : > { %6226 = vmatmul.msk.f32.gmra.mxu0 %vm2732_vm2, %v4737_v52 }
 0x424   : > { %6154 = vmatmul.msk.f32.gmra.mxu2 %vm2732_vm2, %v9365_v53  ;;  %v8716_v32 = vadd.f32 %v4870_v38, %v4688_v17  ;;  %v8721_v62 = vpop.f32.mrf.mxu1  ;;  %v4133_v38 = vadd.f32 %v8551_v45, %v9370_v48  ;;  %v4739_v17 = vld [vmem:[#allocation2 + $0x170] sm:$0xff] }
 0x425   : > { %6190 = vmatmul.msk.f32.gmra.mxu3 %vm2732_vm2, %v9366_v5  ;;  %v9373_v45 = vld [vmem:[#allocation32_spill] sm:$0xff] }
 0x426   : > { %v4134_v53 = vadd.f32 %v8564_v16, %v9373_v45  ;;  %v9376_v16 = vld [vmem:[#allocation39_spill] sm:$0xff] }
 0x427   : > { %v4316_v8 = vpop.f32.mrf.mxu2  ;;  %6132 = vmatmul.msk.f32.gmra.mxu1 %vm2732_vm2, %v8723_v21 }
 0x428   : > { %v4595_v26 = vpop.f32.mrf.mxu3  ;;  %v4410_v42 = vadd.f32 %v4316_v8, %v4132_v4  ;;  %v4876_v41 = vpop.f32.mrf.mxu0  ;;  %v4999_v8 = vld [vmem:[#allocation2 + $0x51] sm:$0xff] }
 0x42a   : > { %v4689_v7 = vadd.f32 %v4595_v26, %v4410_v42 }
 0x42b   : > { %6227 = vmatmul.msk.f32.gmra.mxu0 %vm2732_vm2, %v4738_v24  ;;  %v4135_v24 = vadd.f32 %v8577_v29, %v9376_v16  ;;  %v9379_v29 = vld [vmem:[#allocation38_spill] sm:$0xff] }
 0x42c   : > { %6155 = vmatmul.msk.f32.gmra.mxu2 %vm2732_vm2, %v9368_v58  ;;  %v8731_v33 = vadd.f32 %v4873_v6, %v4689_v7  ;;  %v8736_v14 = vpop.f32.mrf.mxu1  ;;  %v9374_v7 = vld [vmem:[#allocation36_spill] sm:$0xff]  ;;  %v4740_v58 = vld [vmem:[#allocation2 + $0x188] sm:$0xff] }
 0x42d   : > { %6191 = vmatmul.msk.f32.gmra.mxu3 %vm2732_vm2, %v9369_v55 }
 0x42f   : > { %v4319_v0 = vpop.f32.mrf.mxu2  ;;  %6245 = vmatmul.msk.f32.vlgmr.msra.gmra.mxu1 %vm2732_vm2, %v4998_v27 }
 0x430   : > { %v4598_v1 = vpop.f32.mrf.mxu3  ;;  %v4411_v63 = vadd.f32 %v4319_v0, %v4133_v38  ;;  %v4879_v31 = vpop.f32.mrf.mxu0 }
 0x432   : > { %v4690_v34 = vadd.f32 %v4598_v1, %v4411_v63  ;;  %v5000_v63 = vld [vmem:[#allocation2 + $0x69] sm:$0xff] }
 0x433   : > { %6228 = vmatmul.msk.f32.gmra.mxu0 %vm2732_vm2, %v4739_v17  ;;  %v4136_v17 = vadd.f32 %v8593_v18, %v9379_v29  ;;  %v9382_v18 = vld [vmem:[#allocation44_spill] sm:$0xff] }
 0x434   : > { %6156 = vmatmul.msk.f32.gmra.mxu2 %vm2732_vm2, %v9371_v9  ;;  %v8743_v6 = vadd.f32 %v4876_v41, %v4690_v34  ;;  %v8748_v22 = vpop.f32.mrf.mxu1  ;;  %v9375_v41 = vld [vmem:[#allocation42_spill] sm:$0xff]  ;;  %v9377_v34 = vld [vmem:[#allocation40_spill] sm:$0xff]  ;;  %v9378_v9 = vld [vmem:[#allocation43_spill] sm:$0xff]  ;;  %v4137_v16 = vadd.f32 %v8606_v36, %v9382_v18 }
 0x435   : > { %6192 = vmatmul.msk.f32.gmra.mxu3 %vm2732_vm2, %v9372_v3  ;;  %v4743_v29 = vld [vmem:[#allocation2 + $0x1b0] sm:$0xff]  ;;  %v9385_v36 = vld [vmem:[#allocation47_spill] sm:$0xff] }
 0x436   : > { %v9387_v18 = vld [vmem:[#allocation52_spill] sm:$0xff] }
 0x437   : > { %v4322_v5 = vpop.f32.mrf.mxu2  ;;  %6246 = vmatmul.msk.f32.gmra.mxu1 %vm2732_vm2, %v4999_v8  ;;  %v5001_v8 = vld [vmem:[#allocation2 + $0x71] sm:$0xff] }
 0x438   : > { %v4601_v52 = vpop.f32.mrf.mxu3  ;;  %v4412_v4 = vadd.f32 %v4322_v5, %v4134_v53  ;;  %v4882_v42 = vpop.f32.mrf.mxu0 }
 0x43a   : > { %v4691_v26 = vadd.f32 %v4601_v52, %v4412_v4 }
 0x43b   : > { %6229 = vmatmul.msk.f32.gmra.mxu0 %vm2732_vm2, %v4740_v58 }
 0x43c   : > { %6157 = vmatmul.msk.f32.gmra.mxu2 %vm2732_vm2, %v9374_v7  ;;  %v8755_v55 = vadd.f32 %v4879_v31, %v4691_v26  ;;  %v8760_v0 = vpop.f32.mrf.mxu1  ;;  %v4741_v31 = vld [vmem:[#allocation2 + $0x190] sm:$0xff]  ;;  %v9380_v7 = vld [vmem:[#allocation45_spill] sm:$0xff] }
 0x43d   : > { %6193 = vmatmul.msk.f32.gmra.mxu3 %vm2732_vm2, %v9375_v41  ;;  %v4742_v41 = vld [vmem:[#allocation2 + $0x1a8] sm:$0xff] }
 0x43f   : > { %v4325_v48 = vpop.f32.mrf.mxu2  ;;  %6247 = vmatmul.msk.f32.gmra.mxu1 %vm2732_vm2, %v5000_v63 }
 0x440   : > { %v4604_v38 = vpop.f32.mrf.mxu3  ;;  %v4413_v1 = vadd.f32 %v4325_v48, %v4135_v24  ;;  %v4885_v45 = vpop.f32.mrf.mxu0 }
 0x442   : > { %v4692_v27 = vadd.f32 %v4604_v38, %v4413_v1 }
 0x443   : > { %6230 = vmatmul.msk.f32.gmra.mxu0 %vm2732_vm2, %v4741_v31  ;;  %v9384_v31 = vld [vmem:[#allocation49_spill] sm:$0xff] }
 0x444   : > { %6158 = vmatmul.msk.f32.gmra.mxu2 %vm2732_vm2, %v9377_v34  ;;  %v8767_v3 = vadd.f32 %v4882_v42, %v4692_v27  ;;  %v8772_v52 = vpop.f32.mrf.mxu1  ;;  %v9381_v42 = vld [vmem:[#allocation46_spill] sm:$0xff]  ;;  %v5002_v27 = vld [vmem:[#allocation2 + $0x89] sm:$0xff] }
 0x445   : > { %6194 = vmatmul.msk.f32.gmra.mxu3 %vm2732_vm2, %v9378_v9  ;;  %v9383_v9 = vld [vmem:[#allocation48_spill] sm:$0xff] }
 0x447   : > { %v4328_v53 = vpop.f32.mrf.mxu2  ;;  %6248 = vmatmul.msk.f32.gmra.mxu1 %vm2732_vm2, %v5001_v8 }
 0x448   : > { %v4607_v5 = vpop.f32.mrf.mxu3  ;;  %v4414_v4 = vadd.f32 %v4328_v53, %v4136_v17  ;;  %v4888_v63 = vpop.f32.mrf.mxu0 }
 0x44a   : > { %v4693_v26 = vadd.f32 %v4607_v5, %v4414_v4 }
 0x44b   : > { %6231 = vmatmul.msk.f32.gmra.mxu0 %vm2732_vm2, %v4742_v41  ;;  %v9386_v41 = vld [vmem:[#allocation51_spill] sm:$0xff] }
 0x44c   : > { %6159 = vmatmul.msk.f32.gmra.mxu2 %vm2732_vm2, %v9380_v7  ;;  %v8779_v58 = vadd.f32 %v4885_v45, %v4693_v26  ;;  %v8784_v38 = vpop.f32.mrf.mxu1  ;;  %v4138_v45 = vadd.f32 %v8619_v61, %v9385_v36  ;;  %v5003_v26 = vld [vmem:[#allocation2 + $0x91] sm:$0xff]  ;;  %v4746_v36 = vld [vmem:[#allocation2 + $0x1e8] sm:$0xff] }
 0x44d   : > { %6195 = vmatmul.msk.f32.gmra.mxu3 %vm2732_vm2, %v9381_v42 }
 0x44f   : > { %v4331_v24 = vpop.f32.mrf.mxu2  ;;  %6249 = vmatmul.msk.f32.gmra.mxu1 %vm2732_vm2, %v5002_v27  ;;  %v4745_v27 = vld [vmem:[#allocation2 + $0x1d0] sm:$0xff] }
 0x450   : > { %v4610_v48 = vpop.f32.mrf.mxu3  ;;  %v4415_v1 = vadd.f32 %v4331_v24, %v4137_v16  ;;  %v4891_v42 = vpop.f32.mrf.mxu0  ;;  %v4744_v16 = vld [vmem:[#allocation2 + $0x1c8] sm:$0xff] }
 0x452   : > { %v4694_v34 = vadd.f32 %v4610_v48, %v4415_v1  ;;  %v5004_v48 = vld [vmem:[#allocation2 + $0xa9] sm:$0xff]  ;;  %v9388_v1 = vld [vmem:[#allocation54_spill] sm:$0xff] }
 0x453   : > { %6232 = vmatmul.msk.f32.gmra.mxu0 %vm2732_vm2, %v4743_v29  ;;  %v9391_v29 = vld [vmem:[#allocation59_spill] sm:$0xff] }
 0x454   : > { %6160 = vmatmul.msk.f32.gmra.mxu2 %vm2732_vm2, %v9383_v9  ;;  %v8791_v17 = vadd.f32 %v4888_v63, %v4694_v34  ;;  %v8796_v5 = vpop.f32.mrf.mxu1  ;;  %v9389_v63 = vld [vmem:[#allocation55_spill] sm:$0xff]  ;;  %v5005_v9 = vld [vmem:[#allocation2 + $0xb1] sm:$0xff] }
 0x455   : > { %6196 = vmatmul.msk.f32.gmra.mxu3 %vm2732_vm2, %v9384_v31  ;;  %v9390_v31 = vld [vmem:[#allocation58_spill] sm:$0xff] }
 0x457   : > { %v4334_v53 = vpop.f32.mrf.mxu2  ;;  %6250 = vmatmul.msk.f32.gmra.mxu1 %vm2732_vm2, %v5003_v26 }
 0x458   : > { %v4416_v4 = vadd.f32 %v4334_v53, %v4138_v45  ;;  %v4613_v8 = vpop.f32.mrf.mxu3  ;;  %v5006_v53 = vld [vmem:[#allocation2 + $0xc9] sm:$0xff] }
 0x45a   : > { %v4695_v7 = vadd.f32 %v4613_v8, %v4416_v4  ;;  %v9392_v4 = vld [vmem:[#allocation62_spill] sm:$0xff]  ;;  %v4747_v8 = vld [vmem:[#allocation2 + $0x1f0] sm:$0xff] }
 0x45b   : > { %6233 = vmatmul.msk.f32.gmra.mxu0 %vm2732_vm2, %v4744_v16 }
 0x45c   : > { %6161 = vmatmul.msk.f32.gmra.mxu2 %vm2732_vm2, %v9386_v41  ;;  %v8803_v24 = vadd.f32 %v4891_v42, %v4695_v7  ;;  %v8806_v61 = vpop.f32.mrf.mxu1  ;;  %v5007_v7 = vld [vmem:[#allocation2 + $0xd1] sm:$0xff]  ;;  %v9393_v42 = vld [vmem:[#allocation66_spill] sm:$0xff]  ;;  %v9394_v41 = vld [vmem:[#allocation67_spill] sm:$0xff] }
 0x45d   : > { %6197 = vmatmul.msk.f32.gmra.mxu3 %vm2732_vm2, %v9387_v18 }
 0x45f   : > { %6251 = vmatmul.msk.f32.gmra.mxu1 %vm2732_vm2, %v5004_v48  ;;  %v4472_v48 = vld [vmem:[#allocation2 + $0x227] sm:$0xff] }
 0x463   : > { %6234 = vmatmul.msk.f32.gmra.mxu0 %vm2732_vm2, %v4745_v27  ;;  %v4751_v27 = vld [vmem:[#allocation2 + $0x230] sm:$0xff] }
 0x464   : > { %6162 = vmatmul.msk.f32.gmra.mxu2 %vm2732_vm2, %v9388_v1  ;;  %v8814_v34 = vpop.f32.mrf.mxu1  ;;  %v5009_v1 = vld [vmem:[#allocation2 + $0xf1] sm:$0xff] }
 0x465   : > { %6198 = vmatmul.msk.f32.gmra.mxu3 %vm2732_vm2, %v9389_v63  ;;  %v4750_v63 = vld [vmem:[#allocation2 + $0x228] sm:$0xff] }
 0x467   : > { %6252 = vmatmul.msk.f32.gmra.mxu1 %vm2732_vm2, %v5005_v9  ;;  %v8860_v9 = vld [vmem:[#allocation2 + $0x211] sm:$0xff] }
 0x46b   : > { %6235 = vmatmul.msk.f32.gmra.mxu0 %vm2732_vm2, %v4746_v36 }
 0x46c   : > { %6163 = vmatmul.msk.f32.gmra.mxu2 %vm2732_vm2, %v9390_v31  ;;  %v8822_v45 = vpop.f32.mrf.mxu1 }
 0x46d   : > { %6199 = vmatmul.msk.f32.gmra.mxu3 %vm2732_vm2, %v9391_v29  ;;  %v5011_v29 = vld [vmem:[#allocation2 + $0x111] sm:$0xff] }
 0x46f   : > { %6253 = vmatmul.msk.f32.gmra.mxu1 %vm2732_vm2, %v5006_v53  ;;  %v5012_v53 = vld [vmem:[#allocation2 + $0x129] sm:$0xff] }
 0x473   : > { %6236 = vmatmul.msk.f32.gmra.mxu0 %vm2732_vm2, %v4747_v8  ;;  %v5013_v8 = vld [vmem:[#allocation2 + $0x131] sm:$0xff] }
 0x474   : > { %6164 = vmatmul.msk.f32.gmra.mxu2 %vm2732_vm2, %v9392_v4  ;;  %v8830_v26 = vpop.f32.mrf.mxu1 }
 0x475   : > { %6200 = vmatmul.msk.f32.gmra.mxu3 %vm2732_vm2, %v8425_v49  ;;  %v5008_v49 = vld [vmem:[#allocation2 + $0xe9] sm:$0xff] }
 0x477   : > { %6254 = vmatmul.msk.f32.gmra.mxu1 %vm2732_vm2, %v5007_v7  ;;  %v8879_v7 = vld [vmem:[%s9123_s4] ss:$0 sm:$0xff] }
 0x47b   : > { %6237 = vmatmul.msk.f32.gmra.mxu0 %vm2732_vm2, %v8708_v2  ;;  %v8851_v2 = vld [vmem:[#allocation2 + $0x209] sm:$0xff] }
 0x47c   : > { %6165 = vmatmul.msk.f32.gmra.mxu2 %vm2732_vm2, %v9393_v42  ;;  %v8839_v18 = vpop.f32.mrf.mxu1 }
 0x47d   : > { %6201 = vmatmul.msk.f32.gmra.mxu3 %vm2732_vm2, %v9394_v41 }
 0x47f   : > { %6255 = vmatmul.msk.f32.gmra.mxu1 %vm2732_vm2, %v5008_v49  ;;  %v5014_v49 = vld [vmem:[#allocation2 + $0x149] sm:$0xff] }
 0x483   : > { %6238 = vmatmul.msk.f32.gmra.mxu0 %vm2732_vm2, %v8723_v21  ;;  %v5010_v21 = vld [vmem:[#allocation2 + $0x109] sm:$0xff] }
 0x484   : > { %6166 = vmatmul.msk.f32.gmra.mxu2 %vm2732_vm2, %v8472_v43  ;;  %v8848_v16 = vpop.f32.mrf.mxu1 }
 0x485   : > { %6202 = vmatmul.msk.f32.gmra.mxu3 %vm2732_vm2, %v8481_v19  ;;  %9395 = vst [vmem:[#allocation8_spill] sm:$0xff] %v8848_v16  ;;  %v4473_v19 = vld [vmem:[#allocation2 + $0x22f] sm:$0xff] }
 0x487   : > { %6256 = vmatmul.msk.f32.gmra.mxu1 %vm2732_vm2, %v5009_v1 }
 0x48b   : > { %6239 = vmatmul.msk.f32.gmra.mxu0 %vm2732_vm2, %v4750_v63  ;;  %v4337_v63 = vpop.f32.mrf.mxu2 }
 0x48c   : > { %6167 = vmatmul.msk.f32.gmra.mxu2 %vm2732_vm2, %v8851_v2  ;;  %v8857_v43 = vpop.f32.mrf.mxu1 }
 0x48d   : > { %6203 = vmatmul.msk.f32.gmra.mxu3 %vm2732_vm2, %v4472_v48  ;;  %9396 = vst [vmem:[#allocation9_spill] sm:$0xff] %v8857_v43 }
 0x48f   : > { %6257 = vmatmul.msk.f32.gmra.mxu1 %vm2732_vm2, %v5010_v21 }
 0x493   : > { %6240 = vmatmul.msk.f32.gmra.mxu0 %vm2732_vm2, %v4751_v27  ;;  %v5015_v27 = vld [vmem:[#allocation2 + $0x151] sm:$0xff] }
 0x494   : > { %6168 = vmatmul.msk.f32.gmra.mxu2 %vm2732_vm2, %v8860_v9  ;;  %v8866_v31 = vpop.f32.mrf.mxu1 }
 0x495   : > { %6204 = vmatmul.msk.f32.gmra.mxu3 %vm2732_vm2, %v4473_v19  ;;  %9397 = vst [vmem:[#allocation61_spill] sm:$0xff] %v8866_v31 }
 0x497   : > { %6258 = vmatmul.msk.f32.gmra.mxu1 %vm2732_vm2, %v5011_v29  ;;  %v4616_v29 = vpop.f32.mrf.mxu3 }
 0x49c   : > { %v8869_v36 = vpop.f32.mrf.mxu1 }
 0x49d   : > { %9398 = vst [vmem:[#allocation10_spill] sm:$0xff] %v8869_v36 }
 0x49f   : > { %6259 = vmatmul.msk.f32.gmra.mxu1 %vm2732_vm2, %v5012_v53 }
 0x4a4   : > { %v8872_v4 = vpop.f32.mrf.mxu1 }
 0x4a5   : > { %9399 = vst [vmem:[#allocation11_spill] sm:$0xff] %v8872_v4  ;;  %v5017_v4 = vld [vmem:[#allocation2 + $0x171] sm:$0xff] }
 0x4a7   : > { %6260 = vmatmul.msk.f32.gmra.mxu1 %vm2732_vm2, %v5013_v8  ;;  %v8893_v8 = vpop.f32.mrf.mxu0 }
 0x4ac   : > { %v5148_v42 = vpop.f32.mrf.mxu1 }
 0x4ad   : > { %v5244_v41 = vadd.f32 %v5148_v42, %v8716_v32  ;;  %v4340_v42 = vpop.f32.mrf.mxu2 }
 0x4af   : > { %v5280_v48 = vadd.f32 %v8879_v7, %v5244_v41  ;;  %6261 = vmatmul.msk.f32.gmra.mxu1 %vm2732_vm2, %v5014_v49 }
 0x4b1   : > { %v5312_v1 = vmax.f32 %v5280_v48, 0.0  ;;  %v5016_v48 = vld [vmem:[#allocation2 + $0x169] sm:$0xff] }
 0x4b3   : > { %5344 = vst.msk [vmem:[%s8886_s14] sm:$0xff] %vm2732_vm2, %v5312_v1 }
 0x4b4   : > { %v5151_v19 = vpop.f32.mrf.mxu1 }
 0x4b5   : > { %v5245_v21 = vadd.f32 %v5151_v19, %v8731_v33  ;;  %v4619_v19 = vpop.f32.mrf.mxu3 }
 0x4b7   : > { %v5281_v32 = vadd.f32 %v8879_v7, %v5245_v21  ;;  %6262 = vmatmul.msk.f32.gmra.mxu1 %vm2732_vm2, %v5015_v27  ;;  %v8902_v27 = vpop.f32.mrf.mxu0 }
 0x4b9   : > { %v5313_v53 = vmax.f32 %v5281_v32, 0.0 }
 0x4bb   : > { %5345 = vst.msk [vmem:[%s8886_s14 + $0x8] sm:$0xff] %vm2732_vm2, %v5313_v53  ;;  %v4343_v53 = vpop.f32.mrf.mxu2 }
 0x4bc   : > { %v5154_v41 = vpop.f32.mrf.mxu1 }
 0x4bd   : > { %v5246_v49 = vadd.f32 %v5154_v41, %v8743_v6  ;;  %v4622_v41 = vpop.f32.mrf.mxu3 }
 0x4bf   : > { %v5282_v33 = vadd.f32 %v8879_v7, %v5246_v49  ;;  %6263 = vmatmul.msk.f32.gmra.mxu1 %vm2732_vm2, %v5016_v48 }
 0x4c1   : > { %v5314_v1 = vmax.f32 %v5282_v33, 0.0  ;;  %v5018_v33 = vld [vmem:[#allocation2 + $0x189] sm:$0xff] }
 0x4c3   : > { %5346 = vst.msk [vmem:[%s8886_s14 + $0x10] sm:$0xff] %vm2732_vm2, %v5314_v1  ;;  %v8910_v1 = vpop.f32.mrf.mxu0 }
 0x4c4   : > { %v5157_v21 = vpop.f32.mrf.mxu1 }
 0x4c5   : > { %v5247_v32 = vadd.f32 %v5157_v21, %v8755_v55  ;;  %v4346_v21 = vpop.f32.mrf.mxu2 }
 0x4c7   : > { %v5283_v28 = vadd.f32 %v8879_v7, %v5247_v32  ;;  %6264 = vmatmul.msk.f32.gmra.mxu1 %vm2732_vm2, %v5017_v4  ;;  %v8917_v32 = vpop.f32.mrf.mxu3 }
 0x4c9   : > { %v5315_v6 = vmax.f32 %v5283_v28, 0.0 }
 0x4cb   : > { %5347 = vst.msk [vmem:[%s8886_s14 + $0x18] sm:$0xff] %vm2732_vm2, %v5315_v6  ;;  %v5019_v6 = vld [vmem:[#allocation2 + $0x191] sm:$0xff] }
 0x4cc   : > { %v5160_v49 = vpop.f32.mrf.mxu1 }
 0x4cd   : > { %v5248_v48 = vadd.f32 %v5160_v49, %v8767_v3  ;;  %v8921_v49 = vpop.f32.mrf.mxu0  ;;  %v8923_v20 = vpop.f32.mrf.mxu2 }
 0x4cf   : > { %v5284_v55 = vadd.f32 %v8879_v7, %v5248_v48  ;;  %6265 = vmatmul.msk.f32.gmra.mxu1 %vm2732_vm2, %v5018_v33 }
 0x4d1   : > { %v5316_v36 = vmax.f32 %v5284_v55, 0.0  ;;  %v5020_v55 = vld [vmem:[#allocation2 + $0x1a9] sm:$0xff] }
 0x4d3   : > { %5348 = vst.msk [vmem:[%s8886_s14 + $0x20] sm:$0xff] %vm2732_vm2, %v5316_v36 }
 0x4d4   : > { %v5163_v4 = vpop.f32.mrf.mxu1 }
 0x4d5   : > { %v5249_v28 = vadd.f32 %v5163_v4, %v8779_v58  ;;  %v8930_v4 = vpop.f32.mrf.mxu3  ;;  %v8934_v25 = vpop.f32.mrf.mxu0 }
 0x4d7   : > { %v5285_v3 = vadd.f32 %v8879_v7, %v5249_v28  ;;  %6266 = vmatmul.msk.f32.gmra.mxu1 %vm2732_vm2, %v5019_v6  ;;  %v9400_v28 = vld [vmem:[#allocation50_spill] sm:$0xff] }
 0x4d8   : > { %v4139_v6 = vadd.f32 %v8632_v11, %v9400_v28  ;;  %v4140_v11 = vadd.f32 %v8644_v10, %v9401_v56  ;;  %v9402_v10 = vld [vmem:[#allocation56_spill] sm:$0xff] }
 0x4d9   : > { %v5317_v48 = vmax.f32 %v5285_v3, 0.0  ;;  %v4141_v56 = vadd.f32 %v8656_v47, %v9402_v10 }
 0x4da   : > { %v4417_v3 = vadd.f32 %v4337_v63, %v4139_v6  ;;  %v4418_v28 = vadd.f32 %v4340_v42, %v4140_v11 }
 0x4db   : > { %5349 = vst.msk [vmem:[%s8886_s14 + $0x28] sm:$0xff] %vm2732_vm2, %v5317_v48  ;;  %v8938_v48 = vpop.f32.mrf.mxu2  ;;  %v4419_v42 = vadd.f32 %v4343_v53, %v4141_v56 }
 0x4dc   : > { %v5166_v33 = vpop.f32.mrf.mxu1  ;;  %v4696_v43 = vadd.f32 %v4616_v29, %v4417_v3  ;;  %v5022_v3 = vld [vmem:[#allocation2 + $0x1c9] sm:$0xff] }
 0x4dd   : > { %v5250_v36 = vadd.f32 %v5166_v33, %v8791_v17  ;;  %v4631_v63 = vpop.f32.mrf.mxu3  ;;  %v8948_v16 = vpop.f32.mrf.mxu0 }
 0x4df   : > { %v5286_v58 = vadd.f32 %v8879_v7, %v5250_v36  ;;  %6267 = vmatmul.msk.f32.gmra.mxu1 %vm2732_vm2, %v5020_v55  ;;  %v5021_v36 = vld [vmem:[#allocation2 + $0x1b1] sm:$0xff] }
 0x4e1   : > { %v5318_v31 = vmax.f32 %v5286_v58, 0.0 }
 0x4e3   : > { %5350 = vst.msk [vmem:[%s8886_s14 + $0x30] sm:$0xff] %vm2732_vm2, %v5318_v31  ;;  %v4974_v31 = vadd.f32 %v8893_v8, %v4696_v43  ;;  %v4355_v29 = vpop.f32.mrf.mxu2 }
 0x4e4   : > { %v5169_v17 = vpop.f32.mrf.mxu1 }
 0x4e5   : > { %v5251_v33 = vadd.f32 %v5169_v17, %v8803_v24  ;;  %v4697_v17 = vadd.f32 %v4619_v19, %v4418_v28  ;;  %v4634_v8 = vpop.f32.mrf.mxu3  ;;  %v4912_v19 = vpop.f32.mrf.mxu0 }
 0x4e7   : > { %v5287_v55 = vadd.f32 %v8879_v7, %v5251_v33  ;;  %6268 = vmatmul.msk.f32.gmra.mxu1 %vm2732_vm2, %v5021_v36  ;;  %v4975_v43 = vadd.f32 %v8902_v27, %v4697_v17 }
 0x4e9   : > { %v5319_v58 = vmax.f32 %v5287_v55, 0.0 }
 0x4eb   : > { %5351 = vst.msk [vmem:[%s8886_s14 + $0x38] sm:$0xff] %vm2732_vm2, %v5319_v58  ;;  %v5023_v58 = vld [vmem:[#allocation2 + $0x1d1] sm:$0xff] }
 0x4ec   : > { %v5172_v6 = vpop.f32.mrf.mxu1 }
 0x4ed   : > { %v5252_v24 = vadd.f32 %v5172_v6, %v4974_v31  ;;  %v4698_v31 = vadd.f32 %v4622_v41, %v4419_v42  ;;  %v4358_v6 = vpop.f32.mrf.mxu2  ;;  %v4637_v10 = vpop.f32.mrf.mxu3  ;;  %v5024_v41 = vld [vmem:[#allocation2 + $0x1e9] sm:$0xff] }
 0x4ee   : > { %v9404_v42 = vld [vmem:[#allocation63_spill] sm:$0xff] }
 0x4ef   : > { %v5288_v33 = vadd.f32 %v8879_v7, %v5252_v24  ;;  %6269 = vmatmul.msk.f32.gmra.mxu1 %vm2732_vm2, %v5022_v3  ;;  %v9403_v24 = vld [vmem:[#allocation60_spill] sm:$0xff]  ;;  %v4976_v27 = vadd.f32 %v8910_v1, %v4698_v31 }
 0x4f0   : > { %v4142_v47 = vadd.f32 %v8668_v44, %v9403_v24  ;;  %v4143_v44 = vadd.f32 %v8680_v46, %v9404_v42 }
 0x4f1   : > { %v5320_v36 = vmax.f32 %v5288_v33, 0.0 }
 0x4f2   : > { %v4420_v53 = vadd.f32 %v4346_v21, %v4142_v47  ;;  %v9405_v47 = vld [vmem:[#allocation68_spill] sm:$0xff] }
 0x4f3   : > { %5352 = vst.msk [vmem:[%s8886_s14 + $0x40] sm:$0xff] %vm2732_vm2, %v5320_v36 }
 0x4f4   : > { %v5175_v55 = vpop.f32.mrf.mxu1  ;;  %v4699_v56 = vadd.f32 %v8917_v32, %v4420_v53  ;;  %v5025_v32 = vld [vmem:[#allocation2 + $0x1f1] sm:$0xff] }
 0x4f5   : > { %v5253_v11 = vadd.f32 %v5175_v55, %v4975_v43  ;;  %v4915_v43 = vpop.f32.mrf.mxu0  ;;  %v4361_v21 = vpop.f32.mrf.mxu2 }
 0x4f6   : > { %v4977_v1 = vadd.f32 %v8921_v49, %v4699_v56  ;;  %v4640_v46 = vpop.f32.mrf.mxu3 }
 0x4f7   : > { %v5289_v28 = vadd.f32 %v8879_v7, %v5253_v11  ;;  %6270 = vmatmul.msk.f32.gmra.mxu1 %vm2732_vm2, %v5023_v58  ;;  %v4421_v11 = vadd.f32 %v8923_v20, %v4143_v44 }
 0x4f9   : > { %v5321_v3 = vmax.f32 %v5289_v28, 0.0  ;;  %v4700_v28 = vadd.f32 %v8930_v4, %v4421_v11 }
 0x4fb   : > { %5353 = vst.msk [vmem:[%s8886_s14 + $0x48] sm:$0xff] %vm2732_vm2, %v5321_v3  ;;  %v4144_v3 = vadd.f32 %v8692_v40, %v9405_v47  ;;  %v4978_v49 = vadd.f32 %v8934_v25, %v4700_v28 }
 0x4fc   : > { %v5178_v17 = vpop.f32.mrf.mxu1 }
 0x4fd   : > { %v5254_v33 = vadd.f32 %v5178_v17, %v4976_v27  ;;  %v4422_v20 = vadd.f32 %v8938_v48, %v4144_v3  ;;  %v4918_v27 = vpop.f32.mrf.mxu0  ;;  %v4364_v17 = vpop.f32.mrf.mxu2 }
 0x4fe   : > { %v4643_v48 = vpop.f32.mrf.mxu3 }
 0x4ff   : > { %v5290_v36 = vadd.f32 %v8879_v7, %v5254_v33  ;;  %6271 = vmatmul.msk.f32.gmra.mxu1 %vm2732_vm2, %v5024_v41  ;;  %v4701_v41 = vadd.f32 %v4631_v63, %v4422_v20 }
 0x501   : > { %v5322_v55 = vmax.f32 %v5290_v36, 0.0  ;;  %v9406_v36 = vld [vmem:[#allocation69_spill] sm:$0xff]  ;;  %v4979_v25 = vadd.f32 %v8948_v16, %v4701_v41 }
 0x502   : > { %v4145_v40 = vadd.f32 %v8706_v54, %v9406_v36  ;;  %v4146_v54 = vadd.f32 %v8721_v62, %v8495_v57  ;;  %v4147_v57 = vadd.f32 %v8736_v14, %v8508_v12 }
 0x503   : > { %5354 = vst.msk [vmem:[%s8886_s14 + $0x50] sm:$0xff] %vm2732_vm2, %v5322_v55 }
 0x504   : > { %v5181_v58 = vpop.f32.mrf.mxu1  ;;  %v4423_v44 = vadd.f32 %v4355_v29, %v4145_v40  ;;  %v4424_v29 = vadd.f32 %v4358_v6, %v4146_v54  ;;  %v4425_v6 = vadd.f32 %v4361_v21, %v4147_v57 }
 0x505   : > { %v5255_v31 = vadd.f32 %v5181_v58, %v4977_v1  ;;  %v4921_v11 = vpop.f32.mrf.mxu0  ;;  %v4367_v63 = vpop.f32.mrf.mxu2 }
 0x506   : > { %v4702_v58 = vadd.f32 %v4634_v8, %v4423_v44  ;;  %v4646_v16 = vpop.f32.mrf.mxu3  ;;  %v4703_v3 = vadd.f32 %v4637_v10, %v4424_v29  ;;  %v4704_v10 = vadd.f32 %v4640_v46, %v4425_v6 }
 0x507   : > { %v5291_v24 = vadd.f32 %v8879_v7, %v5255_v31  ;;  %6272 = vmatmul.msk.f32.gmra.mxu1 %vm2732_vm2, %v5025_v32 }
 0x508   : > { %v4980_v32 = vadd.f32 %v4912_v19, %v4702_v58  ;;  %v4981_v19 = vadd.f32 %v4915_v43, %v4703_v3  ;;  %v4982_v43 = vadd.f32 %v4918_v27, %v4704_v10 }
 0x509   : > { %v5323_v53 = vmax.f32 %v5291_v24, 0.0  ;;  %v5028_v24 = vld [vmem:[#allocation2 + $0x229] sm:$0xff] }
 0x50b   : > { %5355 = vst.msk [vmem:[%s8886_s14 + $0x58] sm:$0xff] %vm2732_vm2, %v5323_v53 }
 0x50c   : > { %v5184_v33 = vpop.f32.mrf.mxu1 }
 0x50d   : > { %v5256_v4 = vadd.f32 %v5184_v33, %v4978_v49  ;;  %v4924_v8 = vpop.f32.mrf.mxu0  ;;  %v5029_v49 = vld [vmem:[#allocation2 + $0x231] sm:$0xff] }
 0x50f   : > { %v5292_v56 = vadd.f32 %v8879_v7, %v5256_v4  ;;  %6273 = vmatmul.msk.f32.gmra.mxu1 %vm2732_vm2, %v8851_v2  ;;  %v4649_v4 = vpop.f32.mrf.mxu3 }
 0x511   : > { %v5324_v42 = vmax.f32 %v5292_v56, 0.0  ;;  %v4148_v56 = vadd.f32 %v8748_v22, %v8521_v51 }
 0x513   : > { %5356 = vst.msk [vmem:[%s8886_s14 + $0x60] sm:$0xff] %vm2732_vm2, %v5324_v42  ;;  %v4426_v21 = vadd.f32 %v4364_v17, %v4148_v56 }
 0x514   : > { %v5187_v55 = vpop.f32.mrf.mxu1 }
 0x515   : > { %v5257_v1 = vadd.f32 %v5187_v55, %v4979_v25  ;;  %v4927_v12 = vpop.f32.mrf.mxu0  ;;  %v4705_v44 = vadd.f32 %v4643_v48, %v4426_v21  ;;  %v4149_v55 = vadd.f32 %v8760_v0, %v8534_v59  ;;  %v4150_v48 = vadd.f32 %v8772_v52, %v8547_v35 }
 0x517   : > { %v5293_v31 = vadd.f32 %v8879_v7, %v5257_v1  ;;  %6274 = vmatmul.msk.f32.gmra.mxu1 %vm2732_vm2, %v8860_v9  ;;  %v4370_v9 = vpop.f32.mrf.mxu2  ;;  %v4652_v25 = vpop.f32.mrf.mxu3  ;;  %v4427_v51 = vadd.f32 %v4367_v63, %v4149_v55  ;;  %v4983_v58 = vadd.f32 %v4921_v11, %v4705_v44  ;;  %v4154_v55 = vadd.f32 %v8814_v34, %v8602_v23 }
 0x519   : > { %v5325_v2 = vmax.f32 %v5293_v31, 0.0  ;;  %v4706_v27 = vadd.f32 %v4646_v16, %v4427_v51  ;;  %v4151_v16 = vadd.f32 %v8784_v38, %v8560_v50 }
 0x51b   : > { %5357 = vst.msk [vmem:[%s8886_s14 + $0x68] sm:$0xff] %vm2732_vm2, %v5325_v2  ;;  %v4984_v59 = vadd.f32 %v4924_v8, %v4706_v27  ;;  %v4155_v27 = vadd.f32 %v8822_v45, %v8615_v39 }
 0x51c   : > { %v5190_v28 = vpop.f32.mrf.mxu1 }
 0x51d   : > { %v5258_v47 = vadd.f32 %v5190_v28, %v4980_v32  ;;  %v4930_v22 = vpop.f32.mrf.mxu0  ;;  %v4428_v28 = vadd.f32 %v4370_v9, %v4150_v48 }
 0x51f   : > { %v5294_v53 = vadd.f32 %v8879_v7, %v5258_v47  ;;  %6275 = vmatmul.msk.f32.gmra.mxu1 %vm2732_vm2, %v5028_v24  ;;  %v4373_v36 = vpop.f32.mrf.mxu2  ;;  %v4655_v32 = vpop.f32.mrf.mxu3  ;;  %v4707_v47 = vadd.f32 %v4649_v4, %v4428_v28 }
 0x520   : > { %v4429_v57 = vadd.f32 %v4373_v36, %v4151_v16 }
 0x521   : > { %v5326_v62 = vmax.f32 %v5294_v53, 0.0  ;;  %v4985_v35 = vadd.f32 %v4927_v12, %v4707_v47 }
 0x522   : > { %v4708_v8 = vadd.f32 %v4652_v25, %v4429_v57 }
 0x523   : > { %5358 = vst.msk [vmem:[%s8886_s14 + $0x70] sm:$0xff] %vm2732_vm2, %v5326_v62 }
 0x524   : > { %v5193_v20 = vpop.f32.mrf.mxu1  ;;  %v4986_v50 = vadd.f32 %v4930_v22, %v4708_v8 }
 0x525   : > { %v5259_v33 = vadd.f32 %v5193_v20, %v4981_v19  ;;  %v4933_v63 = vpop.f32.mrf.mxu0 }
 0x527   : > { %v5295_v41 = vadd.f32 %v8879_v7, %v5259_v33  ;;  %6276 = vmatmul.msk.f32.gmra.mxu1 %vm2732_vm2, %v5029_v49  ;;  %v4376_v17 = vpop.f32.mrf.mxu2  ;;  %v4658_v52 = vpop.f32.mrf.mxu3  ;;  %v4152_v49 = vadd.f32 %v8796_v5, %v8573_v13 }
 0x529   : > { %v5327_v14 = vmax.f32 %v5295_v41, 0.0  ;;  %v4430_v4 = vadd.f32 %v4376_v17, %v4152_v49 }
 0x52b   : > { %5359 = vst.msk [vmem:[%s8886_s14 + $0x78] sm:$0xff] %vm2732_vm2, %v5327_v14  ;;  %v4709_v56 = vadd.f32 %v4655_v32, %v4430_v4  ;;  %v4153_v14 = vadd.f32 %v8806_v61, %v8589_v15 }
 0x52c   : > { %v5196_v40 = vpop.f32.mrf.mxu1 }
 0x52d   : > { %v5260_v42 = vadd.f32 %v5196_v40, %v4982_v43  ;;  %v4936_v6 = vpop.f32.mrf.mxu0  ;;  %v4987_v13 = vadd.f32 %v4933_v63, %v4709_v56 }
 0x52f   : > { %v5296_v46 = vadd.f32 %v8879_v7, %v5260_v42  ;;  %v4379_v11 = vpop.f32.mrf.mxu2  ;;  %v4661_v41 = vpop.f32.mrf.mxu3 }
 0x530   : > { %v4431_v40 = vadd.f32 %v4379_v11, %v4153_v14 }
 0x531   : > { %v5328_v1 = vmax.f32 %v5296_v46, 0.0 }
 0x532   : > { %v4710_v44 = vadd.f32 %v4658_v52, %v4431_v40 }
 0x533   : > { %5360 = vst.msk [vmem:[%s8886_s14 + $0x80] sm:$0xff] %vm2732_vm2, %v5328_v1 }
 0x534   : > { %v5199_v31 = vpop.f32.mrf.mxu1  ;;  %v4988_v51 = vadd.f32 %v4936_v6, %v4710_v44 }
 0x535   : > { %v5261_v54 = vadd.f32 %v5199_v31, %v4983_v58  ;;  %v4939_v36 = vpop.f32.mrf.mxu0 }
 0x537   : > { %v5297_v2 = vadd.f32 %v8879_v7, %v5261_v54  ;;  %v4382_v20 = vpop.f32.mrf.mxu2  ;;  %v4664_v25 = vpop.f32.mrf.mxu3 }
 0x538   : > { %v4432_v15 = vadd.f32 %v4382_v20, %v4154_v55 }
 0x539   : > { %v5329_v29 = vmax.f32 %v5297_v2, 0.0 }
 0x53a   : > { %v4711_v31 = vadd.f32 %v4661_v41, %v4432_v15  ;;  %v9410_v15 = vld [vmem:[#allocation65_spill] sm:$0xff] }
 0x53b   : > { %5361 = vst.msk [vmem:[%s8886_s14 + $0x88] sm:$0xff] %vm2732_vm2, %v5329_v29 }
 0x53c   : > { %v5202_v0 = vpop.f32.mrf.mxu1  ;;  %v4989_v23 = vadd.f32 %v4939_v36, %v4711_v31 }
 0x53d   : > { %v5262_v24 = vadd.f32 %v5202_v0, %v4984_v59  ;;  %v4942_v61 = vpop.f32.mrf.mxu0 }
 0x53f   : > { %v5298_v3 = vadd.f32 %v8879_v7, %v5262_v24  ;;  %v4385_v43 = vpop.f32.mrf.mxu2  ;;  %v4667_v48 = vpop.f32.mrf.mxu3  ;;  %v4156_v24 = vadd.f32 %v8830_v26, %v8628_v37 }
 0x540   : > { %v4433_v29 = vadd.f32 %v4385_v43, %v4155_v27  ;;  %v9409_v43 = vld [vmem:[#allocation9_spill] sm:$0xff] }
 0x541   : > { %v5330_v53 = vmax.f32 %v5298_v3, 0.0 }
 0x542   : > { %v4712_v0 = vadd.f32 %v4664_v25, %v4433_v29 }
 0x543   : > { %5362 = vst.msk [vmem:[%s8886_s14 + $0x90] sm:$0xff] %vm2732_vm2, %v5330_v53 }
 0x544   : > { %v5205_v9 = vpop.f32.mrf.mxu1  ;;  %v4990_v39 = vadd.f32 %v4942_v61, %v4712_v0  ;;  %v9411_v61 = vld [vmem:[#allocation61_spill] sm:$0xff] }
 0x545   : > { %v5263_v62 = vadd.f32 %v5205_v9, %v4985_v35  ;;  %v4945_v32 = vpop.f32.mrf.mxu0  ;;  %v4157_v9 = vadd.f32 %v8839_v18, %v8641_v60 }
 0x547   : > { %v5299_v19 = vadd.f32 %v8879_v7, %v5263_v62  ;;  %v4388_v22 = vpop.f32.mrf.mxu2  ;;  %v4670_v45 = vpop.f32.mrf.mxu3 }
 0x548   : > { %v4434_v47 = vadd.f32 %v4388_v22, %v4156_v24 }
 0x549   : > { %v5331_v33 = vmax.f32 %v5299_v19, 0.0 }
 0x54a   : > { %v4713_v53 = vadd.f32 %v4667_v48, %v4434_v47 }
 0x54b   : > { %5363 = vst.msk [vmem:[%s8886_s14 + $0x98] sm:$0xff] %vm2732_vm2, %v5331_v33  ;;  %v9407_v33 = vld [vmem:[#allocation8_spill] sm:$0xff] }
 0x54c   : > { %v5208_v38 = vpop.f32.mrf.mxu1  ;;  %v4991_v37 = vadd.f32 %v4945_v32, %v4713_v53  ;;  %v4158_v4 = vadd.f32 %v9407_v33, %v8653_v30  ;;  %v9413_v32 = vld [vmem:[#allocation10_spill] sm:$0xff]  ;;  %v9414_v53 = vld [vmem:[#allocation7_spill] sm:$0xff] }
 0x54d   : > { %v5264_v10 = vadd.f32 %v5208_v38, %v4986_v50  ;;  %v4948_v57 = vpop.f32.mrf.mxu0 }
 0x54f   : > { %v5300_v12 = vadd.f32 %v8879_v7, %v5264_v10  ;;  %v4391_v59 = vpop.f32.mrf.mxu2  ;;  %v4673_v19 = vpop.f32.mrf.mxu3 }
 0x550   : > { %v4435_v8 = vadd.f32 %v4391_v59, %v4157_v9 }
 0x551   : > { %v5332_v21 = vmax.f32 %v5300_v12, 0.0 }
 0x552   : > { %v4714_v20 = vadd.f32 %v4670_v45, %v4435_v8 }
 0x553   : > { %5364 = vst.msk [vmem:[%s8886_s14 + $0xa0] sm:$0xff] %vm2732_vm2, %v5332_v21  ;;  %v9408_v21 = vld [vmem:[#allocation6_spill] sm:$0xff] }
 0x554   : > { %v5211_v5 = vpop.f32.mrf.mxu1  ;;  %v4992_v60 = vadd.f32 %v4948_v57, %v4714_v20  ;;  %v4159_v40 = vadd.f32 %v9409_v43, %v9408_v21  ;;  %v9415_v57 = vld [vmem:[#allocation11_spill] sm:$0xff] }
 0x555   : > { %v5265_v42 = vadd.f32 %v5211_v5, %v4987_v13  ;;  %v4951_v50 = vpop.f32.mrf.mxu0 }
 0x557   : > { %v5301_v46 = vadd.f32 %v8879_v7, %v5265_v42  ;;  %v4394_v52 = vpop.f32.mrf.mxu2  ;;  %v4676_v36 = vpop.f32.mrf.mxu3 }
 0x558   : > { %v4436_v41 = vadd.f32 %v4394_v52, %v4158_v4 }
 0x559   : > { %v5333_v1 = vmax.f32 %v5301_v46, 0.0 }
 0x55a   : > { %v4715_v12 = vadd.f32 %v4673_v19, %v4436_v41 }
 0x55b   : > { %5365 = vst.msk [vmem:[%s8886_s14 + $0xa8] sm:$0xff] %vm2732_vm2, %v5333_v1 }
 0x55c   : > { %v5214_v58 = vpop.f32.mrf.mxu1  ;;  %v4993_v42 = vadd.f32 %v4951_v50, %v4715_v12 }
 0x55d   : > { %v5266_v17 = vadd.f32 %v5214_v58, %v4988_v51  ;;  %v4954_v30 = vpop.f32.mrf.mxu0  ;;  %v4160_v51 = vadd.f32 %v9411_v61, %v9410_v15 }
 0x55f   : > { %v5302_v54 = vadd.f32 %v8879_v7, %v5266_v17  ;;  %v4397_v10 = vpop.f32.mrf.mxu2  ;;  %v4679_v58 = vpop.f32.mrf.mxu3 }
 0x560   : > { %v4437_v5 = vadd.f32 %v4397_v10, %v4159_v40 }
 0x561   : > { %v5334_v2 = vmax.f32 %v5302_v54, 0.0 }
 0x562   : > { %v4716_v55 = vadd.f32 %v4676_v36, %v4437_v5 }
 0x563   : > { %5366 = vst.msk [vmem:[%s8886_s14 + $0xb0] sm:$0xff] %vm2732_vm2, %v5334_v2 }
 0x564   : > { %v5217_v34 = vpop.f32.mrf.mxu1  ;;  %v4994_v31 = vadd.f32 %v4954_v30, %v4716_v55 }
 0x565   : > { %v5267_v28 = vadd.f32 %v5217_v34, %v4989_v23  ;;  %v4957_v2 = vpop.f32.mrf.mxu0  ;;  %v9412_v34 = vld [vmem:[#allocation57_spill] sm:$0xff] }
 0x567   : > { %v5303_v63 = vadd.f32 %v8879_v7, %v5267_v28  ;;  %v4400_v44 = vpop.f32.mrf.mxu2  ;;  %v4161_v28 = vadd.f32 %v9413_v32, %v9412_v34  ;;  %v4682_v0 = vpop.f32.mrf.mxu3 }
 0x568   : > { %v4438_v17 = vadd.f32 %v4400_v44, %v4160_v51 }
 0x569   : > { %v5335_v11 = vmax.f32 %v5303_v63, 0.0 }
 0x56a   : > { %v4717_v29 = vadd.f32 %v4679_v58, %v4438_v17 }
 0x56b   : > { %5367 = vst.msk [vmem:[%s8886_s14 + $0xb8] sm:$0xff] %vm2732_vm2, %v5335_v11 }
 0x56c   : > { %v5220_v3 = vpop.f32.mrf.mxu1  ;;  %v4995_v24 = vadd.f32 %v4957_v2, %v4717_v29 }
 0x56d   : > { %v5268_v16 = vadd.f32 %v5220_v3, %v4990_v39  ;;  %v4960_v39 = vpop.f32.mrf.mxu0 }
 0x56f   : > { %v5304_v35 = vadd.f32 %v8879_v7, %v5268_v16  ;;  %v4403_v48 = vpop.f32.mrf.mxu2  ;;  %v4685_v8 = vpop.f32.mrf.mxu3 }
 0x570   : > { %v4439_v63 = vadd.f32 %v4403_v48, %v4161_v28 }
 0x571   : > { %v5336_v62 = vmax.f32 %v5304_v35, 0.0  ;;  %v4162_v35 = vadd.f32 %v9415_v57, %v9414_v53 }
 0x572   : > { %v4718_v45 = vadd.f32 %v4682_v0, %v4439_v63 }
 0x573   : > { %5368 = vst.msk [vmem:[%s8886_s14 + $0xc0] sm:$0xff] %vm2732_vm2, %v5336_v62 }
 0x574   : > { %v5223_v26 = vpop.f32.mrf.mxu1  ;;  %v4996_v9 = vadd.f32 %v4960_v39, %v4718_v45 }
 0x575   : > { %v5269_v6 = vadd.f32 %v5223_v26, %v4991_v37  ;;  %v4963_v20 = vpop.f32.mrf.mxu0 }
 0x577   : > { %v5305_v49 = vadd.f32 %v8879_v7, %v5269_v6  ;;  %v4406_v16 = vpop.f32.mrf.mxu2 }
 0x578   : > { %v4440_v62 = vadd.f32 %v4406_v16, %v4162_v35 }
 0x579   : > { %v5337_v38 = vmax.f32 %v5305_v49, 0.0 }
 0x57a   : > { %v4719_v6 = vadd.f32 %v4685_v8, %v4440_v62 }
 0x57b   : > { %5369 = vst.msk [vmem:[%s8886_s14 + $0xc8] sm:$0xff] %vm2732_vm2, %v5337_v38 }
 0x57c   : > { %v5226_v18 = vpop.f32.mrf.mxu1  ;;  %v4997_v33 = vadd.f32 %v4963_v20, %v4719_v6 }
 0x57d   : > { %v5270_v56 = vadd.f32 %v5226_v18, %v4992_v60 }
 0x57f   : > { %v5306_v14 = vadd.f32 %v8879_v7, %v5270_v56 }
 0x581   : > { %v5338_v13 = vmax.f32 %v5306_v14, 0.0 }
 0x583   : > { %5370 = vst.msk [vmem:[%s8886_s14 + $0xd0] sm:$0xff] %vm2732_vm2, %v5338_v13 }
 0x584   : > { %v5229_v46 = vpop.f32.mrf.mxu1 }
 0x585   : > { %v5271_v25 = vadd.f32 %v5229_v46, %v4993_v42 }
 0x587   : > { %v5307_v1 = vadd.f32 %v8879_v7, %v5271_v25 }
 0x589   : > { %v5339_v22 = vmax.f32 %v5307_v1, 0.0 }
 0x58b   : > { %5371 = vst.msk [vmem:[%s8886_s14 + $0xd8] sm:$0xff] %vm2732_vm2, %v5339_v22 }
 0x58c   : > { %v5232_v54 = vpop.f32.mrf.mxu1 }
 0x58d   : > { %v5272_v27 = vadd.f32 %v5232_v54, %v4994_v31 }
 0x58f   : > { %v5308_v23 = vadd.f32 %v8879_v7, %v5272_v27 }
 0x591   : > { %v5340_v59 = vmax.f32 %v5308_v23, 0.0 }
 0x593   : > { %5372 = vst.msk [vmem:[%s8886_s14 + $0xe0] sm:$0xff] %vm2732_vm2, %v5340_v59 }
 0x594   : > { %v5235_v11 = vpop.f32.mrf.mxu1 }
 0x595   : > { %v5273_v47 = vadd.f32 %v5235_v11, %v4995_v24 }
 0x597   : > { %v5309_v3 = vadd.f32 %v8879_v7, %v5273_v47 }
 0x599   : > { %v5341_v52 = vmax.f32 %v5309_v3, 0.0 }
 0x59b   : > { %5373 = vst.msk [vmem:[%s8886_s14 + $0xe8] sm:$0xff] %vm2732_vm2, %v5341_v52 }
 0x59c   : > { %v5238_v37 = vpop.f32.mrf.mxu1 }
 0x59d   : > { %v5274_v26 = vadd.f32 %v5238_v37, %v4996_v9 }
 0x59f   : > { %v5310_v19 = vadd.f32 %v8879_v7, %v5274_v26 }
 0x5a1   : > { %v5342_v49 = vmax.f32 %v5310_v19, 0.0 }
 0x5a3   : > { %5374 = vst.msk [vmem:[%s8886_s14 + $0xf0] sm:$0xff] %vm2732_vm2, %v5342_v49 }
 0x5a4   : > { %v5241_v4 = vpop.f32.mrf.mxu1 }
 0x5a5   : > { %v5275_v50 = vadd.f32 %v5241_v4, %v4997_v33 }
 0x5a7   : > { %v5311_v38 = vadd.f32 %v8879_v7, %v5275_v50 }
 0x5a9   : > { %v5343_v10 = vmax.f32 %v5311_v38, 0.0 }
 0x5ab   : > { %5375 = vst.msk [vmem:[%s8886_s14 + $0xf8] sm:$0xff] %vm2732_vm2, %v5343_v10 }
 0x5ac   : > { %6359 = shalt.err (!%p6356_p3)
}
 0x5ad   : > { %s6397_s10 = smov 128   ;;  %s6398_s13 = smov 8  }
 0x5ae   : > { %6286 = dma.vmem_to_hbm [thread:$0]  (%p6467_p5), %s5390_s26, 4096, %s5392_s30, %s5377_s22, %s6397_s10, %s6397_s10, %s6398_s13  }
 0x5af PF: > { %p6292_p4 = scmp.ge.s32.totalorder %s6394_s21, 2  ;;  %s5406_s14 = sand.u32 1, %s6382_s18  }
 0x5b0   : > { %s5407_s15 = scalar_lea.sflag [#allocation4], %s5406_s14 }
 0x5b1   : > { %p6289_p7 = pnand %p6292_p4, %p6471_p6 }
 0x5b3   : > { %p6290_p8 = pneg %p6289_p7 }
 0x5b5   : > { %6377 = dma.done.wait (%p6290_p8), %s5407_s15, 4096  }
 0x5b6   : > { %6379 = vsyncadd (%p6290_p8), %s5407_s15, 4294963200  ;;  %p15_p9 = scmp.ge.s32.totalorder %s6454_s24, 4   ;;  %s9416_s18 = smov %s6386_s19 }
 0x5b7   : > { %s9417_s19 = smov %s6390_s20  ;;  %s9418_s20 = smov %s6465_s27 }
 0x5b8   : > { %s9419_s21 = smov %s6454_s24  ;;  %17 = sbr.rel (!%p15_p9) target bundleno = 3 (0x3), region = 95 }
 0x5bd   :  { %5413 = vsyncpa [#allocation4], 1 }
 0x5be   :  { %5415 = vsyncpa [#allocation4 + $0x1], 1 }

</bundles_post_ra>
